<compile_context>
chip_gen: v6e
topology: v6e:2x2x1
jax: 0.10.0
libtpu: 0.0.40
codegen_flags: <defaults>
</compile_context>

<pallas_src>
import jax
import jax.numpy as jnp
from jax.experimental import pallas as pl
from jax.experimental.pallas import tpu as pltpu


# ----------------------------- Pallas kernels -----------------------------

def _preproc_kernel(x_ref, w_ref, b_ref, o_ref):
    # Fused linear1+linear2: y = x @ (W1^T W2^T) + (b1 W2^T + b2), precomputed at init.
    o_ref[...] = (jnp.dot(x_ref[...], w_ref[...], preferred_element_type=jnp.float32)
                  + b_ref[...])


def _bilstm_layer_kernel(x_ref, wf_ref, wb_ref, whh_ref, b_ref,
                         out_ref, hn_ref, xgf_ref, xgb_ref):
    # One fused bidirectional LSTM layer (both directions in one instruction stream).
    #   x_ref  : (T*B, D)    time-major flat input (row t*B + b)
    #   wf_ref : (D, 8H)     forward  W_ih^T embedded at forward  gate columns
    #   wb_ref : (D, 8H)     backward W_ih^T embedded at backward gate columns
    #   whh_ref: (2H, 8H)    block-diagonal recurrent weights (both directions)
    #   b_ref  : (1, 8H)     combined biases (b_ih + b_hh, both directions)
    #   out_ref: (T, B, 2H)  time-aligned layer output [h_fwd(t) | h_bwd(t)]
    #   hn_ref : (B, 2H)     final hidden states [h_n fwd | h_n bwd]
    #   xgf/xgb: (T, B, 8H)  VMEM scratch: hoisted input projections per direction
    # Gate column layout: [i_f i_b | f_f f_b | g_f g_b | o_f o_b], each block H wide,
    # so each gate slice below is 2H = 64 lanes covering both directions at once.
    T, B, H2 = out_ref.shape           # H2 = 2*H
    H = H2 // 2
    G2 = b_ref.shape[-1]               # 8*H

    # ---- prologue: batched input projection for ALL timesteps (off the serial path) ----
    x = x_ref[...]                                                        # (T*B, D)
    proj_f = jnp.dot(x, wf_ref[...], preferred_element_type=jnp.float32) + b_ref[...]
    proj_b = jnp.dot(x, wb_ref[...], preferred_element_type=jnp.float32)
    for t in range(T):  # static slices -> (T, B, 8H) scratch with aligned first-axis reads
        xgf_ref[t] = proj_f[t * B:(t + 1) * B, :]
        xgb_ref[t] = proj_b[t * B:(t + 1) * B, :]

    whh = whh_ref[...]                                                    # (2H, 8H)

    # ---- recurrence: fully unrolled (T static), one matmul/step for both directions ----
    h = jnp.zeros((B, H2), jnp.float32)      # [h_fwd | h_bwd]
    c = jnp.zeros((B, H2), jnp.float32)      # [c_fwd | c_bwd]
    hs = []
    for s in range(T):
        # fwd chain consumes time s, bwd chain consumes time T-1-s; the "other"
        # direction's columns of each scratch row are zero, so the add combines them.
        gx = xgf_ref[s] + xgb_ref[T - 1 - s]                              # (B, 8H)
        gates = gx + jnp.dot(h, whh, preferred_element_type=jnp.float32)  # (B, 8H)
        i_g = jax.nn.sigmoid(gates[:, 0 * H2:1 * H2])                     # (B, 64)
        f_g = jax.nn.sigmoid(gates[:, 1 * H2:2 * H2])
        g_g = jnp.tanh(gates[:, 2 * H2:3 * H2])
        o_g = jax.nn.sigmoid(gates[:, 3 * H2:4 * H2])
        c = f_g * c + i_g * g_g
        h = o_g * jnp.tanh(c)
        hs.append(h)                          # register-resident, no per-step store

    # ---- epilogue: single bulk stores ----
    hn_ref[...] = hs[T - 1]                   # fwd final = time T-1, bwd final = time 0
    lane = jax.lax.broadcasted_iota(jnp.int32, (B, H2), 1)
    fwd_mask = lane < H
    # out[t] = [h_fwd(t) | h_bwd(t)]; h_bwd(t) was produced at step s = T-1-t.
    out_ref[...] = jnp.stack(
        [jnp.where(fwd_mask, hs[t], hs[T - 1 - t]) for t in range(T)], axis=0)


def _head_kernel(*refs):
    # refs = (hn_layer0, ..., hn_layer{L-1}, w3t, b3, w4t, b4, out)
    #   hn_layer_l: (B, 2H) = [fwd | bwd]  (matches PyTorch h_n.transpose(0,1).flatten(1))
    # relu(h_flat @ W3^T + b3) @ W4^T + b4 with ONE lane-dense K = 2*L*H matmul.
    *hn_refs, w3t_ref, b3_ref, w4t_ref, b4_ref, o_ref = refs
    h_flat = jnp.concatenate([r[...] for r in hn_refs], axis=-1)          # (B, 2*L*H)
    h1 = jnp.dot(h_flat, w3t_ref[...], preferred_element_type=jnp.float32) + b3_ref[...]
    h1 = jnp.maximum(h1, 0.0)
    o_ref[...] = (jnp.dot(h1, w4t_ref[...], preferred_element_type=jnp.float32)
                  + b4_ref[...])


# ----------------------------- parameters -----------------------------

def init_params(key, input_size, hidden_size, num_layers):
    """PyTorch-layout weights, then pre-transposed / pre-embedded so the kernels never
    transpose, reorder, or concatenate weights at run time. No Python scalars are stored
    in the returned pytree (everything static is recoverable from shapes)."""
    H = hidden_size
    G = 4 * H
    G2 = 8 * H

    def uni(k, shape, fan_in):
        bound = 1.0 / jnp.sqrt(jnp.float32(fan_in))
        return jax.random.uniform(k, shape, jnp.float32, -bound, bound)

    keys = iter(jax.random.split(key, 16 + 8 * num_layers))
    p = {}

    # linear1 / linear2 (input_size -> input_size), folded into one affine map.
    w1 = uni(next(keys), (input_size, input_size), input_size)
    b1 = uni(next(keys), (input_size,), input_size)
    w2 = uni(next(keys), (input_size, input_size), input_size)
    b2 = uni(next(keys), (input_size,), input_size)
    p["w12t"] = w1.T @ w2.T                                   # (Din, Din)
    p["b12"] = (b1 @ w2.T + b2).reshape(1, input_size)        # (1, Din)

    # LSTM params. PyTorch layout: weight_ih (4H, D), weight_hh (4H, H), biases (4H,)
    # with gate row order (i, f, g, o). Stored here in the fused layout:
    #   combined gate columns [i_f i_b | f_f f_b | g_f g_b | o_f o_b]  (width 8H)
    #   wih_f / wih_b: (D, 8H)  each direction's W_ih^T embedded in its own columns
    #   whh          : (2H, 8H) block-diagonal (fwd rows -> fwd cols, bwd rows -> bwd cols)
    #   bias         : (1, 8H)  b_ih + b_hh per direction in its own columns
    lstm = []
    for layer in range(num_layers):
        D = input_size if layer == 0 else 2 * H
        wih_emb = []
        whh_comb = jnp.zeros((2, H, 4, 2, H), jnp.float32)    # (dir_row, h_row, gate, dir_col, h_col)
        bias_comb = jnp.zeros((4, 2, H), jnp.float32)         # (gate, dir, h)
        for d in range(2):  # 0 = forward, 1 = backward
            wih = uni(next(keys), (G, D), H)
            whh = uni(next(keys), (G, H), H)
            bih = uni(next(keys), (G,), H)
            bhh = uni(next(keys), (G,), H)
            emb = jnp.zeros((D, 4, 2, H), jnp.float32)
            emb = emb.at[:, :, d, :].set(wih.T.reshape(D, 4, H))
            wih_emb.append(emb.reshape(D, G2))
            whh_comb = whh_comb.at[d, :, :, d, :].set(whh.T.reshape(H, 4, H))
            bias_comb = bias_comb.at[:, d, :].set((bih + bhh).reshape(4, H))
        lstm.append({
            "wih_f": wih_emb[0],                 # (D, 8H)
            "wih_b": wih_emb[1],                 # (D, 8H)
            "whh": whh_comb.reshape(2 * H, G2),  # (2H, 8H)
            "bias": bias_comb.reshape(1, G2),    # (1, 8H)
        })
    p["lstm"] = lstm

    # linear3: (2*L*H -> H). W3^T row order already matches h_flat = [l0_f, l0_b, l1_f, ...].
    F_in = num_layers * 2 * H
    w3 = uni(next(keys), (H, F_in), F_in)
    p["w3t"] = w3.T                                            # (2*L*H, H)
    p["b3"] = uni(next(keys), (H,), F_in).reshape(1, H)
    # linear4: (H -> 1)
    w4 = uni(next(keys), (1, H), H)
    p["w4t"] = w4.T                                            # (H, 1)
    p["b4"] = uni(next(keys), (1,), H).reshape(1, 1)
    return p


# ----------------------------- forward pass -----------------------------

def bilstm_forward(params, x):
    # x: (B, T, input_size), batch_first like the PyTorch module. h0 = c0 = 0.
    B, T, Din = x.shape
    L = len(params["lstm"])                        # static (Python list length)
    H2 = params["lstm"][0]["whh"].shape[0]         # 2*hidden_size (static)
    G2 = params["lstm"][0]["whh"].shape[1]         # 8*hidden_size (static)

    # Time-major flatten once in XLA: (B, T, D) -> (T*B, D).
    x_tm = x.transpose(1, 0, 2).reshape(T * B, Din)

    # Fused linear1 -> linear2 (single matmul; gridless, whole arrays in VMEM).
    feat = pl.pallas_call(
        _preproc_kernel,
        out_shape=jax.ShapeDtypeStruct((T * B, Din), jnp.float32),
    )(x_tm, params["w12t"], params["b12"])

    layer_in = feat                                # (T*B, D) time-major flat
    hns = []
    for layer in range(L):
        lp = params["lstm"][layer]
        out, hn = pl.pallas_call(
            _bilstm_layer_kernel,
            out_shape=(
                jax.ShapeDtypeStruct((T, B, H2), jnp.float32),  # layer output
                jax.ShapeDtypeStruct((B, H2), jnp.float32),     # h_n [fwd | bwd]
            ),
            scratch_shapes=[
                pltpu.VMEM((T, B, G2), jnp.float32),  # hoisted fwd input projection
                pltpu.VMEM((T, B, G2), jnp.float32),  # hoisted bwd input projection
            ],
        )(layer_in, lp["wih_f"], lp["wih_b"], lp["whh"], lp["bias"])
        hns.append(hn)
        # (T, B, 2H) -> (T*B, 2H) is a metadata-only reshape in HBM (row-major).
        layer_in = out.reshape(T * B, H2)

    # Head: relu(linear3(h_n flattened in PyTorch (layer, direction) order)) -> linear4.
    out = pl.pallas_call(
        _head_kernel,
        out_shape=jax.ShapeDtypeStruct((B, 1), jnp.float32),
    )(*hns, params["w3t"], params["b3"], params["w4t"], params["b4"])
    return out  # (B, 1)


# ----------------------------- main -----------------------------

if __name__ == "__main__":
    input_size = 16
    hidden_size = 32
    num_layers = 2
    batch = 2
    seq = 8

    key = jax.random.PRNGKey(0)
    k_param, k_x = jax.random.split(key)
    params = init_params(k_param, input_size, hidden_size, num_layers)
    x = jax.random.normal(k_x, (batch, seq, input_size), dtype=jnp.float32)

    fwd = jax.jit(bilstm_forward)
    out = jax.block_until_ready(fwd(params, x))
    assert out.shape == (batch, 1), out.shape
    print("KERNEL_OK")
</pallas_src>

<mosaic_0001>
module attributes {stable_mosaic.version = 11 : i64} {
  func.func @_preproc_kernel(%arg0: memref<16x16xf32, #tpu.memory_space<vmem>>, %arg1: memref<16x16xf32, #tpu.memory_space<vmem>>, %arg2: memref<1x16xf32, #tpu.memory_space<vmem>>, %arg3: memref<16x16xf32, #tpu.memory_space<vmem>>) attributes {dimension_semantics = [], scalar_prefetch = 0 : i64, scratch_operands = 0 : i64, tpu.core_type = #tpu.core_type<tc>} {
    %c0 = arith.constant 0 : index
    %c0_0 = arith.constant 0 : index
    %0 = vector.load %arg0[%c0, %c0_0] : memref<16x16xf32, #tpu.memory_space<vmem>>, vector<16x16xf32>
    %c0_1 = arith.constant 0 : index
    %c0_2 = arith.constant 0 : index
    %1 = vector.load %arg1[%c0_1, %c0_2] : memref<16x16xf32, #tpu.memory_space<vmem>>, vector<16x16xf32>
    %cst = arith.constant dense<0.000000e+00> : vector<16x16xf32>
    %2 = tpu.matmul %0, %1, %cst {dimension_numbers = #tpu.dot_dimension_numbers<[1], [0], [0], [1], [0, 0, 1, 1], [], []>} : vector<16x16xf32>, vector<16x16xf32>, vector<16x16xf32> -> vector<16x16xf32>
    %c0_3 = arith.constant 0 : index
    %c0_4 = arith.constant 0 : index
    %3 = vector.load %arg2[%c0_3, %c0_4] : memref<1x16xf32, #tpu.memory_space<vmem>>, vector<1x16xf32>
    %4 = vector.broadcast %3 : vector<1x16xf32> to vector<16x16xf32>
    %5 = arith.addf %2, %4 : vector<16x16xf32>
    %c0_5 = arith.constant 0 : index
    %c0_6 = arith.constant 0 : index
    %6 = vector.load %arg3[%c0_5, %c0_6] : memref<16x16xf32, #tpu.memory_space<vmem>>, vector<16x16xf32>
    tpu.vector_store %arg3[%c0_5, %c0_6], %5 {strides = array<i32>} : memref<16x16xf32, #tpu.memory_space<vmem>>, vector<16x16xf32>,
    return
  }
}

module attributes {stable_mosaic.version = 11 : i64} {
  func.func @_bilstm_layer_kernel(%arg0: memref<16x64xf32, #tpu.memory_space<vmem>>, %arg1: memref<64x256xf32, #tpu.memory_space<vmem>>, %arg2: memref<64x256xf32, #tpu.memory_space<vmem>>, %arg3: memref<64x256xf32, #tpu.memory_space<vmem>>, %arg4: memref<1x256xf32, #tpu.memory_space<vmem>>, %arg5: memref<8x2x64xf32, #tpu.memory_space<vmem>>, %arg6: memref<2x64xf32, #tpu.memory_space<vmem>>, %arg7: memref<8x2x256xf32, #tpu.memory_space<vmem>>, %arg8: memref<8x2x256xf32, #tpu.memory_space<vmem>>) attributes {dimension_semantics = [], scalar_prefetch = 0 : i64, scratch_operands = 2 : i64, tpu.core_type = #tpu.core_type<tc>} {
    %c0 = arith.constant 0 : index
    %c0_0 = arith.constant 0 : index
    %0 = vector.load %arg0[%c0, %c0_0] : memref<16x64xf32, #tpu.memory_space<vmem>>, vector<16x64xf32>
    %c0_1 = arith.constant 0 : index
    %c0_2 = arith.constant 0 : index
    %1 = vector.load %arg1[%c0_1, %c0_2] : memref<64x256xf32, #tpu.memory_space<vmem>>, vector<64x256xf32>
    %cst = arith.constant dense<0.000000e+00> : vector<16x256xf32>
    %2 = tpu.matmul %0, %1, %cst {dimension_numbers = #tpu.dot_dimension_numbers<[1], [0], [0], [1], [0, 0, 1, 1], [], []>} : vector<16x64xf32>, vector<64x256xf32>, vector<16x256xf32> -> vector<16x256xf32>
    %c0_3 = arith.constant 0 : index
    %c0_4 = arith.constant 0 : index
    %3 = vector.load %arg4[%c0_3, %c0_4] : memref<1x256xf32, #tpu.memory_space<vmem>>, vector<1x256xf32>
    %4 = vector.broadcast %3 : vector<1x256xf32> to vector<16x256xf32>
    %5 = arith.addf %2, %4 : vector<16x256xf32>
    %c0_5 = arith.constant 0 : index
    %c0_6 = arith.constant 0 : index
    %6 = vector.load %arg2[%c0_5, %c0_6] : memref<64x256xf32, #tpu.memory_space<vmem>>, vector<64x256xf32>
    %cst_7 = arith.constant dense<0.000000e+00> : vector<16x256xf32>
    %7 = tpu.matmul %0, %6, %cst_7 {dimension_numbers = #tpu.dot_dimension_numbers<[1], [0], [0], [1], [0, 0, 1, 1], [], []>} : vector<16x64xf32>, vector<64x256xf32>, vector<16x256xf32> -> vector<16x256xf32>
    %8 = vector.extract_strided_slice %5 {offsets = [0, 0], sizes = [2, 256], strides = [1, 1]} : vector<16x256xf32> to vector<2x256xf32>
    %c0_8 = arith.constant 0 : index
    %c0_9 = arith.constant 0 : index
    %c0_10 = arith.constant 0 : index
    %9 = vector.load %arg7[%c0_8, %c0_9, %c0_10] : memref<8x2x256xf32, #tpu.memory_space<vmem>>, vector<1x2x256xf32>
    %10 = vector.shape_cast %9 : vector<1x2x256xf32> to vector<2x256xf32>
    %11 = vector.shape_cast %8 : vector<2x256xf32> to vector<1x2x256xf32>
    tpu.vector_store %arg7[%c0_8, %c0_9, %c0_10], %11 {strides = array<i32>} : memref<8x2x256xf32, #tpu.memory_space<vmem>>, vector<1x2x256xf32>,
    %12 = vector.extract_strided_slice %7 {offsets = [0, 0], sizes = [2, 256], strides = [1, 1]} : vector<16x256xf32> to vector<2x256xf32>
    %c0_11 = arith.constant 0 : index
    %c0_12 = arith.constant 0 : index
    %c0_13 = arith.constant 0 : index
    %13 = vector.load %arg8[%c0_11, %c0_12, %c0_13] : memref<8x2x256xf32, #tpu.memory_space<vmem>>, vector<1x2x256xf32>
    %14 = vector.shape_cast %13 : vector<1x2x256xf32> to vector<2x256xf32>
    %15 = vector.shape_cast %12 : vector<2x256xf32> to vector<1x2x256xf32>
    tpu.vector_store %arg8[%c0_11, %c0_12, %c0_13], %15 {strides = array<i32>} : memref<8x2x256xf32, #tpu.memory_space<vmem>>, vector<1x2x256xf32>,
    %16 = vector.extract_strided_slice %5 {offsets = [2, 0], sizes = [2, 256], strides = [1, 1]} : vector<16x256xf32> to vector<2x256xf32>
    %c1 = arith.constant 1 : index
    %c0_14 = arith.constant 0 : index
    %c0_15 = arith.constant 0 : index
    %17 = vector.load %arg7[%c1, %c0_14, %c0_15] : memref<8x2x256xf32, #tpu.memory_space<vmem>>, vector<1x2x256xf32>
    %18 = vector.shape_cast %17 : vector<1x2x256xf32> to vector<2x256xf32>
    %19 = vector.shape_cast %16 : vector<2x256xf32> to vector<1x2x256xf32>
    tpu.vector_store %arg7[%c1, %c0_14, %c0_15], %19 {strides = array<i32>} : memref<8x2x256xf32, #tpu.memory_space<vmem>>, vector<1x2x256xf32>,
    %20 = vector.extract_strided_slice %7 {offsets = [2, 0], sizes = [2, 256], strides = [1, 1]} : vector<16x256xf32> to vector<2x256xf32>
    %c1_16 = arith.constant 1 : index
    %c0_17 = arith.constant 0 : index
    %c0_18 = arith.constant 0 : index
    %21 = vector.load %arg8[%c1_16, %c0_17, %c0_18] : memref<8x2x256xf32, #tpu.memory_space<vmem>>, vector<1x2x256xf32>
    %22 = vector.shape_cast %21 : vector<1x2x256xf32> to vector<2x256xf32>
    %23 = vector.shape_cast %20 : vector<2x256xf32> to vector<1x2x256xf32>
    tpu.vector_store %arg8[%c1_16, %c0_17, %c0_18], %23 {strides = array<i32>} : memref<8x2x256xf32, #tpu.memory_space<vmem>>, vector<1x2x256xf32>,
    %24 = vector.extract_strided_slice %5 {offsets = [4, 0], sizes = [2, 256], strides = [1, 1]} : vector<16x256xf32> to vector<2x256xf32>
    %c2 = arith.constant 2 : index
    %c0_19 = arith.constant 0 : index
    %c0_20 = arith.constant 0 : index
    %25 = vector.load %arg7[%c2, %c0_19, %c0_20] : memref<8x2x256xf32, #tpu.memory_space<vmem>>, vector<1x2x256xf32>
    %26 = vector.shape_cast %25 : vector<1x2x256xf32> to vector<2x256xf32>
    %27 = vector.shape_cast %24 : vector<2x256xf32> to vector<1x2x256xf32>
    tpu.vector_store %arg7[%c2, %c0_19, %c0_20], %27 {strides = array<i32>} : memref<8x2x256xf32, #tpu.memory_space<vmem>>, vector<1x2x256xf32>,
    %28 = vector.extract_strided_slice %7 {offsets = [4, 0], sizes = [2, 256], strides = [1, 1]} : vector<16x256xf32> to vector<2x256xf32>
    %c2_21 = arith.constant 2 : index
    %c0_22 = arith.constant 0 : index
    %c0_23 = arith.constant 0 : index
    %29 = vector.load %arg8[%c2_21, %c0_22, %c0_23] : memref<8x2x256xf32, #tpu.memory_space<vmem>>, vector<1x2x256xf32>
    %30 = vector.shape_cast %29 : vector<1x2x256xf32> to vector<2x256xf32>
    %31 = vector.shape_cast %28 : vector<2x256xf32> to vector<1x2x256xf32>
    tpu.vector_store %arg8[%c2_21, %c0_22, %c0_23], %31 {strides = array<i32>} : memref<8x2x256xf32, #tpu.memory_space<vmem>>, vector<1x2x256xf32>,
    %32 = vector.extract_strided_slice %5 {offsets = [6, 0], sizes = [2, 256], strides = [1, 1]} : vector<16x256xf32> to vector<2x256xf32>
    %c3 = arith.constant 3 : index
    %c0_24 = arith.constant 0 : index
    %c0_25 = arith.constant 0 : index
    %33 = vector.load %arg7[%c3, %c0_24, %c0_25] : memref<8x2x256xf32, #tpu.memory_space<vmem>>, vector<1x2x256xf32>
    %34 = vector.shape_cast %33 : vector<1x2x256xf32> to vector<2x256xf32>
    %35 = vector.shape_cast %32 : vector<2x256xf32> to vector<1x2x256xf32>
    tpu.vector_store %arg7[%c3, %c0_24, %c0_25], %35 {strides = array<i32>} : memref<8x2x256xf32, #tpu.memory_space<vmem>>, vector<1x2x256xf32>,
    %36 = vector.extract_strided_slice %7 {offsets = [6, 0], sizes = [2, 256], strides = [1, 1]} : vector<16x256xf32> to vector<2x256xf32>
    %c3_26 = arith.constant 3 : index
    %c0_27 = arith.constant 0 : index
    %c0_28 = arith.constant 0 : index
    %37 = vector.load %arg8[%c3_26, %c0_27, %c0_28] : memref<8x2x256xf32, #tpu.memory_space<vmem>>, vector<1x2x256xf32>
    %38 = vector.shape_cast %37 : vector<1x2x256xf32> to vector<2x256xf32>
    %39 = vector.shape_cast %36 : vector<2x256xf32> to vector<1x2x256xf32>
    tpu.vector_store %arg8[%c3_26, %c0_27, %c0_28], %39 {strides = array<i32>} : memref<8x2x256xf32, #tpu.memory_space<vmem>>, vector<1x2x256xf32>,
    %40 = vector.extract_strided_slice %5 {offsets = [8, 0], sizes = [2, 256], strides = [1, 1]} : vector<16x256xf32> to vector<2x256xf32>
    %c4 = arith.constant 4 : index
    %c0_29 = arith.constant 0 : index
    %c0_30 = arith.constant 0 : index
    %41 = vector.load %arg7[%c4, %c0_29, %c0_30] : memref<8x2x256xf32, #tpu.memory_space<vmem>>, vector<1x2x256xf32>
    %42 = vector.shape_cast %41 : vector<1x2x256xf32> to vector<2x256xf32>
    %43 = vector.shape_cast %40 : vector<2x256xf32> to vector<1x2x256xf32>
    tpu.vector_store %arg7[%c4, %c0_29, %c0_30], %43 {strides = array<i32>} : memref<8x2x256xf32, #tpu.memory_space<vmem>>, vector<1x2x256xf32>,
    %44 = vector.extract_strided_slice %7 {offsets = [8, 0], sizes = [2, 256], strides = [1, 1]} : vector<16x256xf32> to vector<2x256xf32>
    %c4_31 = arith.constant 4 : index
    %c0_32 = arith.constant 0 : index
    %c0_33 = arith.constant 0 : index
    %45 = vector.load %arg8[%c4_31, %c0_32, %c0_33] : memref<8x2x256xf32, #tpu.memory_space<vmem>>, vector<1x2x256xf32>
    %46 = vector.shape_cast %45 : vector<1x2x256xf32> to vector<2x256xf32>
    %47 = vector.shape_cast %44 : vector<2x256xf32> to vector<1x2x256xf32>
    tpu.vector_store %arg8[%c4_31, %c0_32, %c0_33], %47 {strides = array<i32>} : memref<8x2x256xf32, #tpu.memory_space<vmem>>, vector<1x2x256xf32>,
    %48 = vector.extract_strided_slice %5 {offsets = [10, 0], sizes = [2, 256], strides = [1, 1]} : vector<16x256xf32> to vector<2x256xf32>
    %c5 = arith.constant 5 : index
    %c0_34 = arith.constant 0 : index
    %c0_35 = arith.constant 0 : index
    %49 = vector.load %arg7[%c5, %c0_34, %c0_35] : memref<8x2x256xf32, #tpu.memory_space<vmem>>, vector<1x2x256xf32>
    %50 = vector.shape_cast %49 : vector<1x2x256xf32> to vector<2x256xf32>
    %51 = vector.shape_cast %48 : vector<2x256xf32> to vector<1x2x256xf32>
    tpu.vector_store %arg7[%c5, %c0_34, %c0_35], %51 {strides = array<i32>} : memref<8x2x256xf32, #tpu.memory_space<vmem>>, vector<1x2x256xf32>,
    %52 = vector.extract_strided_slice %7 {offsets = [10, 0], sizes = [2, 256], strides = [1, 1]} : vector<16x256xf32> to vector<2x256xf32>
    %c5_36 = arith.constant 5 : index
    %c0_37 = arith.constant 0 : index
    %c0_38 = arith.constant 0 : index
    %53 = vector.load %arg8[%c5_36, %c0_37, %c0_38] : memref<8x2x256xf32, #tpu.memory_space<vmem>>, vector<1x2x256xf32>
    %54 = vector.shape_cast %53 : vector<1x2x256xf32> to vector<2x256xf32>
    %55 = vector.shape_cast %52 : vector<2x256xf32> to vector<1x2x256xf32>
    tpu.vector_store %arg8[%c5_36, %c0_37, %c0_38], %55 {strides = array<i32>} : memref<8x2x256xf32, #tpu.memory_space<vmem>>, vector<1x2x256xf32>,
    %56 = vector.extract_strided_slice %5 {offsets = [12, 0], sizes = [2, 256], strides = [1, 1]} : vector<16x256xf32> to vector<2x256xf32>
    %c6 = arith.constant 6 : index
    %c0_39 = arith.constant 0 : index
    %c0_40 = arith.constant 0 : index
    %57 = vector.load %arg7[%c6, %c0_39, %c0_40] : memref<8x2x256xf32, #tpu.memory_space<vmem>>, vector<1x2x256xf32>
    %58 = vector.shape_cast %57 : vector<1x2x256xf32> to vector<2x256xf32>
    %59 = vector.shape_cast %56 : vector<2x256xf32> to vector<1x2x256xf32>
    tpu.vector_store %arg7[%c6, %c0_39, %c0_40], %59 {strides = array<i32>} : memref<8x2x256xf32, #tpu.memory_space<vmem>>, vector<1x2x256xf32>,
    %60 = vector.extract_strided_slice %7 {offsets = [12, 0], sizes = [2, 256], strides = [1, 1]} : vector<16x256xf32> to vector<2x256xf32>
    %c6_41 = arith.constant 6 : index
    %c0_42 = arith.constant 0 : index
    %c0_43 = arith.constant 0 : index
    %61 = vector.load %arg8[%c6_41, %c0_42, %c0_43] : memref<8x2x256xf32, #tpu.memory_space<vmem>>, vector<1x2x256xf32>
    %62 = vector.shape_cast %61 : vector<1x2x256xf32> to vector<2x256xf32>
    %63 = vector.shape_cast %60 : vector<2x256xf32> to vector<1x2x256xf32>
    tpu.vector_store %arg8[%c6_41, %c0_42, %c0_43], %63 {strides = array<i32>} : memref<8x2x256xf32, #tpu.memory_space<vmem>>, vector<1x2x256xf32>,
    %64 = vector.extract_strided_slice %5 {offsets = [14, 0], sizes = [2, 256], strides = [1, 1]} : vector<16x256xf32> to vector<2x256xf32>
    %c7 = arith.constant 7 : index
    %c0_44 = arith.constant 0 : index
    %c0_45 = arith.constant 0 : index
    %65 = vector.load %arg7[%c7, %c0_44, %c0_45] : memref<8x2x256xf32, #tpu.memory_space<vmem>>, vector<1x2x256xf32>
    %66 = vector.shape_cast %65 : vector<1x2x256xf32> to vector<2x256xf32>
    %67 = vector.shape_cast %64 : vector<2x256xf32> to vector<1x2x256xf32>
    tpu.vector_store %arg7[%c7, %c0_44, %c0_45], %67 {strides = array<i32>} : memref<8x2x256xf32, #tpu.memory_space<vmem>>, vector<1x2x256xf32>,
    %68 = vector.extract_strided_slice %7 {offsets = [14, 0], sizes = [2, 256], strides = [1, 1]} : vector<16x256xf32> to vector<2x256xf32>
    %c7_46 = arith.constant 7 : index
    %c0_47 = arith.constant 0 : index
    %c0_48 = arith.constant 0 : index
    %69 = vector.load %arg8[%c7_46, %c0_47, %c0_48] : memref<8x2x256xf32, #tpu.memory_space<vmem>>, vector<1x2x256xf32>
    %70 = vector.shape_cast %69 : vector<1x2x256xf32> to vector<2x256xf32>
    %71 = vector.shape_cast %68 : vector<2x256xf32> to vector<1x2x256xf32>
    tpu.vector_store %arg8[%c7_46, %c0_47, %c0_48], %71 {strides = array<i32>} : memref<8x2x256xf32, #tpu.memory_space<vmem>>, vector<1x2x256xf32>,
    %c0_49 = arith.constant 0 : index
    %c0_50 = arith.constant 0 : index
    %72 = vector.load %arg3[%c0_49, %c0_50] : memref<64x256xf32, #tpu.memory_space<vmem>>, vector<64x256xf32>
    %cst_51 = arith.constant 0.000000e+00 : f32
    %73 = vector.broadcast %cst_51 : f32 to vector<2x64xf32>
    %cst_52 = arith.constant 0.000000e+00 : f32
    %74 = vector.broadcast %cst_52 : f32 to vector<2x64xf32>
    %c0_53 = arith.constant 0 : index
    %c0_54 = arith.constant 0 : index
    %c0_55 = arith.constant 0 : index
    %75 = vector.load %arg7[%c0_53, %c0_54, %c0_55] : memref<8x2x256xf32, #tpu.memory_space<vmem>>, vector<1x2x256xf32>
    %76 = vector.shape_cast %75 : vector<1x2x256xf32> to vector<2x256xf32>
    %c7_56 = arith.constant 7 : index
    %c0_57 = arith.constant 0 : index
    %c0_58 = arith.constant 0 : index
    %77 = vector.load %arg8[%c7_56, %c0_57, %c0_58] : memref<8x2x256xf32, #tpu.memory_space<vmem>>, vector<1x2x256xf32>
    %78 = vector.shape_cast %77 : vector<1x2x256xf32> to vector<2x256xf32>
    %79 = arith.addf %76, %78 : vector<2x256xf32>
    %cst_59 = arith.constant dense<0.000000e+00> : vector<2x256xf32>
    %80 = tpu.matmul %73, %72, %cst_59 {dimension_numbers = #tpu.dot_dimension_numbers<[1], [0], [0], [1], [0, 0, 1, 1], [], []>} : vector<2x64xf32>, vector<64x256xf32>, vector<2x256xf32> -> vector<2x256xf32>
    %81 = arith.addf %79, %80 : vector<2x256xf32>
    %82 = vector.extract_strided_slice %81 {offsets = [0, 0], sizes = [2, 64], strides = [1, 1]} : vector<2x256xf32> to vector<2x64xf32>
    %83 = arith.negf %82 : vector<2x64xf32>
    %84 = math.exp %83 : vector<2x64xf32>
    %cst_60 = arith.constant 1.000000e+00 : f32
    %85 = vector.broadcast %cst_60 : f32 to vector<2x64xf32>
    %86 = arith.addf %85, %84 : vector<2x64xf32>
    %87 = arith.divf %85, %86 : vector<2x64xf32>
    %88 = vector.extract_strided_slice %81 {offsets = [0, 64], sizes = [2, 64], strides = [1, 1]} : vector<2x256xf32> to vector<2x64xf32>
    %89 = arith.negf %88 : vector<2x64xf32>
    %90 = math.exp %89 : vector<2x64xf32>
    %cst_61 = arith.constant 1.000000e+00 : f32
    %91 = vector.broadcast %cst_61 : f32 to vector<2x64xf32>
    %92 = arith.addf %91, %90 : vector<2x64xf32>
    %93 = arith.divf %91, %92 : vector<2x64xf32>
    %94 = vector.extract_strided_slice %81 {offsets = [0, 128], sizes = [2, 64], strides = [1, 1]} : vector<2x256xf32> to vector<2x64xf32>
    %95 = math.tanh %94 : vector<2x64xf32>
    %96 = vector.extract_strided_slice %81 {offsets = [0, 192], sizes = [2, 64], strides = [1, 1]} : vector<2x256xf32> to vector<2x64xf32>
    %97 = arith.negf %96 : vector<2x64xf32>
    %98 = math.exp %97 : vector<2x64xf32>
    %cst_62 = arith.constant 1.000000e+00 : f32
    %99 = vector.broadcast %cst_62 : f32 to vector<2x64xf32>
    %100 = arith.addf %99, %98 : vector<2x64xf32>
    %101 = arith.divf %99, %100 : vector<2x64xf32>
    %102 = arith.mulf %93, %74 : vector<2x64xf32>
    %103 = arith.mulf %87, %95 : vector<2x64xf32>
    %104 = arith.addf %102, %103 : vector<2x64xf32>
    %105 = math.tanh %104 : vector<2x64xf32>
    %106 = arith.mulf %101, %105 : vector<2x64xf32>
    %c1_63 = arith.constant 1 : index
    %c0_64 = arith.constant 0 : index
    %c0_65 = arith.constant 0 : index
    %107 = vector.load %arg7[%c1_63, %c0_64, %c0_65] : memref<8x2x256xf32, #tpu.memory_space<vmem>>, vector<1x2x256xf32>
    %108 = vector.shape_cast %107 : vector<1x2x256xf32> to vector<2x256xf32>
    %c6_66 = arith.constant 6 : index
    %c0_67 = arith.constant 0 : index
    %c0_68 = arith.constant 0 : index
    %109 = vector.load %arg8[%c6_66, %c0_67, %c0_68] : memref<8x2x256xf32, #tpu.memory_space<vmem>>, vector<1x2x256xf32>
    %110 = vector.shape_cast %109 : vector<1x2x256xf32> to vector<2x256xf32>
    %111 = arith.addf %108, %110 : vector<2x256xf32>
    %cst_69 = arith.constant dense<0.000000e+00> : vector<2x256xf32>
    %112 = tpu.matmul %106, %72, %cst_69 {dimension_numbers = #tpu.dot_dimension_numbers<[1], [0], [0], [1], [0, 0, 1, 1], [], []>} : vector<2x64xf32>, vector<64x256xf32>, vector<2x256xf32> -> vector<2x256xf32>
    %113 = arith.addf %111, %112 : vector<2x256xf32>
    %114 = vector.extract_strided_slice %113 {offsets = [0, 0], sizes = [2, 64], strides = [1, 1]} : vector<2x256xf32> to vector<2x64xf32>
    %115 = arith.negf %114 : vector<2x64xf32>
    %116 = math.exp %115 : vector<2x64xf32>
    %cst_70 = arith.constant 1.000000e+00 : f32
    %117 = vector.broadcast %cst_70 : f32 to vector<2x64xf32>
    %118 = arith.addf %117, %116 : vector<2x64xf32>
    %119 = arith.divf %117, %118 : vector<2x64xf32>
    %120 = vector.extract_strided_slice %113 {offsets = [0, 64], sizes = [2, 64], strides = [1, 1]} : vector<2x256xf32> to vector<2x64xf32>
    %121 = arith.negf %120 : vector<2x64xf32>
    %122 = math.exp %121 : vector<2x64xf32>
    %cst_71 = arith.constant 1.000000e+00 : f32
    %123 = vector.broadcast %cst_71 : f32 to vector<2x64xf32>
    %124 = arith.addf %123, %122 : vector<2x64xf32>
    %125 = arith.divf %123, %124 : vector<2x64xf32>
    %126 = vector.extract_strided_slice %113 {offsets = [0, 128], sizes = [2, 64], strides = [1, 1]} : vector<2x256xf32> to vector<2x64xf32>
    %127 = math.tanh %126 : vector<2x64xf32>
    %128 = vector.extract_strided_slice %113 {offsets = [0, 192], sizes = [2, 64], strides = [1, 1]} : vector<2x256xf32> to vector<2x64xf32>
    %129 = arith.negf %128 : vector<2x64xf32>
    %130 = math.exp %129 : vector<2x64xf32>
    %cst_72 = arith.constant 1.000000e+00 : f32
    %131 = vector.broadcast %cst_72 : f32 to vector<2x64xf32>
    %132 = arith.addf %131, %130 : vector<2x64xf32>
    %133 = arith.divf %131, %132 : vector<2x64xf32>
    %134 = arith.mulf %125, %104 : vector<2x64xf32>
    %135 = arith.mulf %119, %127 : vector<2x64xf32>
    %136 = arith.addf %134, %135 : vector<2x64xf32>
    %137 = math.tanh %136 : vector<2x64xf32>
    %138 = arith.mulf %133, %137 : vector<2x64xf32>
    %c2_73 = arith.constant 2 : index
    %c0_74 = arith.constant 0 : index
    %c0_75 = arith.constant 0 : index
    %139 = vector.load %arg7[%c2_73, %c0_74, %c0_75] : memref<8x2x256xf32, #tpu.memory_space<vmem>>, vector<1x2x256xf32>
    %140 = vector.shape_cast %139 : vector<1x2x256xf32> to vector<2x256xf32>
    %c5_76 = arith.constant 5 : index
    %c0_77 = arith.constant 0 : index
    %c0_78 = arith.constant 0 : index
    %141 = vector.load %arg8[%c5_76, %c0_77, %c0_78] : memref<8x2x256xf32, #tpu.memory_space<vmem>>, vector<1x2x256xf32>
    %142 = vector.shape_cast %141 : vector<1x2x256xf32> to vector<2x256xf32>
    %143 = arith.addf %140, %142 : vector<2x256xf32>
    %cst_79 = arith.constant dense<0.000000e+00> : vector<2x256xf32>
    %144 = tpu.matmul %138, %72, %cst_79 {dimension_numbers = #tpu.dot_dimension_numbers<[1], [0], [0], [1], [0, 0, 1, 1], [], []>} : vector<2x64xf32>, vector<64x256xf32>, vector<2x256xf32> -> vector<2x256xf32>
    %145 = arith.addf %143, %144 : vector<2x256xf32>
    %146 = vector.extract_strided_slice %145 {offsets = [0, 0], sizes = [2, 64], strides = [1, 1]} : vector<2x256xf32> to vector<2x64xf32>
    %147 = arith.negf %146 : vector<2x64xf32>
    %148 = math.exp %147 : vector<2x64xf32>
    %cst_80 = arith.constant 1.000000e+00 : f32
    %149 = vector.broadcast %cst_80 : f32 to vector<2x64xf32>
    %150 = arith.addf %149, %148 : vector<2x64xf32>
    %151 = arith.divf %149, %150 : vector<2x64xf32>
    %152 = vector.extract_strided_slice %145 {offsets = [0, 64], sizes = [2, 64], strides = [1, 1]} : vector<2x256xf32> to vector<2x64xf32>
    %153 = arith.negf %152 : vector<2x64xf32>
    %154 = math.exp %153 : vector<2x64xf32>
    %cst_81 = arith.constant 1.000000e+00 : f32
    %155 = vector.broadcast %cst_81 : f32 to vector<2x64xf32>
    %156 = arith.addf %155, %154 : vector<2x64xf32>
    %157 = arith.divf %155, %156 : vector<2x64xf32>
    %158 = vector.extract_strided_slice %145 {offsets = [0, 128], sizes = [2, 64], strides = [1, 1]} : vector<2x256xf32> to vector<2x64xf32>
    %159 = math.tanh %158 : vector<2x64xf32>
    %160 = vector.extract_strided_slice %145 {offsets = [0, 192], sizes = [2, 64], strides = [1, 1]} : vector<2x256xf32> to vector<2x64xf32>
    %161 = arith.negf %160 : vector<2x64xf32>
    %162 = math.exp %161 : vector<2x64xf32>
    %cst_82 = arith.constant 1.000000e+00 : f32
    %163 = vector.broadcast %cst_82 : f32 to vector<2x64xf32>
    %164 = arith.addf %163, %162 : vector<2x64xf32>
    %165 = arith.divf %163, %164 : vector<2x64xf32>
    %166 = arith.mulf %157, %136 : vector<2x64xf32>
    %167 = arith.mulf %151, %159 : vector<2x64xf32>
    %168 = arith.addf %166, %167 : vector<2x64xf32>
    %169 = math.tanh %168 : vector<2x64xf32>
    %170 = arith.mulf %165, %169 : vector<2x64xf32>
    %c3_83 = arith.constant 3 : index
    %c0_84 = arith.constant 0 : index
    %c0_85 = arith.constant 0 : index
    %171 = vector.load %arg7[%c3_83, %c0_84, %c0_85] : memref<8x2x256xf32, #tpu.memory_space<vmem>>, vector<1x2x256xf32>
    %172 = vector.shape_cast %171 : vector<1x2x256xf32> to vector<2x256xf32>
    %c4_86 = arith.constant 4 : index
    %c0_87 = arith.constant 0 : index
    %c0_88 = arith.constant 0 : index
    %173 = vector.load %arg8[%c4_86, %c0_87, %c0_88] : memref<8x2x256xf32, #tpu.memory_space<vmem>>, vector<1x2x256xf32>
    %174 = vector.shape_cast %173 : vector<1x2x256xf32> to vector<2x256xf32>
    %175 = arith.addf %172, %174 : vector<2x256xf32>
    %cst_89 = arith.constant dense<0.000000e+00> : vector<2x256xf32>
    %176 = tpu.matmul %170, %72, %cst_89 {dimension_numbers = #tpu.dot_dimension_numbers<[1], [0], [0], [1], [0, 0, 1, 1], [], []>} : vector<2x64xf32>, vector<64x256xf32>, vector<2x256xf32> -> vector<2x256xf32>
    %177 = arith.addf %175, %176 : vector<2x256xf32>
    %178 = vector.extract_strided_slice %177 {offsets = [0, 0], sizes = [2, 64], strides = [1, 1]} : vector<2x256xf32> to vector<2x64xf32>
    %179 = arith.negf %178 : vector<2x64xf32>
    %180 = math.exp %179 : vector<2x64xf32>
    %cst_90 = arith.constant 1.000000e+00 : f32
    %181 = vector.broadcast %cst_90 : f32 to vector<2x64xf32>
    %182 = arith.addf %181, %180 : vector<2x64xf32>
    %183 = arith.divf %181, %182 : vector<2x64xf32>
    %184 = vector.extract_strided_slice %177 {offsets = [0, 64], sizes = [2, 64], strides = [1, 1]} : vector<2x256xf32> to vector<2x64xf32>
    %185 = arith.negf %184 : vector<2x64xf32>
    %186 = math.exp %185 : vector<2x64xf32>
    %cst_91 = arith.constant 1.000000e+00 : f32
    %187 = vector.broadcast %cst_91 : f32 to vector<2x64xf32>
    %188 = arith.addf %187, %186 : vector<2x64xf32>
    %189 = arith.divf %187, %188 : vector<2x64xf32>
    %190 = vector.extract_strided_slice %177 {offsets = [0, 128], sizes = [2, 64], strides = [1, 1]} : vector<2x256xf32> to vector<2x64xf32>
    %191 = math.tanh %190 : vector<2x64xf32>
    %192 = vector.extract_strided_slice %177 {offsets = [0, 192], sizes = [2, 64], strides = [1, 1]} : vector<2x256xf32> to vector<2x64xf32>
    %193 = arith.negf %192 : vector<2x64xf32>
    %194 = math.exp %193 : vector<2x64xf32>
    %cst_92 = arith.constant 1.000000e+00 : f32
    %195 = vector.broadcast %cst_92 : f32 to vector<2x64xf32>
    %196 = arith.addf %195, %194 : vector<2x64xf32>
    %197 = arith.divf %195, %196 : vector<2x64xf32>
    %198 = arith.mulf %189, %168 : vector<2x64xf32>
    %199 = arith.mulf %183, %191 : vector<2x64xf32>
    %200 = arith.addf %198, %199 : vector<2x64xf32>
    %201 = math.tanh %200 : vector<2x64xf32>
    %202 = arith.mulf %197, %201 : vector<2x64xf32>
    %c4_93 = arith.constant 4 : index
    %c0_94 = arith.constant 0 : index
    %c0_95 = arith.constant 0 : index
    %203 = vector.load %arg7[%c4_93, %c0_94, %c0_95] : memref<8x2x256xf32, #tpu.memory_space<vmem>>, vector<1x2x256xf32>
    %204 = vector.shape_cast %203 : vector<1x2x256xf32> to vector<2x256xf32>
    %c3_96 = arith.constant 3 : index
    %c0_97 = arith.constant 0 : index
    %c0_98 = arith.constant 0 : index
    %205 = vector.load %arg8[%c3_96, %c0_97, %c0_98] : memref<8x2x256xf32, #tpu.memory_space<vmem>>, vector<1x2x256xf32>
    %206 = vector.shape_cast %205 : vector<1x2x256xf32> to vector<2x256xf32>
    %207 = arith.addf %204, %206 : vector<2x256xf32>
    %cst_99 = arith.constant dense<0.000000e+00> : vector<2x256xf32>
    %208 = tpu.matmul %202, %72, %cst_99 {dimension_numbers = #tpu.dot_dimension_numbers<[1], [0], [0], [1], [0, 0, 1, 1], [], []>} : vector<2x64xf32>, vector<64x256xf32>, vector<2x256xf32> -> vector<2x256xf32>
    %209 = arith.addf %207, %208 : vector<2x256xf32>
    %210 = vector.extract_strided_slice %209 {offsets = [0, 0], sizes = [2, 64], strides = [1, 1]} : vector<2x256xf32> to vector<2x64xf32>
    %211 = arith.negf %210 : vector<2x64xf32>
    %212 = math.exp %211 : vector<2x64xf32>
    %cst_100 = arith.constant 1.000000e+00 : f32
    %213 = vector.broadcast %cst_100 : f32 to vector<2x64xf32>
    %214 = arith.addf %213, %212 : vector<2x64xf32>
    %215 = arith.divf %213, %214 : vector<2x64xf32>
    %216 = vector.extract_strided_slice %209 {offsets = [0, 64], sizes = [2, 64], strides = [1, 1]} : vector<2x256xf32> to vector<2x64xf32>
    %217 = arith.negf %216 : vector<2x64xf32>
    %218 = math.exp %217 : vector<2x64xf32>
    %cst_101 = arith.constant 1.000000e+00 : f32
    %219 = vector.broadcast %cst_101 : f32 to vector<2x64xf32>
    %220 = arith.addf %219, %218 : vector<2x64xf32>
    %221 = arith.divf %219, %220 : vector<2x64xf32>
    %222 = vector.extract_strided_slice %209 {offsets = [0, 128], sizes = [2, 64], strides = [1, 1]} : vector<2x256xf32> to vector<2x64xf32>
    %223 = math.tanh %222 : vector<2x64xf32>
    %224 = vector.extract_strided_slice %209 {offsets = [0, 192], sizes = [2, 64], strides = [1, 1]} : vector<2x256xf32> to vector<2x64xf32>
    %225 = arith.negf %224 : vector<2x64xf32>
    %226 = math.exp %225 : vector<2x64xf32>
    %cst_102 = arith.constant 1.000000e+00 : f32
    %227 = vector.broadcast %cst_102 : f32 to vector<2x64xf32>
    %228 = arith.addf %227, %226 : vector<2x64xf32>
    %229 = arith.divf %227, %228 : vector<2x64xf32>
    %230 = arith.mulf %221, %200 : vector<2x64xf32>
    %231 = arith.mulf %215, %223 : vector<2x64xf32>
    %232 = arith.addf %230, %231 : vector<2x64xf32>
    %233 = math.tanh %232 : vector<2x64xf32>
    %234 = arith.mulf %229, %233 : vector<2x64xf32>
    %c5_103 = arith.constant 5 : index
    %c0_104 = arith.constant 0 : index
    %c0_105 = arith.constant 0 : index
    %235 = vector.load %arg7[%c5_103, %c0_104, %c0_105] : memref<8x2x256xf32, #tpu.memory_space<vmem>>, vector<1x2x256xf32>
    %236 = vector.shape_cast %235 : vector<1x2x256xf32> to vector<2x256xf32>
    %c2_106 = arith.constant 2 : index
    %c0_107 = arith.constant 0 : index
    %c0_108 = arith.constant 0 : index
    %237 = vector.load %arg8[%c2_106, %c0_107, %c0_108] : memref<8x2x256xf32, #tpu.memory_space<vmem>>, vector<1x2x256xf32>
    %238 = vector.shape_cast %237 : vector<1x2x256xf32> to vector<2x256xf32>
    %239 = arith.addf %236, %238 : vector<2x256xf32>
    %cst_109 = arith.constant dense<0.000000e+00> : vector<2x256xf32>
    %240 = tpu.matmul %234, %72, %cst_109 {dimension_numbers = #tpu.dot_dimension_numbers<[1], [0], [0], [1], [0, 0, 1, 1], [], []>} : vector<2x64xf32>, vector<64x256xf32>, vector<2x256xf32> -> vector<2x256xf32>
    %241 = arith.addf %239, %240 : vector<2x256xf32>
    %242 = vector.extract_strided_slice %241 {offsets = [0, 0], sizes = [2, 64], strides = [1, 1]} : vector<2x256xf32> to vector<2x64xf32>
    %243 = arith.negf %242 : vector<2x64xf32>
    %244 = math.exp %243 : vector<2x64xf32>
    %cst_110 = arith.constant 1.000000e+00 : f32
    %245 = vector.broadcast %cst_110 : f32 to vector<2x64xf32>
    %246 = arith.addf %245, %244 : vector<2x64xf32>
    %247 = arith.divf %245, %246 : vector<2x64xf32>
    %248 = vector.extract_strided_slice %241 {offsets = [0, 64], sizes = [2, 64], strides = [1, 1]} : vector<2x256xf32> to vector<2x64xf32>
    %249 = arith.negf %248 : vector<2x64xf32>
    %250 = math.exp %249 : vector<2x64xf32>
    %cst_111 = arith.constant 1.000000e+00 : f32
    %251 = vector.broadcast %cst_111 : f32 to vector<2x64xf32>
    %252 = arith.addf %251, %250 : vector<2x64xf32>
    %253 = arith.divf %251, %252 : vector<2x64xf32>
    %254 = vector.extract_strided_slice %241 {offsets = [0, 128], sizes = [2, 64], strides = [1, 1]} : vector<2x256xf32> to vector<2x64xf32>
    %255 = math.tanh %254 : vector<2x64xf32>
    %256 = vector.extract_strided_slice %241 {offsets = [0, 192], sizes = [2, 64], strides = [1, 1]} : vector<2x256xf32> to vector<2x64xf32>
    %257 = arith.negf %256 : vector<2x64xf32>
    %258 = math.exp %257 : vector<2x64xf32>
    %cst_112 = arith.constant 1.000000e+00 : f32
    %259 = vector.broadcast %cst_112 : f32 to vector<2x64xf32>
    %260 = arith.addf %259, %258 : vector<2x64xf32>
    %261 = arith.divf %259, %260 : vector<2x64xf32>
    %262 = arith.mulf %253, %232 : vector<2x64xf32>
    %263 = arith.mulf %247, %255 : vector<2x64xf32>
    %264 = arith.addf %262, %263 : vector<2x64xf32>
    %265 = math.tanh %264 : vector<2x64xf32>
    %266 = arith.mulf %261, %265 : vector<2x64xf32>
    %c6_113 = arith.constant 6 : index
    %c0_114 = arith.constant 0 : index
    %c0_115 = arith.constant 0 : index
    %267 = vector.load %arg7[%c6_113, %c0_114, %c0_115] : memref<8x2x256xf32, #tpu.memory_space<vmem>>, vector<1x2x256xf32>
    %268 = vector.shape_cast %267 : vector<1x2x256xf32> to vector<2x256xf32>
    %c1_116 = arith.constant 1 : index
    %c0_117 = arith.constant 0 : index
    %c0_118 = arith.constant 0 : index
    %269 = vector.load %arg8[%c1_116, %c0_117, %c0_118] : memref<8x2x256xf32, #tpu.memory_space<vmem>>, vector<1x2x256xf32>
    %270 = vector.shape_cast %269 : vector<1x2x256xf32> to vector<2x256xf32>
    %271 = arith.addf %268, %270 : vector<2x256xf32>
    %cst_119 = arith.constant dense<0.000000e+00> : vector<2x256xf32>
    %272 = tpu.matmul %266, %72, %cst_119 {dimension_numbers = #tpu.dot_dimension_numbers<[1], [0], [0], [1], [0, 0, 1, 1], [], []>} : vector<2x64xf32>, vector<64x256xf32>, vector<2x256xf32> -> vector<2x256xf32>
    %273 = arith.addf %271, %272 : vector<2x256xf32>
    %274 = vector.extract_strided_slice %273 {offsets = [0, 0], sizes = [2, 64], strides = [1, 1]} : vector<2x256xf32> to vector<2x64xf32>
    %275 = arith.negf %274 : vector<2x64xf32>
    %276 = math.exp %275 : vector<2x64xf32>
    %cst_120 = arith.constant 1.000000e+00 : f32
    %277 = vector.broadcast %cst_120 : f32 to vector<2x64xf32>
    %278 = arith.addf %277, %276 : vector<2x64xf32>
    %279 = arith.divf %277, %278 : vector<2x64xf32>
    %280 = vector.extract_strided_slice %273 {offsets = [0, 64], sizes = [2, 64], strides = [1, 1]} : vector<2x256xf32> to vector<2x64xf32>
    %281 = arith.negf %280 : vector<2x64xf32>
    %282 = math.exp %281 : vector<2x64xf32>
    %cst_121 = arith.constant 1.000000e+00 : f32
    %283 = vector.broadcast %cst_121 : f32 to vector<2x64xf32>
    %284 = arith.addf %283, %282 : vector<2x64xf32>
    %285 = arith.divf %283, %284 : vector<2x64xf32>
    %286 = vector.extract_strided_slice %273 {offsets = [0, 128], sizes = [2, 64], strides = [1, 1]} : vector<2x256xf32> to vector<2x64xf32>
    %287 = math.tanh %286 : vector<2x64xf32>
    %288 = vector.extract_strided_slice %273 {offsets = [0, 192], sizes = [2, 64], strides = [1, 1]} : vector<2x256xf32> to vector<2x64xf32>
    %289 = arith.negf %288 : vector<2x64xf32>
    %290 = math.exp %289 : vector<2x64xf32>
    %cst_122 = arith.constant 1.000000e+00 : f32
    %291 = vector.broadcast %cst_122 : f32 to vector<2x64xf32>
    %292 = arith.addf %291, %290 : vector<2x64xf32>
    %293 = arith.divf %291, %292 : vector<2x64xf32>
    %294 = arith.mulf %285, %264 : vector<2x64xf32>
    %295 = arith.mulf %279, %287 : vector<2x64xf32>
    %296 = arith.addf %294, %295 : vector<2x64xf32>
    %297 = math.tanh %296 : vector<2x64xf32>
    %298 = arith.mulf %293, %297 : vector<2x64xf32>
    %c7_123 = arith.constant 7 : index
    %c0_124 = arith.constant 0 : index
    %c0_125 = arith.constant 0 : index
    %299 = vector.load %arg7[%c7_123, %c0_124, %c0_125] : memref<8x2x256xf32, #tpu.memory_space<vmem>>, vector<1x2x256xf32>
    %300 = vector.shape_cast %299 : vector<1x2x256xf32> to vector<2x256xf32>
    %c0_126 = arith.constant 0 : index
    %c0_127 = arith.constant 0 : index
    %c0_128 = arith.constant 0 : index
    %301 = vector.load %arg8[%c0_126, %c0_127, %c0_128] : memref<8x2x256xf32, #tpu.memory_space<vmem>>, vector<1x2x256xf32>
    %302 = vector.shape_cast %301 : vector<1x2x256xf32> to vector<2x256xf32>
    %303 = arith.addf %300, %302 : vector<2x256xf32>
    %cst_129 = arith.constant dense<0.000000e+00> : vector<2x256xf32>
    %304 = tpu.matmul %298, %72, %cst_129 {dimension_numbers = #tpu.dot_dimension_numbers<[1], [0], [0], [1], [0, 0, 1, 1], [], []>} : vector<2x64xf32>, vector<64x256xf32>, vector<2x256xf32> -> vector<2x256xf32>
    %305 = arith.addf %303, %304 : vector<2x256xf32>
    %306 = vector.extract_strided_slice %305 {offsets = [0, 0], sizes = [2, 64], strides = [1, 1]} : vector<2x256xf32> to vector<2x64xf32>
    %307 = arith.negf %306 : vector<2x64xf32>
    %308 = math.exp %307 : vector<2x64xf32>
    %cst_130 = arith.constant 1.000000e+00 : f32
    %309 = vector.broadcast %cst_130 : f32 to vector<2x64xf32>
    %310 = arith.addf %309, %308 : vector<2x64xf32>
    %311 = arith.divf %309, %310 : vector<2x64xf32>
    %312 = vector.extract_strided_slice %305 {offsets = [0, 64], sizes = [2, 64], strides = [1, 1]} : vector<2x256xf32> to vector<2x64xf32>
    %313 = arith.negf %312 : vector<2x64xf32>
    %314 = math.exp %313 : vector<2x64xf32>
    %cst_131 = arith.constant 1.000000e+00 : f32
    %315 = vector.broadcast %cst_131 : f32 to vector<2x64xf32>
    %316 = arith.addf %315, %314 : vector<2x64xf32>
    %317 = arith.divf %315, %316 : vector<2x64xf32>
    %318 = vector.extract_strided_slice %305 {offsets = [0, 128], sizes = [2, 64], strides = [1, 1]} : vector<2x256xf32> to vector<2x64xf32>
    %319 = math.tanh %318 : vector<2x64xf32>
    %320 = vector.extract_strided_slice %305 {offsets = [0, 192], sizes = [2, 64], strides = [1, 1]} : vector<2x256xf32> to vector<2x64xf32>
    %321 = arith.negf %320 : vector<2x64xf32>
    %322 = math.exp %321 : vector<2x64xf32>
    %cst_132 = arith.constant 1.000000e+00 : f32
    %323 = vector.broadcast %cst_132 : f32 to vector<2x64xf32>
    %324 = arith.addf %323, %322 : vector<2x64xf32>
    %325 = arith.divf %323, %324 : vector<2x64xf32>
    %326 = arith.mulf %317, %296 : vector<2x64xf32>
    %327 = arith.mulf %311, %319 : vector<2x64xf32>
    %328 = arith.addf %326, %327 : vector<2x64xf32>
    %329 = math.tanh %328 : vector<2x64xf32>
    %330 = arith.mulf %325, %329 : vector<2x64xf32>
    %c0_133 = arith.constant 0 : index
    %c0_134 = arith.constant 0 : index
    %331 = vector.load %arg6[%c0_133, %c0_134] : memref<2x64xf32, #tpu.memory_space<vmem>>, vector<2x64xf32>
    tpu.vector_store %arg6[%c0_133, %c0_134], %330 {strides = array<i32>} : memref<2x64xf32, #tpu.memory_space<vmem>>, vector<2x64xf32>,
    %332 = tpu.iota {dimensions = array<i32: 1>} : vector<2x64xi32>
    %c32_i32 = arith.constant 32 : i32
    %333 = vector.broadcast %c32_i32 : i32 to vector<2x64xi32>
    %334 = arith.cmpi slt, %332, %333 : vector<2x64xi32>
    %335 = arith.select %334, %106, %330 : vector<2x64xi1>, vector<2x64xf32>
    %336 = arith.select %334, %138, %298 : vector<2x64xi1>, vector<2x64xf32>
    %337 = arith.select %334, %170, %266 : vector<2x64xi1>, vector<2x64xf32>
    %338 = arith.select %334, %202, %234 : vector<2x64xi1>, vector<2x64xf32>
    %339 = arith.select %334, %234, %202 : vector<2x64xi1>, vector<2x64xf32>
    %340 = arith.select %334, %266, %170 : vector<2x64xi1>, vector<2x64xf32>
    %341 = arith.select %334, %298, %138 : vector<2x64xi1>, vector<2x64xf32>
    %342 = arith.select %334, %330, %106 : vector<2x64xi1>, vector<2x64xf32>
    %343 = vector.shape_cast %335 : vector<2x64xf32> to vector<1x2x64xf32>
    %344 = vector.shape_cast %336 : vector<2x64xf32> to vector<1x2x64xf32>
    %345 = vector.shape_cast %337 : vector<2x64xf32> to vector<1x2x64xf32>
    %346 = vector.shape_cast %338 : vector<2x64xf32> to vector<1x2x64xf32>
    %347 = vector.shape_cast %339 : vector<2x64xf32> to vector<1x2x64xf32>
    %348 = vector.shape_cast %340 : vector<2x64xf32> to vector<1x2x64xf32>
    %349 = vector.shape_cast %341 : vector<2x64xf32> to vector<1x2x64xf32>
    %350 = vector.shape_cast %342 : vector<2x64xf32> to vector<1x2x64xf32>
    %351 = tpu.concatenate %343, %344, %345, %346, %347, %348, %349, %350 in 0 : vector<1x2x64xf32>, vector<1x2x64xf32>, vector<1x2x64xf32>, vector<1x2x64xf32>, vector<1x2x64xf32>, vector<1x2x64xf32>, vector<1x2x64xf32>, vector<1x2x64xf32> -> vector<8x2x64xf32>
    %c0_135 = arith.constant 0 : index
    %c0_136 = arith.constant 0 : index
    %c0_137 = arith.constant 0 : index
    %352 = vector.load %arg5[%c0_135, %c0_136, %c0_137] : memref<8x2x64xf32, #tpu.memory_space<vmem>>, vector<8x2x64xf32>
    tpu.vector_store %arg5[%c0_135, %c0_136, %c0_137], %351 {strides = array<i32>} : memref<8x2x64xf32, #tpu.memory_space<vmem>>, vector<8x2x64xf32>,
    return
  }
}

module attributes {stable_mosaic.version = 11 : i64} {
  func.func @_bilstm_layer_kernel(%arg0: memref<16x16xf32, #tpu.memory_space<vmem>>, %arg1: memref<16x256xf32, #tpu.memory_space<vmem>>, %arg2: memref<16x256xf32, #tpu.memory_space<vmem>>, %arg3: memref<64x256xf32, #tpu.memory_space<vmem>>, %arg4: memref<1x256xf32, #tpu.memory_space<vmem>>, %arg5: memref<8x2x64xf32, #tpu.memory_space<vmem>>, %arg6: memref<2x64xf32, #tpu.memory_space<vmem>>, %arg7: memref<8x2x256xf32, #tpu.memory_space<vmem>>, %arg8: memref<8x2x256xf32, #tpu.memory_space<vmem>>) attributes {dimension_semantics = [], scalar_prefetch = 0 : i64, scratch_operands = 2 : i64, tpu.core_type = #tpu.core_type<tc>} {
    %c0 = arith.constant 0 : index
    %c0_0 = arith.constant 0 : index
    %0 = vector.load %arg0[%c0, %c0_0] : memref<16x16xf32, #tpu.memory_space<vmem>>, vector<16x16xf32>
    %c0_1 = arith.constant 0 : index
    %c0_2 = arith.constant 0 : index
    %1 = vector.load %arg1[%c0_1, %c0_2] : memref<16x256xf32, #tpu.memory_space<vmem>>, vector<16x256xf32>
    %cst = arith.constant dense<0.000000e+00> : vector<16x256xf32>
    %2 = tpu.matmul %0, %1, %cst {dimension_numbers = #tpu.dot_dimension_numbers<[1], [0], [0], [1], [0, 0, 1, 1], [], []>} : vector<16x16xf32>, vector<16x256xf32>, vector<16x256xf32> -> vector<16x256xf32>
    %c0_3 = arith.constant 0 : index
    %c0_4 = arith.constant 0 : index
    %3 = vector.load %arg4[%c0_3, %c0_4] : memref<1x256xf32, #tpu.memory_space<vmem>>, vector<1x256xf32>
    %4 = vector.broadcast %3 : vector<1x256xf32> to vector<16x256xf32>
    %5 = arith.addf %2, %4 : vector<16x256xf32>
    %c0_5 = arith.constant 0 : index
    %c0_6 = arith.constant 0 : index
    %6 = vector.load %arg2[%c0_5, %c0_6] : memref<16x256xf32, #tpu.memory_space<vmem>>, vector<16x256xf32>
    %cst_7 = arith.constant dense<0.000000e+00> : vector<16x256xf32>
    %7 = tpu.matmul %0, %6, %cst_7 {dimension_numbers = #tpu.dot_dimension_numbers<[1], [0], [0], [1], [0, 0, 1, 1], [], []>} : vector<16x16xf32>, vector<16x256xf32>, vector<16x256xf32> -> vector<16x256xf32>
    %8 = vector.extract_strided_slice %5 {offsets = [0, 0], sizes = [2, 256], strides = [1, 1]} : vector<16x256xf32> to vector<2x256xf32>
    %c0_8 = arith.constant 0 : index
    %c0_9 = arith.constant 0 : index
    %c0_10 = arith.constant 0 : index
    %9 = vector.load %arg7[%c0_8, %c0_9, %c0_10] : memref<8x2x256xf32, #tpu.memory_space<vmem>>, vector<1x2x256xf32>
    %10 = vector.shape_cast %9 : vector<1x2x256xf32> to vector<2x256xf32>
    %11 = vector.shape_cast %8 : vector<2x256xf32> to vector<1x2x256xf32>
    tpu.vector_store %arg7[%c0_8, %c0_9, %c0_10], %11 {strides = array<i32>} : memref<8x2x256xf32, #tpu.memory_space<vmem>>, vector<1x2x256xf32>,
    %12 = vector.extract_strided_slice %7 {offsets = [0, 0], sizes = [2, 256], strides = [1, 1]} : vector<16x256xf32> to vector<2x256xf32>
    %c0_11 = arith.constant 0 : index
    %c0_12 = arith.constant 0 : index
    %c0_13 = arith.constant 0 : index
    %13 = vector.load %arg8[%c0_11, %c0_12, %c0_13] : memref<8x2x256xf32, #tpu.memory_space<vmem>>, vector<1x2x256xf32>
    %14 = vector.shape_cast %13 : vector<1x2x256xf32> to vector<2x256xf32>
    %15 = vector.shape_cast %12 : vector<2x256xf32> to vector<1x2x256xf32>
    tpu.vector_store %arg8[%c0_11, %c0_12, %c0_13], %15 {strides = array<i32>} : memref<8x2x256xf32, #tpu.memory_space<vmem>>, vector<1x2x256xf32>,
    %16 = vector.extract_strided_slice %5 {offsets = [2, 0], sizes = [2, 256], strides = [1, 1]} : vector<16x256xf32> to vector<2x256xf32>
    %c1 = arith.constant 1 : index
    %c0_14 = arith.constant 0 : index
    %c0_15 = arith.constant 0 : index
    %17 = vector.load %arg7[%c1, %c0_14, %c0_15] : memref<8x2x256xf32, #tpu.memory_space<vmem>>, vector<1x2x256xf32>
    %18 = vector.shape_cast %17 : vector<1x2x256xf32> to vector<2x256xf32>
    %19 = vector.shape_cast %16 : vector<2x256xf32> to vector<1x2x256xf32>
    tpu.vector_store %arg7[%c1, %c0_14, %c0_15], %19 {strides = array<i32>} : memref<8x2x256xf32, #tpu.memory_space<vmem>>, vector<1x2x256xf32>,
    %20 = vector.extract_strided_slice %7 {offsets = [2, 0], sizes = [2, 256], strides = [1, 1]} : vector<16x256xf32> to vector<2x256xf32>
    %c1_16 = arith.constant 1 : index
    %c0_17 = arith.constant 0 : index
    %c0_18 = arith.constant 0 : index
    %21 = vector.load %arg8[%c1_16, %c0_17, %c0_18] : memref<8x2x256xf32, #tpu.memory_space<vmem>>, vector<1x2x256xf32>
    %22 = vector.shape_cast %21 : vector<1x2x256xf32> to vector<2x256xf32>
    %23 = vector.shape_cast %20 : vector<2x256xf32> to vector<1x2x256xf32>
    tpu.vector_store %arg8[%c1_16, %c0_17, %c0_18], %23 {strides = array<i32>} : memref<8x2x256xf32, #tpu.memory_space<vmem>>, vector<1x2x256xf32>,
    %24 = vector.extract_strided_slice %5 {offsets = [4, 0], sizes = [2, 256], strides = [1, 1]} : vector<16x256xf32> to vector<2x256xf32>
    %c2 = arith.constant 2 : index
    %c0_19 = arith.constant 0 : index
    %c0_20 = arith.constant 0 : index
    %25 = vector.load %arg7[%c2, %c0_19, %c0_20] : memref<8x2x256xf32, #tpu.memory_space<vmem>>, vector<1x2x256xf32>
    %26 = vector.shape_cast %25 : vector<1x2x256xf32> to vector<2x256xf32>
    %27 = vector.shape_cast %24 : vector<2x256xf32> to vector<1x2x256xf32>
    tpu.vector_store %arg7[%c2, %c0_19, %c0_20], %27 {strides = array<i32>} : memref<8x2x256xf32, #tpu.memory_space<vmem>>, vector<1x2x256xf32>,
    %28 = vector.extract_strided_slice %7 {offsets = [4, 0], sizes = [2, 256], strides = [1, 1]} : vector<16x256xf32> to vector<2x256xf32>
    %c2_21 = arith.constant 2 : index
    %c0_22 = arith.constant 0 : index
    %c0_23 = arith.constant 0 : index
    %29 = vector.load %arg8[%c2_21, %c0_22, %c0_23] : memref<8x2x256xf32, #tpu.memory_space<vmem>>, vector<1x2x256xf32>
    %30 = vector.shape_cast %29 : vector<1x2x256xf32> to vector<2x256xf32>
    %31 = vector.shape_cast %28 : vector<2x256xf32> to vector<1x2x256xf32>
    tpu.vector_store %arg8[%c2_21, %c0_22, %c0_23], %31 {strides = array<i32>} : memref<8x2x256xf32, #tpu.memory_space<vmem>>, vector<1x2x256xf32>,
    %32 = vector.extract_strided_slice %5 {offsets = [6, 0], sizes = [2, 256], strides = [1, 1]} : vector<16x256xf32> to vector<2x256xf32>
    %c3 = arith.constant 3 : index
    %c0_24 = arith.constant 0 : index
    %c0_25 = arith.constant 0 : index
    %33 = vector.load %arg7[%c3, %c0_24, %c0_25] : memref<8x2x256xf32, #tpu.memory_space<vmem>>, vector<1x2x256xf32>
    %34 = vector.shape_cast %33 : vector<1x2x256xf32> to vector<2x256xf32>
    %35 = vector.shape_cast %32 : vector<2x256xf32> to vector<1x2x256xf32>
    tpu.vector_store %arg7[%c3, %c0_24, %c0_25], %35 {strides = array<i32>} : memref<8x2x256xf32, #tpu.memory_space<vmem>>, vector<1x2x256xf32>,
    %36 = vector.extract_strided_slice %7 {offsets = [6, 0], sizes = [2, 256], strides = [1, 1]} : vector<16x256xf32> to vector<2x256xf32>
    %c3_26 = arith.constant 3 : index
    %c0_27 = arith.constant 0 : index
    %c0_28 = arith.constant 0 : index
    %37 = vector.load %arg8[%c3_26, %c0_27, %c0_28] : memref<8x2x256xf32, #tpu.memory_space<vmem>>, vector<1x2x256xf32>
    %38 = vector.shape_cast %37 : vector<1x2x256xf32> to vector<2x256xf32>
    %39 = vector.shape_cast %36 : vector<2x256xf32> to vector<1x2x256xf32>
    tpu.vector_store %arg8[%c3_26, %c0_27, %c0_28], %39 {strides = array<i32>} : memref<8x2x256xf32, #tpu.memory_space<vmem>>, vector<1x2x256xf32>,
    %40 = vector.extract_strided_slice %5 {offsets = [8, 0], sizes = [2, 256], strides = [1, 1]} : vector<16x256xf32> to vector<2x256xf32>
    %c4 = arith.constant 4 : index
    %c0_29 = arith.constant 0 : index
    %c0_30 = arith.constant 0 : index
    %41 = vector.load %arg7[%c4, %c0_29, %c0_30] : memref<8x2x256xf32, #tpu.memory_space<vmem>>, vector<1x2x256xf32>
    %42 = vector.shape_cast %41 : vector<1x2x256xf32> to vector<2x256xf32>
    %43 = vector.shape_cast %40 : vector<2x256xf32> to vector<1x2x256xf32>
    tpu.vector_store %arg7[%c4, %c0_29, %c0_30], %43 {strides = array<i32>} : memref<8x2x256xf32, #tpu.memory_space<vmem>>, vector<1x2x256xf32>,
    %44 = vector.extract_strided_slice %7 {offsets = [8, 0], sizes = [2, 256], strides = [1, 1]} : vector<16x256xf32> to vector<2x256xf32>
    %c4_31 = arith.constant 4 : index
    %c0_32 = arith.constant 0 : index
    %c0_33 = arith.constant 0 : index
    %45 = vector.load %arg8[%c4_31, %c0_32, %c0_33] : memref<8x2x256xf32, #tpu.memory_space<vmem>>, vector<1x2x256xf32>
    %46 = vector.shape_cast %45 : vector<1x2x256xf32> to vector<2x256xf32>
    %47 = vector.shape_cast %44 : vector<2x256xf32> to vector<1x2x256xf32>
    tpu.vector_store %arg8[%c4_31, %c0_32, %c0_33], %47 {strides = array<i32>} : memref<8x2x256xf32, #tpu.memory_space<vmem>>, vector<1x2x256xf32>,
    %48 = vector.extract_strided_slice %5 {offsets = [10, 0], sizes = [2, 256], strides = [1, 1]} : vector<16x256xf32> to vector<2x256xf32>
    %c5 = arith.constant 5 : index
    %c0_34 = arith.constant 0 : index
    %c0_35 = arith.constant 0 : index
    %49 = vector.load %arg7[%c5, %c0_34, %c0_35] : memref<8x2x256xf32, #tpu.memory_space<vmem>>, vector<1x2x256xf32>
    %50 = vector.shape_cast %49 : vector<1x2x256xf32> to vector<2x256xf32>
    %51 = vector.shape_cast %48 : vector<2x256xf32> to vector<1x2x256xf32>
    tpu.vector_store %arg7[%c5, %c0_34, %c0_35], %51 {strides = array<i32>} : memref<8x2x256xf32, #tpu.memory_space<vmem>>, vector<1x2x256xf32>,
    %52 = vector.extract_strided_slice %7 {offsets = [10, 0], sizes = [2, 256], strides = [1, 1]} : vector<16x256xf32> to vector<2x256xf32>
    %c5_36 = arith.constant 5 : index
    %c0_37 = arith.constant 0 : index
    %c0_38 = arith.constant 0 : index
    %53 = vector.load %arg8[%c5_36, %c0_37, %c0_38] : memref<8x2x256xf32, #tpu.memory_space<vmem>>, vector<1x2x256xf32>
    %54 = vector.shape_cast %53 : vector<1x2x256xf32> to vector<2x256xf32>
    %55 = vector.shape_cast %52 : vector<2x256xf32> to vector<1x2x256xf32>
    tpu.vector_store %arg8[%c5_36, %c0_37, %c0_38], %55 {strides = array<i32>} : memref<8x2x256xf32, #tpu.memory_space<vmem>>, vector<1x2x256xf32>,
    %56 = vector.extract_strided_slice %5 {offsets = [12, 0], sizes = [2, 256], strides = [1, 1]} : vector<16x256xf32> to vector<2x256xf32>
    %c6 = arith.constant 6 : index
    %c0_39 = arith.constant 0 : index
    %c0_40 = arith.constant 0 : index
    %57 = vector.load %arg7[%c6, %c0_39, %c0_40] : memref<8x2x256xf32, #tpu.memory_space<vmem>>, vector<1x2x256xf32>
    %58 = vector.shape_cast %57 : vector<1x2x256xf32> to vector<2x256xf32>
    %59 = vector.shape_cast %56 : vector<2x256xf32> to vector<1x2x256xf32>
    tpu.vector_store %arg7[%c6, %c0_39, %c0_40], %59 {strides = array<i32>} : memref<8x2x256xf32, #tpu.memory_space<vmem>>, vector<1x2x256xf32>,
    %60 = vector.extract_strided_slice %7 {offsets = [12, 0], sizes = [2, 256], strides = [1, 1]} : vector<16x256xf32> to vector<2x256xf32>
    %c6_41 = arith.constant 6 : index
    %c0_42 = arith.constant 0 : index
    %c0_43 = arith.constant 0 : index
    %61 = vector.load %arg8[%c6_41, %c0_42, %c0_43] : memref<8x2x256xf32, #tpu.memory_space<vmem>>, vector<1x2x256xf32>
    %62 = vector.shape_cast %61 : vector<1x2x256xf32> to vector<2x256xf32>
    %63 = vector.shape_cast %60 : vector<2x256xf32> to vector<1x2x256xf32>
    tpu.vector_store %arg8[%c6_41, %c0_42, %c0_43], %63 {strides = array<i32>} : memref<8x2x256xf32, #tpu.memory_space<vmem>>, vector<1x2x256xf32>,
    %64 = vector.extract_strided_slice %5 {offsets = [14, 0], sizes = [2, 256], strides = [1, 1]} : vector<16x256xf32> to vector<2x256xf32>
    %c7 = arith.constant 7 : index
    %c0_44 = arith.constant 0 : index
    %c0_45 = arith.constant 0 : index
    %65 = vector.load %arg7[%c7, %c0_44, %c0_45] : memref<8x2x256xf32, #tpu.memory_space<vmem>>, vector<1x2x256xf32>
    %66 = vector.shape_cast %65 : vector<1x2x256xf32> to vector<2x256xf32>
    %67 = vector.shape_cast %64 : vector<2x256xf32> to vector<1x2x256xf32>
    tpu.vector_store %arg7[%c7, %c0_44, %c0_45], %67 {strides = array<i32>} : memref<8x2x256xf32, #tpu.memory_space<vmem>>, vector<1x2x256xf32>,
    %68 = vector.extract_strided_slice %7 {offsets = [14, 0], sizes = [2, 256], strides = [1, 1]} : vector<16x256xf32> to vector<2x256xf32>
    %c7_46 = arith.constant 7 : index
    %c0_47 = arith.constant 0 : index
    %c0_48 = arith.constant 0 : index
    %69 = vector.load %arg8[%c7_46, %c0_47, %c0_48] : memref<8x2x256xf32, #tpu.memory_space<vmem>>, vector<1x2x256xf32>
    %70 = vector.shape_cast %69 : vector<1x2x256xf32> to vector<2x256xf32>
    %71 = vector.shape_cast %68 : vector<2x256xf32> to vector<1x2x256xf32>
    tpu.vector_store %arg8[%c7_46, %c0_47, %c0_48], %71 {strides = array<i32>} : memref<8x2x256xf32, #tpu.memory_space<vmem>>, vector<1x2x256xf32>,
    %c0_49 = arith.constant 0 : index
    %c0_50 = arith.constant 0 : index
    %72 = vector.load %arg3[%c0_49, %c0_50] : memref<64x256xf32, #tpu.memory_space<vmem>>, vector<64x256xf32>
    %cst_51 = arith.constant 0.000000e+00 : f32
    %73 = vector.broadcast %cst_51 : f32 to vector<2x64xf32>
    %cst_52 = arith.constant 0.000000e+00 : f32
    %74 = vector.broadcast %cst_52 : f32 to vector<2x64xf32>
    %c0_53 = arith.constant 0 : index
    %c0_54 = arith.constant 0 : index
    %c0_55 = arith.constant 0 : index
    %75 = vector.load %arg7[%c0_53, %c0_54, %c0_55] : memref<8x2x256xf32, #tpu.memory_space<vmem>>, vector<1x2x256xf32>
    %76 = vector.shape_cast %75 : vector<1x2x256xf32> to vector<2x256xf32>
    %c7_56 = arith.constant 7 : index
    %c0_57 = arith.constant 0 : index
    %c0_58 = arith.constant 0 : index
    %77 = vector.load %arg8[%c7_56, %c0_57, %c0_58] : memref<8x2x256xf32, #tpu.memory_space<vmem>>, vector<1x2x256xf32>
    %78 = vector.shape_cast %77 : vector<1x2x256xf32> to vector<2x256xf32>
    %79 = arith.addf %76, %78 : vector<2x256xf32>
    %cst_59 = arith.constant dense<0.000000e+00> : vector<2x256xf32>
    %80 = tpu.matmul %73, %72, %cst_59 {dimension_numbers = #tpu.dot_dimension_numbers<[1], [0], [0], [1], [0, 0, 1, 1], [], []>} : vector<2x64xf32>, vector<64x256xf32>, vector<2x256xf32> -> vector<2x256xf32>
    %81 = arith.addf %79, %80 : vector<2x256xf32>
    %82 = vector.extract_strided_slice %81 {offsets = [0, 0], sizes = [2, 64], strides = [1, 1]} : vector<2x256xf32> to vector<2x64xf32>
    %83 = arith.negf %82 : vector<2x64xf32>
    %84 = math.exp %83 : vector<2x64xf32>
    %cst_60 = arith.constant 1.000000e+00 : f32
    %85 = vector.broadcast %cst_60 : f32 to vector<2x64xf32>
    %86 = arith.addf %85, %84 : vector<2x64xf32>
    %87 = arith.divf %85, %86 : vector<2x64xf32>
    %88 = vector.extract_strided_slice %81 {offsets = [0, 64], sizes = [2, 64], strides = [1, 1]} : vector<2x256xf32> to vector<2x64xf32>
    %89 = arith.negf %88 : vector<2x64xf32>
    %90 = math.exp %89 : vector<2x64xf32>
    %cst_61 = arith.constant 1.000000e+00 : f32
    %91 = vector.broadcast %cst_61 : f32 to vector<2x64xf32>
    %92 = arith.addf %91, %90 : vector<2x64xf32>
    %93 = arith.divf %91, %92 : vector<2x64xf32>
    %94 = vector.extract_strided_slice %81 {offsets = [0, 128], sizes = [2, 64], strides = [1, 1]} : vector<2x256xf32> to vector<2x64xf32>
    %95 = math.tanh %94 : vector<2x64xf32>
    %96 = vector.extract_strided_slice %81 {offsets = [0, 192], sizes = [2, 64], strides = [1, 1]} : vector<2x256xf32> to vector<2x64xf32>
    %97 = arith.negf %96 : vector<2x64xf32>
    %98 = math.exp %97 : vector<2x64xf32>
    %cst_62 = arith.constant 1.000000e+00 : f32
    %99 = vector.broadcast %cst_62 : f32 to vector<2x64xf32>
    %100 = arith.addf %99, %98 : vector<2x64xf32>
    %101 = arith.divf %99, %100 : vector<2x64xf32>
    %102 = arith.mulf %93, %74 : vector<2x64xf32>
    %103 = arith.mulf %87, %95 : vector<2x64xf32>
    %104 = arith.addf %102, %103 : vector<2x64xf32>
    %105 = math.tanh %104 : vector<2x64xf32>
    %106 = arith.mulf %101, %105 : vector<2x64xf32>
    %c1_63 = arith.constant 1 : index
    %c0_64 = arith.constant 0 : index
    %c0_65 = arith.constant 0 : index
    %107 = vector.load %arg7[%c1_63, %c0_64, %c0_65] : memref<8x2x256xf32, #tpu.memory_space<vmem>>, vector<1x2x256xf32>
    %108 = vector.shape_cast %107 : vector<1x2x256xf32> to vector<2x256xf32>
    %c6_66 = arith.constant 6 : index
    %c0_67 = arith.constant 0 : index
    %c0_68 = arith.constant 0 : index
    %109 = vector.load %arg8[%c6_66, %c0_67, %c0_68] : memref<8x2x256xf32, #tpu.memory_space<vmem>>, vector<1x2x256xf32>
    %110 = vector.shape_cast %109 : vector<1x2x256xf32> to vector<2x256xf32>
    %111 = arith.addf %108, %110 : vector<2x256xf32>
    %cst_69 = arith.constant dense<0.000000e+00> : vector<2x256xf32>
    %112 = tpu.matmul %106, %72, %cst_69 {dimension_numbers = #tpu.dot_dimension_numbers<[1], [0], [0], [1], [0, 0, 1, 1], [], []>} : vector<2x64xf32>, vector<64x256xf32>, vector<2x256xf32> -> vector<2x256xf32>
    %113 = arith.addf %111, %112 : vector<2x256xf32>
    %114 = vector.extract_strided_slice %113 {offsets = [0, 0], sizes = [2, 64], strides = [1, 1]} : vector<2x256xf32> to vector<2x64xf32>
    %115 = arith.negf %114 : vector<2x64xf32>
    %116 = math.exp %115 : vector<2x64xf32>
    %cst_70 = arith.constant 1.000000e+00 : f32
    %117 = vector.broadcast %cst_70 : f32 to vector<2x64xf32>
    %118 = arith.addf %117, %116 : vector<2x64xf32>
    %119 = arith.divf %117, %118 : vector<2x64xf32>
    %120 = vector.extract_strided_slice %113 {offsets = [0, 64], sizes = [2, 64], strides = [1, 1]} : vector<2x256xf32> to vector<2x64xf32>
    %121 = arith.negf %120 : vector<2x64xf32>
    %122 = math.exp %121 : vector<2x64xf32>
    %cst_71 = arith.constant 1.000000e+00 : f32
    %123 = vector.broadcast %cst_71 : f32 to vector<2x64xf32>
    %124 = arith.addf %123, %122 : vector<2x64xf32>
    %125 = arith.divf %123, %124 : vector<2x64xf32>
    %126 = vector.extract_strided_slice %113 {offsets = [0, 128], sizes = [2, 64], strides = [1, 1]} : vector<2x256xf32> to vector<2x64xf32>
    %127 = math.tanh %126 : vector<2x64xf32>
    %128 = vector.extract_strided_slice %113 {offsets = [0, 192], sizes = [2, 64], strides = [1, 1]} : vector<2x256xf32> to vector<2x64xf32>
    %129 = arith.negf %128 : vector<2x64xf32>
    %130 = math.exp %129 : vector<2x64xf32>
    %cst_72 = arith.constant 1.000000e+00 : f32
    %131 = vector.broadcast %cst_72 : f32 to vector<2x64xf32>
    %132 = arith.addf %131, %130 : vector<2x64xf32>
    %133 = arith.divf %131, %132 : vector<2x64xf32>
    %134 = arith.mulf %125, %104 : vector<2x64xf32>
    %135 = arith.mulf %119, %127 : vector<2x64xf32>
    %136 = arith.addf %134, %135 : vector<2x64xf32>
    %137 = math.tanh %136 : vector<2x64xf32>
    %138 = arith.mulf %133, %137 : vector<2x64xf32>
    %c2_73 = arith.constant 2 : index
    %c0_74 = arith.constant 0 : index
    %c0_75 = arith.constant 0 : index
    %139 = vector.load %arg7[%c2_73, %c0_74, %c0_75] : memref<8x2x256xf32, #tpu.memory_space<vmem>>, vector<1x2x256xf32>
    %140 = vector.shape_cast %139 : vector<1x2x256xf32> to vector<2x256xf32>
    %c5_76 = arith.constant 5 : index
    %c0_77 = arith.constant 0 : index
    %c0_78 = arith.constant 0 : index
    %141 = vector.load %arg8[%c5_76, %c0_77, %c0_78] : memref<8x2x256xf32, #tpu.memory_space<vmem>>, vector<1x2x256xf32>
    %142 = vector.shape_cast %141 : vector<1x2x256xf32> to vector<2x256xf32>
    %143 = arith.addf %140, %142 : vector<2x256xf32>
    %cst_79 = arith.constant dense<0.000000e+00> : vector<2x256xf32>
    %144 = tpu.matmul %138, %72, %cst_79 {dimension_numbers = #tpu.dot_dimension_numbers<[1], [0], [0], [1], [0, 0, 1, 1], [], []>} : vector<2x64xf32>, vector<64x256xf32>, vector<2x256xf32> -> vector<2x256xf32>
    %145 = arith.addf %143, %144 : vector<2x256xf32>
    %146 = vector.extract_strided_slice %145 {offsets = [0, 0], sizes = [2, 64], strides = [1, 1]} : vector<2x256xf32> to vector<2x64xf32>
    %147 = arith.negf %146 : vector<2x64xf32>
    %148 = math.exp %147 : vector<2x64xf32>
    %cst_80 = arith.constant 1.000000e+00 : f32
    %149 = vector.broadcast %cst_80 : f32 to vector<2x64xf32>
    %150 = arith.addf %149, %148 : vector<2x64xf32>
    %151 = arith.divf %149, %150 : vector<2x64xf32>
    %152 = vector.extract_strided_slice %145 {offsets = [0, 64], sizes = [2, 64], strides = [1, 1]} : vector<2x256xf32> to vector<2x64xf32>
    %153 = arith.negf %152 : vector<2x64xf32>
    %154 = math.exp %153 : vector<2x64xf32>
    %cst_81 = arith.constant 1.000000e+00 : f32
    %155 = vector.broadcast %cst_81 : f32 to vector<2x64xf32>
    %156 = arith.addf %155, %154 : vector<2x64xf32>
    %157 = arith.divf %155, %156 : vector<2x64xf32>
    %158 = vector.extract_strided_slice %145 {offsets = [0, 128], sizes = [2, 64], strides = [1, 1]} : vector<2x256xf32> to vector<2x64xf32>
    %159 = math.tanh %158 : vector<2x64xf32>
    %160 = vector.extract_strided_slice %145 {offsets = [0, 192], sizes = [2, 64], strides = [1, 1]} : vector<2x256xf32> to vector<2x64xf32>
    %161 = arith.negf %160 : vector<2x64xf32>
    %162 = math.exp %161 : vector<2x64xf32>
    %cst_82 = arith.constant 1.000000e+00 : f32
    %163 = vector.broadcast %cst_82 : f32 to vector<2x64xf32>
    %164 = arith.addf %163, %162 : vector<2x64xf32>
    %165 = arith.divf %163, %164 : vector<2x64xf32>
    %166 = arith.mulf %157, %136 : vector<2x64xf32>
    %167 = arith.mulf %151, %159 : vector<2x64xf32>
    %168 = arith.addf %166, %167 : vector<2x64xf32>
    %169 = math.tanh %168 : vector<2x64xf32>
    %170 = arith.mulf %165, %169 : vector<2x64xf32>
    %c3_83 = arith.constant 3 : index
    %c0_84 = arith.constant 0 : index
    %c0_85 = arith.constant 0 : index
    %171 = vector.load %arg7[%c3_83, %c0_84, %c0_85] : memref<8x2x256xf32, #tpu.memory_space<vmem>>, vector<1x2x256xf32>
    %172 = vector.shape_cast %171 : vector<1x2x256xf32> to vector<2x256xf32>
    %c4_86 = arith.constant 4 : index
    %c0_87 = arith.constant 0 : index
    %c0_88 = arith.constant 0 : index
    %173 = vector.load %arg8[%c4_86, %c0_87, %c0_88] : memref<8x2x256xf32, #tpu.memory_space<vmem>>, vector<1x2x256xf32>
    %174 = vector.shape_cast %173 : vector<1x2x256xf32> to vector<2x256xf32>
    %175 = arith.addf %172, %174 : vector<2x256xf32>
    %cst_89 = arith.constant dense<0.000000e+00> : vector<2x256xf32>
    %176 = tpu.matmul %170, %72, %cst_89 {dimension_numbers = #tpu.dot_dimension_numbers<[1], [0], [0], [1], [0, 0, 1, 1], [], []>} : vector<2x64xf32>, vector<64x256xf32>, vector<2x256xf32> -> vector<2x256xf32>
    %177 = arith.addf %175, %176 : vector<2x256xf32>
    %178 = vector.extract_strided_slice %177 {offsets = [0, 0], sizes = [2, 64], strides = [1, 1]} : vector<2x256xf32> to vector<2x64xf32>
    %179 = arith.negf %178 : vector<2x64xf32>
    %180 = math.exp %179 : vector<2x64xf32>
    %cst_90 = arith.constant 1.000000e+00 : f32
    %181 = vector.broadcast %cst_90 : f32 to vector<2x64xf32>
    %182 = arith.addf %181, %180 : vector<2x64xf32>
    %183 = arith.divf %181, %182 : vector<2x64xf32>
    %184 = vector.extract_strided_slice %177 {offsets = [0, 64], sizes = [2, 64], strides = [1, 1]} : vector<2x256xf32> to vector<2x64xf32>
    %185 = arith.negf %184 : vector<2x64xf32>
    %186 = math.exp %185 : vector<2x64xf32>
    %cst_91 = arith.constant 1.000000e+00 : f32
    %187 = vector.broadcast %cst_91 : f32 to vector<2x64xf32>
    %188 = arith.addf %187, %186 : vector<2x64xf32>
    %189 = arith.divf %187, %188 : vector<2x64xf32>
    %190 = vector.extract_strided_slice %177 {offsets = [0, 128], sizes = [2, 64], strides = [1, 1]} : vector<2x256xf32> to vector<2x64xf32>
    %191 = math.tanh %190 : vector<2x64xf32>
    %192 = vector.extract_strided_slice %177 {offsets = [0, 192], sizes = [2, 64], strides = [1, 1]} : vector<2x256xf32> to vector<2x64xf32>
    %193 = arith.negf %192 : vector<2x64xf32>
    %194 = math.exp %193 : vector<2x64xf32>
    %cst_92 = arith.constant 1.000000e+00 : f32
    %195 = vector.broadcast %cst_92 : f32 to vector<2x64xf32>
    %196 = arith.addf %195, %194 : vector<2x64xf32>
    %197 = arith.divf %195, %196 : vector<2x64xf32>
    %198 = arith.mulf %189, %168 : vector<2x64xf32>
    %199 = arith.mulf %183, %191 : vector<2x64xf32>
    %200 = arith.addf %198, %199 : vector<2x64xf32>
    %201 = math.tanh %200 : vector<2x64xf32>
    %202 = arith.mulf %197, %201 : vector<2x64xf32>
    %c4_93 = arith.constant 4 : index
    %c0_94 = arith.constant 0 : index
    %c0_95 = arith.constant 0 : index
    %203 = vector.load %arg7[%c4_93, %c0_94, %c0_95] : memref<8x2x256xf32, #tpu.memory_space<vmem>>, vector<1x2x256xf32>
    %204 = vector.shape_cast %203 : vector<1x2x256xf32> to vector<2x256xf32>
    %c3_96 = arith.constant 3 : index
    %c0_97 = arith.constant 0 : index
    %c0_98 = arith.constant 0 : index
    %205 = vector.load %arg8[%c3_96, %c0_97, %c0_98] : memref<8x2x256xf32, #tpu.memory_space<vmem>>, vector<1x2x256xf32>
    %206 = vector.shape_cast %205 : vector<1x2x256xf32> to vector<2x256xf32>
    %207 = arith.addf %204, %206 : vector<2x256xf32>
    %cst_99 = arith.constant dense<0.000000e+00> : vector<2x256xf32>
    %208 = tpu.matmul %202, %72, %cst_99 {dimension_numbers = #tpu.dot_dimension_numbers<[1], [0], [0], [1], [0, 0, 1, 1], [], []>} : vector<2x64xf32>, vector<64x256xf32>, vector<2x256xf32> -> vector<2x256xf32>
    %209 = arith.addf %207, %208 : vector<2x256xf32>
    %210 = vector.extract_strided_slice %209 {offsets = [0, 0], sizes = [2, 64], strides = [1, 1]} : vector<2x256xf32> to vector<2x64xf32>
    %211 = arith.negf %210 : vector<2x64xf32>
    %212 = math.exp %211 : vector<2x64xf32>
    %cst_100 = arith.constant 1.000000e+00 : f32
    %213 = vector.broadcast %cst_100 : f32 to vector<2x64xf32>
    %214 = arith.addf %213, %212 : vector<2x64xf32>
    %215 = arith.divf %213, %214 : vector<2x64xf32>
    %216 = vector.extract_strided_slice %209 {offsets = [0, 64], sizes = [2, 64], strides = [1, 1]} : vector<2x256xf32> to vector<2x64xf32>
    %217 = arith.negf %216 : vector<2x64xf32>
    %218 = math.exp %217 : vector<2x64xf32>
    %cst_101 = arith.constant 1.000000e+00 : f32
    %219 = vector.broadcast %cst_101 : f32 to vector<2x64xf32>
    %220 = arith.addf %219, %218 : vector<2x64xf32>
    %221 = arith.divf %219, %220 : vector<2x64xf32>
    %222 = vector.extract_strided_slice %209 {offsets = [0, 128], sizes = [2, 64], strides = [1, 1]} : vector<2x256xf32> to vector<2x64xf32>
    %223 = math.tanh %222 : vector<2x64xf32>
    %224 = vector.extract_strided_slice %209 {offsets = [0, 192], sizes = [2, 64], strides = [1, 1]} : vector<2x256xf32> to vector<2x64xf32>
    %225 = arith.negf %224 : vector<2x64xf32>
    %226 = math.exp %225 : vector<2x64xf32>
    %cst_102 = arith.constant 1.000000e+00 : f32
    %227 = vector.broadcast %cst_102 : f32 to vector<2x64xf32>
    %228 = arith.addf %227, %226 : vector<2x64xf32>
    %229 = arith.divf %227, %228 : vector<2x64xf32>
    %230 = arith.mulf %221, %200 : vector<2x64xf32>
    %231 = arith.mulf %215, %223 : vector<2x64xf32>
    %232 = arith.addf %230, %231 : vector<2x64xf32>
    %233 = math.tanh %232 : vector<2x64xf32>
    %234 = arith.mulf %229, %233 : vector<2x64xf32>
    %c5_103 = arith.constant 5 : index
    %c0_104 = arith.constant 0 : index
    %c0_105 = arith.constant 0 : index
    %235 = vector.load %arg7[%c5_103, %c0_104, %c0_105] : memref<8x2x256xf32, #tpu.memory_space<vmem>>, vector<1x2x256xf32>
    %236 = vector.shape_cast %235 : vector<1x2x256xf32> to vector<2x256xf32>
    %c2_106 = arith.constant 2 : index
    %c0_107 = arith.constant 0 : index
    %c0_108 = arith.constant 0 : index
    %237 = vector.load %arg8[%c2_106, %c0_107, %c0_108] : memref<8x2x256xf32, #tpu.memory_space<vmem>>, vector<1x2x256xf32>
    %238 = vector.shape_cast %237 : vector<1x2x256xf32> to vector<2x256xf32>
    %239 = arith.addf %236, %238 : vector<2x256xf32>
    %cst_109 = arith.constant dense<0.000000e+00> : vector<2x256xf32>
    %240 = tpu.matmul %234, %72, %cst_109 {dimension_numbers = #tpu.dot_dimension_numbers<[1], [0], [0], [1], [0, 0, 1, 1], [], []>} : vector<2x64xf32>, vector<64x256xf32>, vector<2x256xf32> -> vector<2x256xf32>
    %241 = arith.addf %239, %240 : vector<2x256xf32>
    %242 = vector.extract_strided_slice %241 {offsets = [0, 0], sizes = [2, 64], strides = [1, 1]} : vector<2x256xf32> to vector<2x64xf32>
    %243 = arith.negf %242 : vector<2x64xf32>
    %244 = math.exp %243 : vector<2x64xf32>
    %cst_110 = arith.constant 1.000000e+00 : f32
    %245 = vector.broadcast %cst_110 : f32 to vector<2x64xf32>
    %246 = arith.addf %245, %244 : vector<2x64xf32>
    %247 = arith.divf %245, %246 : vector<2x64xf32>
    %248 = vector.extract_strided_slice %241 {offsets = [0, 64], sizes = [2, 64], strides = [1, 1]} : vector<2x256xf32> to vector<2x64xf32>
    %249 = arith.negf %248 : vector<2x64xf32>
    %250 = math.exp %249 : vector<2x64xf32>
    %cst_111 = arith.constant 1.000000e+00 : f32
    %251 = vector.broadcast %cst_111 : f32 to vector<2x64xf32>
    %252 = arith.addf %251, %250 : vector<2x64xf32>
    %253 = arith.divf %251, %252 : vector<2x64xf32>
    %254 = vector.extract_strided_slice %241 {offsets = [0, 128], sizes = [2, 64], strides = [1, 1]} : vector<2x256xf32> to vector<2x64xf32>
    %255 = math.tanh %254 : vector<2x64xf32>
    %256 = vector.extract_strided_slice %241 {offsets = [0, 192], sizes = [2, 64], strides = [1, 1]} : vector<2x256xf32> to vector<2x64xf32>
    %257 = arith.negf %256 : vector<2x64xf32>
    %258 = math.exp %257 : vector<2x64xf32>
    %cst_112 = arith.constant 1.000000e+00 : f32
    %259 = vector.broadcast %cst_112 : f32 to vector<2x64xf32>
    %260 = arith.addf %259, %258 : vector<2x64xf32>
    %261 = arith.divf %259, %260 : vector<2x64xf32>
    %262 = arith.mulf %253, %232 : vector<2x64xf32>
    %263 = arith.mulf %247, %255 : vector<2x64xf32>
    %264 = arith.addf %262, %263 : vector<2x64xf32>
    %265 = math.tanh %264 : vector<2x64xf32>
    %266 = arith.mulf %261, %265 : vector<2x64xf32>
    %c6_113 = arith.constant 6 : index
    %c0_114 = arith.constant 0 : index
    %c0_115 = arith.constant 0 : index
    %267 = vector.load %arg7[%c6_113, %c0_114, %c0_115] : memref<8x2x256xf32, #tpu.memory_space<vmem>>, vector<1x2x256xf32>
    %268 = vector.shape_cast %267 : vector<1x2x256xf32> to vector<2x256xf32>
    %c1_116 = arith.constant 1 : index
    %c0_117 = arith.constant 0 : index
    %c0_118 = arith.constant 0 : index
    %269 = vector.load %arg8[%c1_116, %c0_117, %c0_118] : memref<8x2x256xf32, #tpu.memory_space<vmem>>, vector<1x2x256xf32>
    %270 = vector.shape_cast %269 : vector<1x2x256xf32> to vector<2x256xf32>
    %271 = arith.addf %268, %270 : vector<2x256xf32>
    %cst_119 = arith.constant dense<0.000000e+00> : vector<2x256xf32>
    %272 = tpu.matmul %266, %72, %cst_119 {dimension_numbers = #tpu.dot_dimension_numbers<[1], [0], [0], [1], [0, 0, 1, 1], [], []>} : vector<2x64xf32>, vector<64x256xf32>, vector<2x256xf32> -> vector<2x256xf32>
    %273 = arith.addf %271, %272 : vector<2x256xf32>
    %274 = vector.extract_strided_slice %273 {offsets = [0, 0], sizes = [2, 64], strides = [1, 1]} : vector<2x256xf32> to vector<2x64xf32>
    %275 = arith.negf %274 : vector<2x64xf32>
    %276 = math.exp %275 : vector<2x64xf32>
    %cst_120 = arith.constant 1.000000e+00 : f32
    %277 = vector.broadcast %cst_120 : f32 to vector<2x64xf32>
    %278 = arith.addf %277, %276 : vector<2x64xf32>
    %279 = arith.divf %277, %278 : vector<2x64xf32>
    %280 = vector.extract_strided_slice %273 {offsets = [0, 64], sizes = [2, 64], strides = [1, 1]} : vector<2x256xf32> to vector<2x64xf32>
    %281 = arith.negf %280 : vector<2x64xf32>
    %282 = math.exp %281 : vector<2x64xf32>
    %cst_121 = arith.constant 1.000000e+00 : f32
    %283 = vector.broadcast %cst_121 : f32 to vector<2x64xf32>
    %284 = arith.addf %283, %282 : vector<2x64xf32>
    %285 = arith.divf %283, %284 : vector<2x64xf32>
    %286 = vector.extract_strided_slice %273 {offsets = [0, 128], sizes = [2, 64], strides = [1, 1]} : vector<2x256xf32> to vector<2x64xf32>
    %287 = math.tanh %286 : vector<2x64xf32>
    %288 = vector.extract_strided_slice %273 {offsets = [0, 192], sizes = [2, 64], strides = [1, 1]} : vector<2x256xf32> to vector<2x64xf32>
    %289 = arith.negf %288 : vector<2x64xf32>
    %290 = math.exp %289 : vector<2x64xf32>
    %cst_122 = arith.constant 1.000000e+00 : f32
    %291 = vector.broadcast %cst_122 : f32 to vector<2x64xf32>
    %292 = arith.addf %291, %290 : vector<2x64xf32>
    %293 = arith.divf %291, %292 : vector<2x64xf32>
    %294 = arith.mulf %285, %264 : vector<2x64xf32>
    %295 = arith.mulf %279, %287 : vector<2x64xf32>
    %296 = arith.addf %294, %295 : vector<2x64xf32>
    %297 = math.tanh %296 : vector<2x64xf32>
    %298 = arith.mulf %293, %297 : vector<2x64xf32>
    %c7_123 = arith.constant 7 : index
    %c0_124 = arith.constant 0 : index
    %c0_125 = arith.constant 0 : index
    %299 = vector.load %arg7[%c7_123, %c0_124, %c0_125] : memref<8x2x256xf32, #tpu.memory_space<vmem>>, vector<1x2x256xf32>
    %300 = vector.shape_cast %299 : vector<1x2x256xf32> to vector<2x256xf32>
    %c0_126 = arith.constant 0 : index
    %c0_127 = arith.constant 0 : index
    %c0_128 = arith.constant 0 : index
    %301 = vector.load %arg8[%c0_126, %c0_127, %c0_128] : memref<8x2x256xf32, #tpu.memory_space<vmem>>, vector<1x2x256xf32>
    %302 = vector.shape_cast %301 : vector<1x2x256xf32> to vector<2x256xf32>
    %303 = arith.addf %300, %302 : vector<2x256xf32>
    %cst_129 = arith.constant dense<0.000000e+00> : vector<2x256xf32>
    %304 = tpu.matmul %298, %72, %cst_129 {dimension_numbers = #tpu.dot_dimension_numbers<[1], [0], [0], [1], [0, 0, 1, 1], [], []>} : vector<2x64xf32>, vector<64x256xf32>, vector<2x256xf32> -> vector<2x256xf32>
    %305 = arith.addf %303, %304 : vector<2x256xf32>
    %306 = vector.extract_strided_slice %305 {offsets = [0, 0], sizes = [2, 64], strides = [1, 1]} : vector<2x256xf32> to vector<2x64xf32>
    %307 = arith.negf %306 : vector<2x64xf32>
    %308 = math.exp %307 : vector<2x64xf32>
    %cst_130 = arith.constant 1.000000e+00 : f32
    %309 = vector.broadcast %cst_130 : f32 to vector<2x64xf32>
    %310 = arith.addf %309, %308 : vector<2x64xf32>
    %311 = arith.divf %309, %310 : vector<2x64xf32>
    %312 = vector.extract_strided_slice %305 {offsets = [0, 64], sizes = [2, 64], strides = [1, 1]} : vector<2x256xf32> to vector<2x64xf32>
    %313 = arith.negf %312 : vector<2x64xf32>
    %314 = math.exp %313 : vector<2x64xf32>
    %cst_131 = arith.constant 1.000000e+00 : f32
    %315 = vector.broadcast %cst_131 : f32 to vector<2x64xf32>
    %316 = arith.addf %315, %314 : vector<2x64xf32>
    %317 = arith.divf %315, %316 : vector<2x64xf32>
    %318 = vector.extract_strided_slice %305 {offsets = [0, 128], sizes = [2, 64], strides = [1, 1]} : vector<2x256xf32> to vector<2x64xf32>
    %319 = math.tanh %318 : vector<2x64xf32>
    %320 = vector.extract_strided_slice %305 {offsets = [0, 192], sizes = [2, 64], strides = [1, 1]} : vector<2x256xf32> to vector<2x64xf32>
    %321 = arith.negf %320 : vector<2x64xf32>
    %322 = math.exp %321 : vector<2x64xf32>
    %cst_132 = arith.constant 1.000000e+00 : f32
    %323 = vector.broadcast %cst_132 : f32 to vector<2x64xf32>
    %324 = arith.addf %323, %322 : vector<2x64xf32>
    %325 = arith.divf %323, %324 : vector<2x64xf32>
    %326 = arith.mulf %317, %296 : vector<2x64xf32>
    %327 = arith.mulf %311, %319 : vector<2x64xf32>
    %328 = arith.addf %326, %327 : vector<2x64xf32>
    %329 = math.tanh %328 : vector<2x64xf32>
    %330 = arith.mulf %325, %329 : vector<2x64xf32>
    %c0_133 = arith.constant 0 : index
    %c0_134 = arith.constant 0 : index
    %331 = vector.load %arg6[%c0_133, %c0_134] : memref<2x64xf32, #tpu.memory_space<vmem>>, vector<2x64xf32>
    tpu.vector_store %arg6[%c0_133, %c0_134], %330 {strides = array<i32>} : memref<2x64xf32, #tpu.memory_space<vmem>>, vector<2x64xf32>,
    %332 = tpu.iota {dimensions = array<i32: 1>} : vector<2x64xi32>
    %c32_i32 = arith.constant 32 : i32
    %333 = vector.broadcast %c32_i32 : i32 to vector<2x64xi32>
    %334 = arith.cmpi slt, %332, %333 : vector<2x64xi32>
    %335 = arith.select %334, %106, %330 : vector<2x64xi1>, vector<2x64xf32>
    %336 = arith.select %334, %138, %298 : vector<2x64xi1>, vector<2x64xf32>
    %337 = arith.select %334, %170, %266 : vector<2x64xi1>, vector<2x64xf32>
    %338 = arith.select %334, %202, %234 : vector<2x64xi1>, vector<2x64xf32>
    %339 = arith.select %334, %234, %202 : vector<2x64xi1>, vector<2x64xf32>
    %340 = arith.select %334, %266, %170 : vector<2x64xi1>, vector<2x64xf32>
    %341 = arith.select %334, %298, %138 : vector<2x64xi1>, vector<2x64xf32>
    %342 = arith.select %334, %330, %106 : vector<2x64xi1>, vector<2x64xf32>
    %343 = vector.shape_cast %335 : vector<2x64xf32> to vector<1x2x64xf32>
    %344 = vector.shape_cast %336 : vector<2x64xf32> to vector<1x2x64xf32>
    %345 = vector.shape_cast %337 : vector<2x64xf32> to vector<1x2x64xf32>
    %346 = vector.shape_cast %338 : vector<2x64xf32> to vector<1x2x64xf32>
    %347 = vector.shape_cast %339 : vector<2x64xf32> to vector<1x2x64xf32>
    %348 = vector.shape_cast %340 : vector<2x64xf32> to vector<1x2x64xf32>
    %349 = vector.shape_cast %341 : vector<2x64xf32> to vector<1x2x64xf32>
    %350 = vector.shape_cast %342 : vector<2x64xf32> to vector<1x2x64xf32>
    %351 = tpu.concatenate %343, %344, %345, %346, %347, %348, %349, %350 in 0 : vector<1x2x64xf32>, vector<1x2x64xf32>, vector<1x2x64xf32>, vector<1x2x64xf32>, vector<1x2x64xf32>, vector<1x2x64xf32>, vector<1x2x64xf32>, vector<1x2x64xf32> -> vector<8x2x64xf32>
    %c0_135 = arith.constant 0 : index
    %c0_136 = arith.constant 0 : index
    %c0_137 = arith.constant 0 : index
    %352 = vector.load %arg5[%c0_135, %c0_136, %c0_137] : memref<8x2x64xf32, #tpu.memory_space<vmem>>, vector<8x2x64xf32>
    tpu.vector_store %arg5[%c0_135, %c0_136, %c0_137], %351 {strides = array<i32>} : memref<8x2x64xf32, #tpu.memory_space<vmem>>, vector<8x2x64xf32>,
    return
  }
}

module attributes {stable_mosaic.version = 11 : i64} {
  func.func @_head_kernel(%arg0: memref<2x64xf32, #tpu.memory_space<vmem>>, %arg1: memref<2x64xf32, #tpu.memory_space<vmem>>, %arg2: memref<128x32xf32, #tpu.memory_space<vmem>>, %arg3: memref<1x32xf32, #tpu.memory_space<vmem>>, %arg4: memref<32x1xf32, #tpu.memory_space<vmem>>, %arg5: memref<1x1xf32, #tpu.memory_space<vmem>>, %arg6: memref<2x1xf32, #tpu.memory_space<vmem>>) attributes {dimension_semantics = [], scalar_prefetch = 0 : i64, scratch_operands = 0 : i64, tpu.core_type = #tpu.core_type<tc>} {
    %c0 = arith.constant 0 : index
    %c0_0 = arith.constant 0 : index
    %0 = vector.load %arg0[%c0, %c0_0] : memref<2x64xf32, #tpu.memory_space<vmem>>, vector<2x64xf32>
    %c0_1 = arith.constant 0 : index
    %c0_2 = arith.constant 0 : index
    %1 = vector.load %arg1[%c0_1, %c0_2] : memref<2x64xf32, #tpu.memory_space<vmem>>, vector<2x64xf32>
    %2 = tpu.concatenate %0, %1 in 1 : vector<2x64xf32>, vector<2x64xf32> -> vector<2x128xf32>
    %c0_3 = arith.constant 0 : index
    %c0_4 = arith.constant 0 : index
    %3 = vector.load %arg2[%c0_3, %c0_4] : memref<128x32xf32, #tpu.memory_space<vmem>>, vector<128x32xf32>
    %cst = arith.constant dense<0.000000e+00> : vector<2x32xf32>
    %4 = tpu.matmul %2, %3, %cst {dimension_numbers = #tpu.dot_dimension_numbers<[1], [0], [0], [1], [0, 0, 1, 1], [], []>} : vector<2x128xf32>, vector<128x32xf32>, vector<2x32xf32> -> vector<2x32xf32>
    %c0_5 = arith.constant 0 : index
    %c0_6 = arith.constant 0 : index
    %5 = vector.load %arg3[%c0_5, %c0_6] : memref<1x32xf32, #tpu.memory_space<vmem>>, vector<1x32xf32>
    %6 = vector.broadcast %5 : vector<1x32xf32> to vector<2x32xf32>
    %7 = arith.addf %4, %6 : vector<2x32xf32>
    %cst_7 = arith.constant 0.000000e+00 : f32
    %8 = vector.broadcast %cst_7 : f32 to vector<2x32xf32>
    %9 = arith.maximumf %7, %8 : vector<2x32xf32>
    %c0_8 = arith.constant 0 : index
    %c0_9 = arith.constant 0 : index
    %10 = vector.load %arg4[%c0_8, %c0_9] : memref<32x1xf32, #tpu.memory_space<vmem>>, vector<32x1xf32>
    %cst_10 = arith.constant dense<0.000000e+00> : vector<2x1xf32>
    %11 = tpu.matmul %9, %10, %cst_10 {dimension_numbers = #tpu.dot_dimension_numbers<[1], [0], [0], [1], [0, 0, 1, 1], [], []>} : vector<2x32xf32>, vector<32x1xf32>, vector<2x1xf32> -> vector<2x1xf32>
    %c0_11 = arith.constant 0 : index
    %c0_12 = arith.constant 0 : index
    %12 = vector.load %arg5[%c0_11, %c0_12] : memref<1x1xf32, #tpu.memory_space<vmem>>, vector<1x1xf32>
    %13 = vector.broadcast %12 : vector<1x1xf32> to vector<2x1xf32>
    %14 = arith.addf %11, %13 : vector<2x1xf32>
    %c0_13 = arith.constant 0 : index
    %c0_14 = arith.constant 0 : index
    %15 = vector.load %arg6[%c0_13, %c0_14] : memref<2x1xf32, #tpu.memory_space<vmem>>, vector<2x1xf32>
    tpu.vector_store %arg6[%c0_13, %c0_14], %14 {strides = array<i32>} : memref<2x1xf32, #tpu.memory_space<vmem>>, vector<2x1xf32>,
    return
  }
}

</mosaic_0001>

<bundles_post_ra>
// kernel: bilstm_forward.4
= control target key start
LH: loop header
LB: loop body
LE: loop exit
PB: predicated region body
PF: predicated region fallthrough
CT: control target
= control target key end

     0   :  { %vm25_vm0 = vcmask 130048   ;;  %s172_s1 = inlined_call_operand.vmem [shape: f32[16,16], index: 1, kind: input, shape index: {}]   ;;  %s173_s0 = inlined_call_operand.vmem [shape: f32[16,16], index: 0, kind: input, shape index: {}]   ;;  %s174_s2 = inlined_call_operand.vmem [shape: f32[1,16], index: 2, kind: input, shape index: {}]   ;;  %s175_s3 = inlined_call_operand.vmem [shape: f32[16,16], index: 3, kind: output, shape index: {}]  }
   0x1   :  { %v17_v0 = vld [vmem:[%s172_s1 + $0x8] sm:$0xff]  ;;  %v16_v1 = vld [vmem:[%s172_s1] sm:$0xff] }
   0x2   :  { %v14_v2 = vld [vmem:[%s173_s0] sm:$0xff]  ;;  %120 = vmatprep.subr.mxu0 %v17_v0  ;;  %v15_v3 = vld [vmem:[%s173_s0 + $0x8] sm:$0xff] }
   0x3   :  { %124 = vmatprep.mubr.msk.f32.mxu0 %vm25_vm0, %v14_v2  ;;  %121 = vmatpush3.msra.mxu0 %v17_v0  ;;  %v113_v4 = vld [vmem:[%s174_s2] ss:$0 sm:$0xff] }
   0x4   :  { %122 = vmatprep.subr.mxu0 %v16_v1 }
   0x5   :  { %123 = vmatpush3.msra.mxu0 %v16_v1 }
   0x6   :  { %125 = vmatmul.mubr.msk.f32.vlgmr.msra.gmra.mxu0 %vm25_vm0, %v15_v3 }
  0xc6   :  { %v126_v5 = vpop.f32.mrf.mxu0 }
  0xc7   :  { %v104_v6 = vadd.f32 %v126_v5, %v113_v4 }
  0xc8   :  { %v98_v7 = vpop.f32.mrf.mxu0 }
  0xc9   :  { %108 = vst.msk [vmem:[%s175_s3 + $0x8] sm:$0xff] %vm25_vm0, %v104_v6  ;;  %v99_v8 = vadd.f32 %v113_v4, %v98_v7 }
  0xcb   :  { %107 = vst.msk [vmem:[%s175_s3] sm:$0xff] %vm25_vm0, %v99_v8 }

// kernel: bilstm_forward.7
= control target key start
LH: loop header
LB: loop body
LE: loop exit
PB: predicated region body
PF: predicated region fallthrough
CT: control target
= control target key end

     0   :  { %v292_v1 = vmov 0.0   ;;  %vm293_vm0 = vmmov 0   ;;  %s294_s27 = smov 64   ;;  %vm31_vm1 = vcmask 523264   ;;  %vm138_vm2 = vcmask 261120   ;;  %s427_s1 = inlined_call_operand.vmem [shape: f32[2,64], index: 1, kind: input, shape index: {}]   ;;  %s428_s2 = inlined_call_operand.vmem [shape: f32[128,32], index: 2, kind: input, shape index: {}]   ;;  %s429_s4 = inlined_call_operand.vmem [shape: f32[32,1], index: 4, kind: input, shape index: {}]   ;;  %s430_s0 = inlined_call_operand.vmem [shape: f32[2,64], index: 0, kind: input, shape index: {}]   ;;  %s431_s5 = inlined_call_operand.<no memory space> [shape: f32[1,1], index: 5, kind: input, shape index: {}]   ;;  %s432_s3 = inlined_call_operand.vmem [shape: f32[1,32], index: 3, kind: input, shape index: {}]   ;;  %s433_s6 = inlined_call_operand.vmem [shape: f32[2,1], index: 6, kind: output, shape index: {}]  }
   0x1   :  { %v26_v0 = vld [vmem:[%s427_s1] sm:$0x3]  ;;  %243 = vmatprep.subr.mxu0 %v292_v1  ;;  %v48_v2 = vld [vmem:[%s428_s2 + $0x78] sm:$0xff]  ;;  %v47_v3 = vld [vmem:[%s428_s2 + $0x70] sm:$0xff]  ;;  %275 = vmatprep.mubr.msk.f32.mxu0 %vm293_vm0, %v292_v1  ;;  %v11_v25 = vstv %s431_s5  ;;  %vm212_vm3 = vcmask 1024  }
   0x2   :  { %28 = vrot.lane.b32.xlu0 %v26_v0, %s294_s27  ;;  %244 = vmatpush3.msra.mxu0 %v48_v2  ;;  %v46_v4 = vld [vmem:[%s428_s2 + $0x68] sm:$0xff]  ;;  %v45_v5 = vld [vmem:[%s428_s2 + $0x60] sm:$0xff]  ;;  %v44_v6 = vld [vmem:[%s428_s2 + $0x58] sm:$0xff]  ;;  %12 = vst [vmem:[#allocation2] sm:$0x1] %v11_v25 }
   0x3   :  { %245 = vmatprep.subr.mxu0 %v292_v1  ;;  %278 = vmatprep.subr.mxu1 %v292_v1  ;;  %v130_v7 = vld [vmem:[%s429_s4 + $0x18] sm:$0xff]  ;;  %v43_v8 = vld [vmem:[%s428_s2 + $0x50] sm:$0xff]  ;;  %v42_v9 = vld [vmem:[%s428_s2 + $0x48] sm:$0xff] }
   0x4   :  { %246 = vmatpush3.msra.mxu0 %v47_v3  ;;  %286 = vmatprep.mubr.msk.f32.mxu1 %vm293_vm0, %v292_v1  ;;  %v41_v10 = vld [vmem:[%s428_s2 + $0x40] sm:$0xff]  ;;  %v40_v11 = vld [vmem:[%s428_s2 + $0x38] sm:$0xff]  ;;  %v39_v12 = vld [vmem:[%s428_s2 + $0x30] sm:$0xff] }
   0x5   :  { %247 = vmatprep.subr.mxu0 %v292_v1  ;;  %279 = vmatpush3.msra.mxu1 %v130_v7  ;;  %v38_v13 = vld [vmem:[%s428_s2 + $0x28] sm:$0xff]  ;;  %v37_v14 = vld [vmem:[%s428_s2 + $0x20] sm:$0xff]  ;;  %v36_v15 = vld [vmem:[%s428_s2 + $0x18] sm:$0xff] }
   0x6   :  { %248 = vmatpush3.msra.mxu0 %v46_v4  ;;  %280 = vmatprep.subr.mxu1 %v292_v1  ;;  %v35_v16 = vld [vmem:[%s428_s2 + $0x10] sm:$0xff]  ;;  %v34_v17 = vld [vmem:[%s428_s2 + $0x8] sm:$0xff]  ;;  %v33_v18 = vld [vmem:[%s428_s2] sm:$0xff] }
   0x7   :  { %249 = vmatprep.subr.mxu0 %v292_v1  ;;  %v25_v19 = vld [vmem:[%s430_s0] sm:$0x3]  ;;  %v129_v22 = vld [vmem:[%s429_s4 + $0x10] sm:$0xff]  ;;  %v128_v23 = vld [vmem:[%s429_s4 + $0x8] sm:$0xff] }
   0x8   :  { %250 = vmatpush3.msra.mxu0 %v45_v5  ;;  %281 = vmatpush3.msra.mxu1 %v129_v22  ;;  %v127_v24 = vld [vmem:[%s429_s4] sm:$0xff] }
   0x9   :  { %251 = vmatprep.subr.mxu0 %v292_v1  ;;  %282 = vmatprep.subr.mxu1 %v292_v1  ;;  %v218_v26 = vld [vmem:[%s432_s3] ss:$0 sm:$0xff] }
   0xa   :  { %252 = vmatpush3.msra.mxu0 %v44_v6  ;;  %283 = vmatpush3.msra.mxu1 %v128_v23  ;;  %v219_v31 = vld [vmem:[#allocation2] ss:$0 sm:$0xff] }
   0xb   :  { %253 = vmatprep.subr.mxu0 %v292_v1  ;;  %284 = vmatprep.subr.mxu1 %v292_v1 }
   0xc   :  { %254 = vmatpush3.msra.mxu0 %v43_v8  ;;  %285 = vmatpush3.msra.mxu1 %v127_v24 }
   0xd   :  { %255 = vmatprep.subr.mxu0 %v292_v1 }
   0xe   :  { %256 = vmatpush3.msra.mxu0 %v42_v9 }
   0xf   :  { %257 = vmatprep.subr.mxu0 %v292_v1 }
  0x10   :  { %258 = vmatpush3.msra.mxu0 %v41_v10 }
  0x11   :  { %259 = vmatprep.subr.mxu0 %v292_v1 }
  0x12   :  { %260 = vmatpush3.msra.mxu0 %v40_v11 }
  0x13   :  { %261 = vmatprep.subr.mxu0 %v292_v1 }
  0x14   :  { %262 = vmatpush3.msra.mxu0 %v39_v12 }
  0x15   :  { %263 = vmatprep.subr.mxu0 %v292_v1 }
  0x16   :  { %264 = vmatpush3.msra.mxu0 %v38_v13 }
  0x17   :  { %265 = vmatprep.subr.mxu0 %v292_v1 }
  0x18   :  { %266 = vmatpush3.msra.mxu0 %v37_v14 }
  0x19   :  { %267 = vmatprep.subr.mxu0 %v292_v1 }
  0x1a   :  { %268 = vmatpush3.msra.mxu0 %v36_v15 }
  0x1b   :  { %269 = vmatprep.subr.mxu0 %v292_v1 }
  0x1c   :  { %270 = vmatpush3.msra.mxu0 %v35_v16 }
  0x1d   :  { %271 = vmatprep.subr.mxu0 %v292_v1 }
  0x1e   :  { %272 = vmatpush3.msra.mxu0 %v34_v17 }
  0x1f   :  { %273 = vmatprep.subr.mxu0 %v292_v1 }
  0x20   :  { %274 = vmatpush3.msra.mxu0 %v33_v18 }
  0x74   :  { %v29_v20 = vpop.permute.xlu0 %28 }
  0x75   :  { %v32_v21 = vsel %vm31_vm1, %v25_v19, %v29_v20 }
  0x76   :  { %276 = vmatmul.mubr.f32.vlgmr.msra.gmra.mxu0 %v32_v21 }
 0x136   :  { %v122_v27 = vpop.f32.mrf.mxu0 }
 0x137   :  { %v123_v28 = vadd.f32 %v218_v26, %v122_v27 }
 0x138   :  { %v277_v29 = vpop.f32.mrf.mxu0 }
 0x139   :  { %v126_v30 = vmax.f32 %v123_v28, 0.0 }
 0x13b   :  { %287 = vmatmul.mubr.msk.f32.vlgmr.msra.gmra.mxu1 %vm138_vm2, %v126_v30 }
 0x1fb   :  { %v208_v32 = vpop.f32.mrf.mxu1 }
 0x1fc   :  { %v209_v33 = vadd.f32 %v219_v31, %v208_v32 }
 0x1fd   :  { %v288_v34 = vpop.f32.mrf.mxu1 }
 0x1fe   :  { %213 = vst.msk [vmem:[%s433_s6] sm:$0x3] %vm212_vm3, %v209_v33 }

// kernel: bilstm_forward.6
= control target key start
LH: loop header
LB: loop body
LE: loop exit
PB: predicated region body
PF: predicated region fallthrough
CT: control target
= control target key end

     0   :  { %12 = vsyncpa [#allocation5], 0  ;;  %s2017_s0 = inlined_call_operand.vmem [shape: f32[16,64], index: 0, kind: input, shape index: {}]   ;;  %s2018_s1 = inlined_call_operand.vmem [shape: f32[64,256], index: 1, kind: input, shape index: {}]   ;;  %s2019_s2 = inlined_call_operand.vmem [shape: f32[64,256], index: 2, kind: input, shape index: {}]   ;;  %s2020_s3 = inlined_call_operand.hbm [shape: f32[64,256], index: 3, kind: input, shape index: {}]   ;;  %s2021_s4 = inlined_call_operand.vmem [shape: f32[1,256], index: 4, kind: input, shape index: {}]   ;;  %s2022_s5 = inlined_call_operand.hbm [shape: f32[8,2,64], index: 5, kind: output, shape index: {0}]   ;;  %s2023_s6 = inlined_call_operand.vmem [shape: f32[2,64], index: 6, kind: output, shape index: {1}]  }
   0x1   :  { %13 = vsyncpa [#allocation6], 0  ;;  %s1588_s21 = smov [#allocation4]  }
   0x2   :  { %s25_s22 = sshll.u32 %s1588_s21, 4  ;;  %s26_s22 = int_to_ptr.vmem [resolvable:$true] %s25_s22 }
   0x3   :  { %s1552_s23 = scalar_lea.vmem %s26_s22, 2048  ;;  %p1557_p1 = scmp.lt.s32.totalorder %s26_s22, %s26_s22 }
   0x4   :  { %p1553_p0 = scmp.ne.s32.totalorder %s26_s22, %s1552_s23  ;;  %p1558_p2 = scmp.lt.s32.totalorder %s1552_s23, %s1552_s23 }
   0x6   :  { %p1559_p3 = por %p1558_p2, %p1557_p1 }
   0x8   :  { %p1560_p4 = pnand %p1559_p3, %p1553_p0 }
   0xa   :  { %1563 = shalt.err (!%p1560_p4)
}
   0xb   :  { %s1589_s24 = smov 256   ;;  %s1590_s25 = smov 16  }
   0xc   :  { %31 = dma.hbm_to_vmem [thread:$0]  %s2020_s3, 2048, %s26_s22, [#allocation5], %s1589_s24, %s1589_s24, %s1590_s25  }
   0xd   :  { %1584 = dma.done.wait [#allocation5], 2048  }
   0xe   :  { %1585 = vsyncadd [#allocation5], 4294965248  ;;  %v1591_v0 = vmov 0.0   ;;  %v54_v1 = vld [vmem:[%s2018_s1 + $0x78] sm:$0xff]  ;;  %v53_v3 = vld [vmem:[%s2018_s1 + $0x70] sm:$0xff]  ;;  %vm67_vm0 = vcmask 523264   ;;  %v57_v51 = vlaneseq }
   0xf   :  { %138 = vmatprep.mubr.f32.mxu0 %v1591_v0  ;;  %231 = vmatprep.mubr.f32.mxu1 %v1591_v0  ;;  %v166_v2 = vld [vmem:[%s2019_s2 + $0x78] sm:$0xff]  ;;  %v165_v4 = vld [vmem:[%s2019_s2 + $0x70] sm:$0xff]  ;;  %v52_v5 = vld [vmem:[%s2018_s1 + $0x68] sm:$0xff]  ;;  %v1592_v54 = vmov 1983009808   ;;  %vm1362_vm2 = vcmask 517120  }
  0x10   :  { %90 = vmatprep.subr.mxu0 %v54_v1  ;;  %183 = vmatprep.subr.mxu1 %v166_v2  ;;  %v164_v6 = vld [vmem:[%s2019_s2 + $0x68] sm:$0xff]  ;;  %v51_v7 = vld [vmem:[%s2018_s1 + $0x60] sm:$0xff]  ;;  %v50_v9 = vld [vmem:[%s2018_s1 + $0x58] sm:$0xff]  ;;  %v58_v52 = vshrl.u32 %v57_v51, 7  ;;  %v248_v55 = vunpack.c.l.s4 %v1592_v54  ;;  %s1594_s20 = smov [#allocation7]  }
  0x11   :  { %91 = vmatpush1.msra.mxu0 %v53_v3  ;;  %184 = vmatpush1.msra.mxu1 %v165_v4  ;;  %v163_v8 = vld [vmem:[%s2019_s2 + $0x60] sm:$0xff]  ;;  %v162_v10 = vld [vmem:[%s2019_s2 + $0x58] sm:$0xff]  ;;  %v49_v11 = vld [vmem:[%s2018_s1 + $0x50] sm:$0xff]  ;;  %s1388_s21 = sshll.u32 %s1594_s20, 4  ;;  %s1389_s21 = int_to_ptr.vmem [resolvable:$true] %s1388_s21 }
  0x12   :  { %92 = vmatprep.subr.mxu0 %v52_v5  ;;  %185 = vmatprep.subr.mxu1 %v164_v6  ;;  %v161_v12 = vld [vmem:[%s2019_s2 + $0x50] sm:$0xff]  ;;  %v48_v13 = vld [vmem:[%s2018_s1 + $0x48] sm:$0xff]  ;;  %v47_v15 = vld [vmem:[%s2018_s1 + $0x40] sm:$0xff]  ;;  %v59_v53 = vsub.s32 0, %v58_v52  ;;  %v63_v57 = vsub.s32 1, %v58_v52  ;;  %v249_v59 = vunpack.c.0.s8 %v248_v55  ;;  %s1564_s24 = scalar_lea.vmem %s1389_s21, 256  ;;  %p1569_p6 = scmp.lt.s32.totalorder %s1389_s21, %s1389_s21 }
  0x13   :  { %93 = vmatpush1.msra.mxu0 %v51_v7  ;;  %186 = vmatpush1.msra.mxu1 %v163_v8  ;;  %v160_v14 = vld [vmem:[%s2019_s2 + $0x48] sm:$0xff]  ;;  %v159_v16 = vld [vmem:[%s2019_s2 + $0x40] sm:$0xff]  ;;  %v46_v17 = vld [vmem:[%s2018_s1 + $0x38] sm:$0xff]  ;;  %p1565_p5 = scmp.ne.s32.totalorder %s1389_s21, %s1564_s24  ;;  %p1570_p7 = scmp.lt.s32.totalorder %s1564_s24, %s1564_s24 }
  0x14   :  { %94 = vmatprep.subr.mxu0 %v50_v9  ;;  %187 = vmatprep.subr.mxu1 %v162_v10  ;;  %v158_v18 = vld [vmem:[%s2019_s2 + $0x38] sm:$0xff]  ;;  %v45_v19 = vld [vmem:[%s2018_s1 + $0x30] sm:$0xff]  ;;  %v44_v21 = vld [vmem:[%s2018_s1 + $0x28] sm:$0xff]  ;;  %v1835_v1 = vsub.s32 %v249_v59, %v58_v52 }
  0x15   :  { %95 = vmatpush1.msra.mxu0 %v49_v11  ;;  %188 = vmatpush1.msra.mxu1 %v161_v12  ;;  %v157_v20 = vld [vmem:[%s2019_s2 + $0x30] sm:$0xff]  ;;  %v156_v22 = vld [vmem:[%s2019_s2 + $0x28] sm:$0xff]  ;;  %v43_v23 = vld [vmem:[%s2018_s1 + $0x20] sm:$0xff]  ;;  %p1571_p8 = por %p1570_p7, %p1569_p6 }
  0x16   :  { %96 = vmatprep.subr.mxu0 %v48_v13  ;;  %189 = vmatprep.subr.mxu1 %v160_v14  ;;  %v155_v24 = vld [vmem:[%s2019_s2 + $0x20] sm:$0xff]  ;;  %v42_v25 = vld [vmem:[%s2018_s1 + $0x18] sm:$0xff]  ;;  %v41_v27 = vld [vmem:[%s2018_s1 + $0x10] sm:$0xff] }
  0x17   :  { %97 = vmatpush1.msra.mxu0 %v47_v15  ;;  %190 = vmatpush1.msra.mxu1 %v159_v16  ;;  %v154_v26 = vld [vmem:[%s2019_s2 + $0x18] sm:$0xff]  ;;  %v153_v28 = vld [vmem:[%s2019_s2 + $0x10] sm:$0xff]  ;;  %v40_v29 = vld [vmem:[%s2018_s1 + $0x8] sm:$0xff]  ;;  %p1572_p9 = pnand %p1571_p8, %p1565_p5 }
  0x18   :  { %98 = vmatprep.subr.mxu0 %v46_v17  ;;  %191 = vmatprep.subr.mxu1 %v158_v18  ;;  %v152_v30 = vld [vmem:[%s2019_s2 + $0x8] sm:$0xff]  ;;  %v39_v31 = vld [vmem:[%s2018_s1] sm:$0xff]  ;;  %v1736_v34 = vld [vmem:[#allocation4 + $0x78] sm:$0xff] }
  0x19   :  { %99 = vmatpush1.msra.mxu0 %v45_v19  ;;  %192 = vmatpush1.msra.mxu1 %v157_v20  ;;  %v151_v32 = vld [vmem:[%s2019_s2] sm:$0xff]  ;;  %v1738_v35 = vld [vmem:[#allocation4 + $0x70] sm:$0xff]  ;;  %v1742_v36 = vld [vmem:[#allocation4 + $0x68] sm:$0xff] }
  0x1a   :  { %100 = vmatprep.subr.mxu0 %v44_v21  ;;  %193 = vmatprep.subr.mxu1 %v156_v22  ;;  %v37_v33 = vld [vmem:[%s2017_s0] sm:$0xff]  ;;  %v38_v38 = vld [vmem:[%s2017_s0 + $0x8] sm:$0xff]  ;;  %v1753_v39 = vld [vmem:[#allocation4 + $0x58] sm:$0xff] }
  0x1b   :  { %101 = vmatpush1.msra.mxu0 %v43_v23  ;;  %194 = vmatpush1.msra.mxu1 %v155_v24  ;;  %v1746_v37 = vld [vmem:[#allocation4 + $0x60] sm:$0xff]  ;;  %v1756_v40 = vld [vmem:[#allocation4 + $0x50] sm:$0xff]  ;;  %v1761_v41 = vld [vmem:[#allocation4 + $0x48] sm:$0xff] }
  0x1c   :  { %102 = vmatprep.subr.mxu0 %v42_v25  ;;  %195 = vmatprep.subr.mxu1 %v154_v26  ;;  %v1765_v42 = vld [vmem:[#allocation4 + $0x40] sm:$0xff]  ;;  %v1768_v43 = vld [vmem:[#allocation4 + $0x38] sm:$0xff]  ;;  %v1772_v44 = vld [vmem:[#allocation4 + $0x30] sm:$0xff] }
  0x1d   :  { %103 = vmatpush1.msra.mxu0 %v41_v27  ;;  %196 = vmatpush1.msra.mxu1 %v153_v28  ;;  %v1776_v45 = vld [vmem:[#allocation4 + $0x28] sm:$0xff]  ;;  %v1780_v46 = vld [vmem:[#allocation4 + $0x20] sm:$0xff]  ;;  %v1784_v47 = vld [vmem:[#allocation4 + $0x18] sm:$0xff] }
  0x1e   :  { %104 = vmatprep.subr.mxu0 %v40_v29  ;;  %197 = vmatprep.subr.mxu1 %v152_v30  ;;  %v1788_v48 = vld [vmem:[#allocation4 + $0x10] sm:$0xff]  ;;  %v1792_v49 = vld [vmem:[#allocation4 + $0x8] sm:$0xff]  ;;  %v1796_v50 = vld [vmem:[#allocation4] sm:$0xff] }
  0x1f   :  { %105 = vmatpush1.msra.mxu0 %v39_v31  ;;  %198 = vmatpush1.msra.mxu1 %v151_v32  ;;  %v55_v56 = vld [vmem:[%s2021_s4] sm:$0x3]  ;;  %s1593_s4 = smov 64  }
  0x20   :  { %1404 = vmatmul.mubr.msk.f32.vlgmr.msra.gmra.mxu0 %vm67_vm0, %v37_v33  ;;  %1406 = vmatmul.mubr.msk.f32.vlgmr.msra.gmra.mxu1 %vm67_vm0, %v37_v33  ;;  %v60_v58 = vrot.slane %v55_v56, %v59_v53  ;;  %v64_v60 = vrot.slane %v55_v56, %v63_v57 }
  0x21   :  { %408 = vmatprep.subr.mxu0 %v1736_v34  ;;  %144 = vmatprep.mubr.f32.mxu0 %v1591_v0 }
  0x22   :  { %409 = vmatpush1.msra.mxu0 %v1738_v35  ;;  %237 = vmatprep.mubr.f32.mxu1 %v1591_v0 }
  0x23   :  { %410 = vmatprep.subr.mxu0 %v1742_v36  ;;  %530 = vmatprep.subr.mxu1 %v1736_v34 }
  0x24   :  { %411 = vmatpush1.msra.mxu0 %v1746_v37  ;;  %1407 = vmatmul.mubr.msk.f32.gmra.mxu1 %vm67_vm0, %v38_v38 }
  0x25   :  { %1405 = vmatmul.mubr.msk.f32.gmra.mxu0 %vm67_vm0, %v38_v38  ;;  %412 = vmatprep.subr.mxu0 %v1753_v39 }
  0x26   :  { %413 = vmatpush1.msra.mxu0 %v1756_v40  ;;  %456 = vmatprep.mubr.f32.mxu0 %v1591_v0 }
  0x27   :  { %414 = vmatprep.subr.mxu0 %v1761_v41  ;;  %531 = vmatpush1.msra.mxu1 %v1738_v35 }
  0x28   :  { %415 = vmatpush1.msra.mxu0 %v1765_v42  ;;  %532 = vmatprep.subr.mxu1 %v1742_v36 }
  0x29   :  { %416 = vmatprep.subr.mxu0 %v1768_v43  ;;  %533 = vmatpush1.msra.mxu1 %v1746_v37 }
  0x2a   :  { %417 = vmatpush1.msra.mxu0 %v1772_v44  ;;  %534 = vmatprep.subr.mxu1 %v1753_v39 }
  0x2b   :  { %418 = vmatprep.subr.mxu0 %v1776_v45  ;;  %535 = vmatpush1.msra.mxu1 %v1756_v40 }
  0x2c   :  { %419 = vmatpush1.msra.mxu0 %v1780_v46  ;;  %536 = vmatprep.subr.mxu1 %v1761_v41 }
  0x2d   :  { %420 = vmatprep.subr.mxu0 %v1784_v47  ;;  %537 = vmatpush1.msra.mxu1 %v1765_v42 }
  0x2e   :  { %421 = vmatpush1.msra.mxu0 %v1788_v48  ;;  %538 = vmatprep.subr.mxu1 %v1768_v43 }
  0x2f   :  { %422 = vmatprep.subr.mxu0 %v1792_v49  ;;  %539 = vmatpush1.msra.mxu1 %v1772_v44 }
  0x30   :  { %423 = vmatpush1.msra.mxu0 %v1796_v50  ;;  %540 = vmatprep.subr.mxu1 %v1776_v45 }
  0x31   :  { %457 = vmatmul.mubr.f32.vlgmr.msra.gmra.mxu0 %v1591_v0  ;;  %541 = vmatpush1.msra.mxu1 %v1780_v46 }
  0x32   :  { %542 = vmatprep.subr.mxu1 %v1784_v47  ;;  %578 = vmatprep.mubr.f32.mxu1 %v1591_v0 }
  0x33   :  { %543 = vmatpush1.msra.mxu1 %v1788_v48  ;;  %652 = vmatprep.subr.mxu0 %v1736_v34 }
  0x34   :  { %544 = vmatprep.subr.mxu1 %v1792_v49  ;;  %653 = vmatpush1.msra.mxu0 %v1738_v35 }
  0x35   :  { %545 = vmatpush1.msra.mxu1 %v1796_v50  ;;  %654 = vmatprep.subr.mxu0 %v1742_v36 }
  0x36   :  { %655 = vmatpush1.msra.mxu0 %v1746_v37  ;;  %700 = vmatprep.mubr.f32.mxu0 %v1591_v0 }
  0x37   :  { %656 = vmatprep.subr.mxu0 %v1753_v39  ;;  %774 = vmatprep.subr.mxu1 %v1736_v34 }
  0x38   :  { %657 = vmatpush1.msra.mxu0 %v1756_v40 }
  0x39   :  { %658 = vmatprep.subr.mxu0 %v1761_v41 }
  0x3a   :  { %659 = vmatpush1.msra.mxu0 %v1765_v42 }
  0x3b   :  { %660 = vmatprep.subr.mxu0 %v1768_v43 }
  0x3c   :  { %661 = vmatpush1.msra.mxu0 %v1772_v44 }
  0x3d   :  { %662 = vmatprep.subr.mxu0 %v1776_v45 }
  0x3e   :  { %663 = vmatpush1.msra.mxu0 %v1780_v46 }
  0x3f   :  { %664 = vmatprep.subr.mxu0 %v1784_v47 }
  0x40   :  { %665 = vmatpush1.msra.mxu0 %v1788_v48 }
  0x41   :  { %666 = vmatprep.subr.mxu0 %v1792_v49 }
  0x42   :  { %667 = vmatpush1.msra.mxu0 %v1796_v50 }
  0x43   :  { %896 = vmatprep.subr.mxu0 %v1736_v34 }
  0xe0   :  { %v140_v61 = vpop.f32.mrf.mxu0  ;;  %v233_v62 = vpop.f32.mrf.mxu1 }
  0xe1   :  { %v141_v63 = vadd.f32 %v140_v61, %v60_v58 }
  0xe2   :  { %v142_v2 = vpop.f32.mrf.mxu0  ;;  %v235_v3 = vpop.f32.mrf.mxu1 }
  0xe3   :  { %v143_v4 = vadd.f32 %v142_v2, %v64_v60  ;;  %v258_v5 = vcombine.low %v233_v62, %v235_v3  ;;  %v287_v6 = vcombine.high %v233_v62, %v235_v3 }
  0xe4   :  { %v239_v7 = vpop.f32.mrf.mxu1 }
  0xe5   :  { %v246_v8 = vcombine.low %v141_v63, %v143_v4  ;;  %v276_v9 = vcombine.high %v141_v63, %v143_v4  ;;  %v265_v10 = vrot.slane %v258_v5, %v1835_v1  ;;  %1409 = vst.sshfl [vmem:[#allocation3] sm:$0x33 pattern:$0x76325410] %v258_v5  ;;  %v294_v11 = vrot.slane %v287_v6, %v1835_v1  ;;  %v146_v12 = vpop.f32.mrf.mxu0 }
  0xe6   :  { %1411 = vst.sshfl [vmem:[#allocation3 + $0x8] sm:$0x33 pattern:$0x76325410] %v287_v6  ;;  %v147_v13 = vadd.f32 %v146_v12, %v60_v58  ;;  %v241_v14 = vpop.f32.mrf.mxu1 }
  0xe7   :  { %v253_v15 = vrot.slane %v246_v8, %v1835_v1  ;;  %1408 = vst.sshfl [vmem:[#allocation2] sm:$0x33 pattern:$0x76325410] %v246_v8  ;;  %v283_v16 = vrot.slane %v276_v9, %v1835_v1  ;;  %v272_v17 = vcombine.high %v265_v10, %v265_v10  ;;  %v302_v18 = vcombine.high %v294_v11, %v294_v11  ;;  %v148_v19 = vpop.f32.mrf.mxu0 }
  0xe8   :  { %1410 = vst.sshfl [vmem:[#allocation2 + $0x8] sm:$0x33 pattern:$0x76325410] %v276_v9  ;;  %v149_v20 = vadd.f32 %v148_v19, %v64_v60  ;;  %v321_v21 = vcombine.low %v239_v7, %v241_v14  ;;  %v351_v22 = vcombine.high %v239_v7, %v241_v14 }
  0xe9   :  { %v268_v23 = vcombine.high %v253_v15, %v253_v15  ;;  %v298_v24 = vcombine.high %v283_v16, %v283_v16  ;;  %275 = vst [vmem:[#allocation3 + $0x4] sm:$0xf] %v272_v17  ;;  %305 = vst [vmem:[#allocation3 + $0xc] sm:$0xf] %v302_v18 }
  0xea   :  { %v308_v25 = vcombine.low %v147_v13, %v149_v20  ;;  %v340_v26 = vcombine.high %v147_v13, %v149_v20  ;;  %v328_v27 = vrot.slane %v321_v21, %v1835_v1  ;;  %1413 = vst.sshfl [vmem:[#allocation3 + $0x10] sm:$0x33 pattern:$0x76325410] %v321_v21  ;;  %v358_v28 = vrot.slane %v351_v22, %v1835_v1 }
  0xeb   :  { %1415 = vst.sshfl [vmem:[#allocation3 + $0x18] sm:$0x33 pattern:$0x76325410] %v351_v22  ;;  %271 = vst [vmem:[#allocation2 + $0x4] sm:$0xf] %v268_v23 }
  0xec   :  { %301 = vst [vmem:[#allocation2 + $0xc] sm:$0xf] %v298_v24  ;;  %v315_v29 = vrot.slane %v308_v25, %v1835_v1  ;;  %1412 = vst.sshfl [vmem:[#allocation2 + $0x10] sm:$0x33 pattern:$0x76325410] %v308_v25  ;;  %v347_v30 = vrot.slane %v340_v26, %v1835_v1  ;;  %v336_v31 = vcombine.high %v328_v27, %v328_v27 }
  0xed   :  { %1414 = vst.sshfl [vmem:[#allocation2 + $0x18] sm:$0x33 pattern:$0x76325410] %v340_v26  ;;  %v366_v32 = vcombine.high %v358_v28, %v358_v28 }
  0xee   :  { %v332_v33 = vcombine.high %v315_v29, %v315_v29  ;;  %v362_v38 = vcombine.high %v347_v30, %v347_v30  ;;  %339 = vst [vmem:[#allocation3 + $0x14] sm:$0xf] %v336_v31  ;;  %v386_v55 = vld [vmem:[#allocation2] sm:$0xf] }
  0xef   :  { %369 = vst [vmem:[#allocation3 + $0x1c] sm:$0xf] %v366_v32 }
  0xf0   :  { %335 = vst [vmem:[#allocation2 + $0x14] sm:$0xf] %v332_v33  ;;  %365 = vst [vmem:[#allocation2 + $0x1c] sm:$0xf] %v362_v38 }
  0xf1   :  { %v458_v52 = vpop.f32.mrf.mxu0 }
  0xf2   :  { %v508_v19 = vld [vmem:[#allocation2 + $0x4] sm:$0xf]  ;;  %v509_v21 = vld [vmem:[#allocation3 + $0x18] sm:$0xf] }
  0xf3   :  { %v460_v53 = vpop.f32.mrf.mxu0  ;;  %v510_v23 = vadd.f32 %v509_v21, %v508_v19 }
  0xf4   :  { %v465_v54 = vcombine.low %v458_v52, %v460_v53 }
  0xf6   :  { %v387_v56 = vld [vmem:[#allocation3 + $0x1c] sm:$0xf]  ;;  %v472_v58 = vrot.slane %v465_v54, %v1835_v1 }
  0xf7   :  { %v388_v57 = vadd.f32 %v387_v56, %v386_v55 }
  0xf9   :  { %v474_v59 = vadd.f32 %v472_v58, %v388_v57 }
  0xfb   :  { %v1416_v60 = vmul.f32 -1.442695, %v474_v59  ;;  %v482_v61 = vrot.slane %v474_v59, 2 }
  0xfd   :  { %1448 = vpow2.f32 %v1416_v60 }
  0xfe   :  { %1450 = vtanh.f32 %v482_v61 }
 0x10a   :  { %v1449_v62 = vpop.eup %1448 }
 0x10b   :  { %v478_v63 = vadd.f32 1.0, %v1449_v62  ;;  %v1451_v2 = vpop.eup %1450 }
 0x10d   :  { %1452 = vrcp.f32 %v478_v63  ;;  %v631_v63 = vld [vmem:[#allocation3 + $0x14] sm:$0xf] }
 0x11a   :  { %v1453_v3 = vpop.eup %1452 }
 0x11b   :  { %v496_v4 = vmul.f32 %v1453_v3, %v1451_v2  ;;  %v495_v5 = vmul.f32 0.0, %v1453_v3  ;;  %v630_v3 = vld [vmem:[#allocation2 + $0x8] sm:$0xf] }
 0x11d   :  { %498 = vrot.lane.b32.xlu0 %v496_v4, %s1593_s4 }
 0x121   :  { %485 = vrot.lane.b32.xlu0 %v474_v59, %s1593_s4 }
 0x18f   :  { %v499_v6 = vpop.permute.xlu0 %498 }
 0x190   :  { %v501_v7 = vadd.f32 %v499_v6, %v495_v5  ;;  %v632_v5 = vadd.f32 %v631_v63, %v630_v3 }
 0x192   :  { %1454 = vtanh.f32 %v501_v7 }
 0x193   :  { %v486_v9 = vpop.permute.xlu0 %485 }
 0x194   :  { %v487_v10 = vrot.slane %v486_v9, 2 }
 0x196   :  { %v1417_v11 = vmul.f32 -1.442695, %v487_v10 }
 0x198   :  { %1456 = vpow2.f32 %v1417_v11 }
 0x19f   :  { %v1455_v8 = vpop.eup %1454 }
 0x1a0   :  { %504 = vrot.lane.b32.xlu1 %v1455_v8, %s1593_s4 }
 0x1a5   :  { %v1457_v12 = vpop.eup %1456 }
 0x1a6   :  { %v492_v13 = vadd.f32 1.0, %v1457_v12 }
 0x1a8   :  { %1458 = vrcp.f32 %v492_v13 }
 0x1b5   :  { %v1459_v14 = vpop.eup %1458 }
 0x212   :  { %v505_v15 = vpop.permute.xlu1 %504 }
 0x213   :  { %v1849_v16 = vmul.f32 %v1459_v14, %v505_v15 }
 0x215   :  { %1418 = vmatmul.mubr.msk.f32.vlgmr.msra.gmra.mxu1 %vm67_vm0, %v1849_v16 }
 0x216   :  { %775 = vmatpush1.msra.mxu1 %v1738_v35  ;;  %822 = vmatprep.mubr.f32.mxu1 %v1591_v0 }
 0x217   :  { %776 = vmatprep.subr.mxu1 %v1742_v36 }
 0x218   :  { %777 = vmatpush1.msra.mxu1 %v1746_v37 }
 0x219   :  { %778 = vmatprep.subr.mxu1 %v1753_v39 }
 0x21a   :  { %779 = vmatpush1.msra.mxu1 %v1756_v40 }
 0x21b   :  { %780 = vmatprep.subr.mxu1 %v1761_v41 }
 0x21c   :  { %781 = vmatpush1.msra.mxu1 %v1765_v42 }
 0x21d   :  { %782 = vmatprep.subr.mxu1 %v1768_v43 }
 0x21e   :  { %783 = vmatpush1.msra.mxu1 %v1772_v44 }
 0x21f   :  { %784 = vmatprep.subr.mxu1 %v1776_v45 }
 0x220   :  { %785 = vmatpush1.msra.mxu1 %v1780_v46 }
 0x221   :  { %786 = vmatprep.subr.mxu1 %v1784_v47 }
 0x222   :  { %787 = vmatpush1.msra.mxu1 %v1788_v48 }
 0x223   :  { %788 = vmatprep.subr.mxu1 %v1792_v49 }
 0x224   :  { %789 = vmatpush1.msra.mxu1 %v1796_v50 }
 0x225   :  { %1018 = vmatprep.subr.mxu1 %v1736_v34 }
 0x2d5   :  { %v580_v17 = vpop.f32.mrf.mxu1 }
 0x2d7   :  { %v582_v18 = vpop.f32.mrf.mxu1 }
 0x2d8   :  { %v587_v20 = vcombine.low %v580_v17, %v582_v18 }
 0x2da   :  { %v594_v22 = vrot.slane %v587_v20, %v1835_v1 }
 0x2dc   :  { %v596_v24 = vadd.f32 %v594_v22, %v510_v23 }
 0x2de   :  { %607 = vrot.lane.b32.xlu0 %v596_v24, %s1593_s4  ;;  %v1419_v25 = vmul.f32 -1.442695, %v596_v24  ;;  %v604_v26 = vrot.slane %v596_v24, 2 }
 0x2e0   :  { %1460 = vpow2.f32 %v1419_v25 }
 0x2e1   :  { %1462 = vtanh.f32 %v604_v26 }
 0x2ed   :  { %v1461_v27 = vpop.eup %1460 }
 0x2ee   :  { %v600_v28 = vadd.f32 1.0, %v1461_v27  ;;  %v1463_v29 = vpop.eup %1462 }
 0x2f0   :  { %1464 = vrcp.f32 %v600_v28 }
 0x2fd   :  { %v1465_v30 = vpop.eup %1464 }
 0x2fe   :  { %v618_v31 = vmul.f32 %v1465_v30, %v1463_v29  ;;  %v617_v32 = vmul.f32 %v1465_v30, %v501_v7  ;;  %v752_v29 = vld [vmem:[#allocation2 + $0xc] sm:$0xf] }
 0x300   :  { %620 = vrot.lane.b32.xlu1 %v618_v31, %s1593_s4  ;;  %v753_v31 = vld [vmem:[#allocation3 + $0x10] sm:$0xf] }
 0x350   :  { %v608_v53 = vpop.permute.xlu0 %607 }
 0x351   :  { %v609_v54 = vrot.slane %v608_v53, 2 }
 0x353   :  { %v1420_v55 = vmul.f32 -1.442695, %v609_v54 }
 0x372   :  { %v621_v33 = vpop.permute.xlu1 %620 }
 0x373   :  { %v623_v38 = vadd.f32 %v621_v33, %v617_v32  ;;  %v754_v33 = vadd.f32 %v753_v31, %v752_v29 }
 0x375   :  { %1466 = vtanh.f32 %v623_v38 }
 0x376   :  { %1468 = vpow2.f32 %v1420_v55 }
 0x382   :  { %v1467_v52 = vpop.eup %1466 }
 0x383   :  { %626 = vrot.lane.b32.xlu1 %v1467_v52, %s1593_s4  ;;  %v1469_v56 = vpop.eup %1468 }
 0x384   :  { %v614_v57 = vadd.f32 1.0, %v1469_v56 }
 0x386   :  { %1470 = vrcp.f32 %v614_v57 }
 0x393   :  { %v1471_v58 = vpop.eup %1470 }
 0x3f5   :  { %v627_v59 = vpop.permute.xlu1 %626 }
 0x3f6   :  { %v1874_v60 = vmul.f32 %v1471_v58, %v627_v59 }
 0x3f8   :  { %1421 = vmatmul.mubr.msk.f32.vlgmr.msra.gmra.mxu0 %vm67_vm0, %v1874_v60 }
 0x3f9   :  { %897 = vmatpush1.msra.mxu0 %v1738_v35  ;;  %944 = vmatprep.mubr.f32.mxu0 %v1591_v0 }
 0x3fa   :  { %898 = vmatprep.subr.mxu0 %v1742_v36 }
 0x3fb   :  { %899 = vmatpush1.msra.mxu0 %v1746_v37 }
 0x3fc   :  { %900 = vmatprep.subr.mxu0 %v1753_v39 }
 0x3fd   :  { %901 = vmatpush1.msra.mxu0 %v1756_v40 }
 0x3fe   :  { %902 = vmatprep.subr.mxu0 %v1761_v41 }
 0x3ff   :  { %903 = vmatpush1.msra.mxu0 %v1765_v42 }
 0x400   :  { %904 = vmatprep.subr.mxu0 %v1768_v43 }
 0x401   :  { %905 = vmatpush1.msra.mxu0 %v1772_v44 }
 0x402   :  { %906 = vmatprep.subr.mxu0 %v1776_v45 }
 0x403   :  { %907 = vmatpush1.msra.mxu0 %v1780_v46 }
 0x404   :  { %908 = vmatprep.subr.mxu0 %v1784_v47 }
 0x405   :  { %909 = vmatpush1.msra.mxu0 %v1788_v48 }
 0x406   :  { %910 = vmatprep.subr.mxu0 %v1792_v49 }
 0x407   :  { %911 = vmatpush1.msra.mxu0 %v1796_v50 }
 0x408   :  { %1140 = vmatprep.subr.mxu0 %v1736_v34 }
 0x4b8   :  { %v702_v61 = vpop.f32.mrf.mxu0 }
 0x4ba   :  { %v704_v62 = vpop.f32.mrf.mxu0 }
 0x4bb   :  { %v709_v2 = vcombine.low %v702_v61, %v704_v62 }
 0x4bd   :  { %v716_v4 = vrot.slane %v709_v2, %v1835_v1 }
 0x4bf   :  { %v718_v6 = vadd.f32 %v716_v4, %v632_v5 }
 0x4c1   :  { %729 = vrot.lane.b32.xlu1 %v718_v6, %s1593_s4  ;;  %v1422_v7 = vmul.f32 -1.442695, %v718_v6  ;;  %v726_v8 = vrot.slane %v718_v6, 2 }
 0x4c3   :  { %1472 = vpow2.f32 %v1422_v7 }
 0x4c4   :  { %1474 = vtanh.f32 %v726_v8 }
 0x4d0   :  { %v1473_v9 = vpop.eup %1472 }
 0x4d1   :  { %v722_v10 = vadd.f32 1.0, %v1473_v9  ;;  %v1475_v11 = vpop.eup %1474 }
 0x4d3   :  { %1476 = vrcp.f32 %v722_v10 }
 0x4e0   :  { %v1477_v12 = vpop.eup %1476 }
 0x4e1   :  { %v740_v13 = vmul.f32 %v1477_v12, %v1475_v11  ;;  %v739_v14 = vmul.f32 %v1477_v12, %v623_v38  ;;  %v874_v11 = vld [vmem:[#allocation2 + $0x10] sm:$0xf] }
 0x4e3   :  { %742 = vrot.lane.b32.xlu0 %v740_v13, %s1593_s4  ;;  %v875_v13 = vld [vmem:[#allocation3 + $0xc] sm:$0xf] }
 0x533   :  { %v730_v19 = vpop.permute.xlu1 %729 }
 0x534   :  { %v731_v20 = vrot.slane %v730_v19, 2 }
 0x536   :  { %v1423_v21 = vmul.f32 -1.442695, %v731_v20 }
 0x555   :  { %v743_v15 = vpop.permute.xlu0 %742 }
 0x556   :  { %v745_v17 = vadd.f32 %v743_v15, %v739_v14  ;;  %v876_v15 = vadd.f32 %v875_v13, %v874_v11 }
 0x558   :  { %1478 = vtanh.f32 %v745_v17 }
 0x559   :  { %1480 = vpow2.f32 %v1423_v21 }
 0x565   :  { %v1479_v18 = vpop.eup %1478 }
 0x566   :  { %748 = vrot.lane.b32.xlu0 %v1479_v18, %s1593_s4  ;;  %v1481_v22 = vpop.eup %1480 }
 0x567   :  { %v736_v23 = vadd.f32 1.0, %v1481_v22 }
 0x569   :  { %1482 = vrcp.f32 %v736_v23 }
 0x576   :  { %v1483_v24 = vpop.eup %1482 }
 0x5d8   :  { %v749_v25 = vpop.permute.xlu0 %748 }
 0x5d9   :  { %v1899_v26 = vmul.f32 %v1483_v24, %v749_v25 }
 0x5db   :  { %1424 = vmatmul.mubr.msk.f32.vlgmr.msra.gmra.mxu1 %vm67_vm0, %v1899_v26 }
 0x5dc   :  { %1019 = vmatpush1.msra.mxu1 %v1738_v35  ;;  %1066 = vmatprep.mubr.f32.mxu1 %v1591_v0 }
 0x5dd   :  { %1020 = vmatprep.subr.mxu1 %v1742_v36 }
 0x5de   :  { %1021 = vmatpush1.msra.mxu1 %v1746_v37 }
 0x5df   :  { %1022 = vmatprep.subr.mxu1 %v1753_v39 }
 0x5e0   :  { %1023 = vmatpush1.msra.mxu1 %v1756_v40 }
 0x5e1   :  { %1024 = vmatprep.subr.mxu1 %v1761_v41 }
 0x5e2   :  { %1025 = vmatpush1.msra.mxu1 %v1765_v42 }
 0x5e3   :  { %1026 = vmatprep.subr.mxu1 %v1768_v43 }
 0x5e4   :  { %1027 = vmatpush1.msra.mxu1 %v1772_v44 }
 0x5e5   :  { %1028 = vmatprep.subr.mxu1 %v1776_v45 }
 0x5e6   :  { %1029 = vmatpush1.msra.mxu1 %v1780_v46 }
 0x5e7   :  { %1030 = vmatprep.subr.mxu1 %v1784_v47 }
 0x5e8   :  { %1031 = vmatpush1.msra.mxu1 %v1788_v48 }
 0x5e9   :  { %1032 = vmatprep.subr.mxu1 %v1792_v49 }
 0x5ea   :  { %1033 = vmatpush1.msra.mxu1 %v1796_v50 }
 0x5eb   :  { %1262 = vmatprep.subr.mxu1 %v1736_v34 }
 0x69b   :  { %v824_v27 = vpop.f32.mrf.mxu1 }
 0x69d   :  { %v826_v28 = vpop.f32.mrf.mxu1 }
 0x69e   :  { %v831_v30 = vcombine.low %v824_v27, %v826_v28 }
 0x6a0   :  { %v838_v32 = vrot.slane %v831_v30, %v1835_v1 }
 0x6a2   :  { %v840_v38 = vadd.f32 %v838_v32, %v754_v33 }
 0x6a4   :  { %851 = vrot.lane.b32.xlu0 %v840_v38, %s1593_s4  ;;  %v1425_v52 = vmul.f32 -1.442695, %v840_v38  ;;  %v848_v53 = vrot.slane %v840_v38, 2 }
 0x6a6   :  { %1484 = vpow2.f32 %v1425_v52  ;;  %v1946_v52 = vand.u32 127, %v57_v51 }
 0x6a7   :  { %1486 = vtanh.f32 %v848_v53 }
 0x6a8   :  { %vm1366_vm1 = vcmp.lt.s32.totalorder %v1946_v52, 32 }
 0x6b3   :  { %v1485_v54 = vpop.eup %1484 }
 0x6b4   :  { %v844_v55 = vadd.f32 1.0, %v1485_v54  ;;  %v1487_v56 = vpop.eup %1486 }
 0x6b6   :  { %1488 = vrcp.f32 %v844_v55 }
 0x6c3   :  { %v1489_v34 = vpop.eup %1488 }
 0x6c4   :  { %v862_v57 = vmul.f32 %v1489_v34, %v1487_v56  ;;  %v861_v58 = vmul.f32 %v1489_v34, %v745_v17 }
 0x6c6   :  { %864 = vrot.lane.b32.xlu1 %v862_v57, %s1593_s4 }
 0x716   :  { %v852_v63 = vpop.permute.xlu0 %851 }
 0x717   :  { %v853_v2 = vrot.slane %v852_v63, 2 }
 0x719   :  { %v1426_v3 = vmul.f32 -1.442695, %v853_v2 }
 0x738   :  { %v865_v59 = vpop.permute.xlu1 %864 }
 0x739   :  { %v867_v61 = vadd.f32 %v865_v59, %v861_v58 }
 0x73b   :  { %1490 = vtanh.f32 %v867_v61 }
 0x73c   :  { %1492 = vpow2.f32 %v1426_v3 }
 0x748   :  { %v1491_v62 = vpop.eup %1490 }
 0x749   :  { %870 = vrot.lane.b32.xlu1 %v1491_v62, %s1593_s4  ;;  %v1493_v4 = vpop.eup %1492 }
 0x74a   :  { %v858_v5 = vadd.f32 1.0, %v1493_v4 }
 0x74c   :  { %1494 = vrcp.f32 %v858_v5 }
 0x759   :  { %v1495_v6 = vpop.eup %1494 }
 0x7bb   :  { %v871_v7 = vpop.permute.xlu1 %870 }
 0x7bc   :  { %v873_v8 = vmul.f32 %v1495_v6, %v871_v7 }
 0x7be   :  { %1427 = vmatmul.mubr.msk.f32.vlgmr.msra.gmra.mxu0 %vm67_vm0, %v873_v8 }
 0x7bf   :  { %1141 = vmatpush1.msra.mxu0 %v1738_v35  ;;  %1188 = vmatprep.mubr.f32.mxu0 %v1591_v0 }
 0x7c0   :  { %1142 = vmatprep.subr.mxu0 %v1742_v36 }
 0x7c1   :  { %1143 = vmatpush1.msra.mxu0 %v1746_v37 }
 0x7c2   :  { %1144 = vmatprep.subr.mxu0 %v1753_v39 }
 0x7c3   :  { %1145 = vmatpush1.msra.mxu0 %v1756_v40 }
 0x7c4   :  { %1146 = vmatprep.subr.mxu0 %v1761_v41 }
 0x7c5   :  { %1147 = vmatpush1.msra.mxu0 %v1765_v42 }
 0x7c6   :  { %1148 = vmatprep.subr.mxu0 %v1768_v43 }
 0x7c7   :  { %1149 = vmatpush1.msra.mxu0 %v1772_v44 }
 0x7c8   :  { %1150 = vmatprep.subr.mxu0 %v1776_v45 }
 0x7c9   :  { %1151 = vmatpush1.msra.mxu0 %v1780_v46 }
 0x7ca   :  { %1152 = vmatprep.subr.mxu0 %v1784_v47 }
 0x7cb   :  { %1153 = vmatpush1.msra.mxu0 %v1788_v48 }
 0x7cc   :  { %1154 = vmatprep.subr.mxu0 %v1792_v49 }
 0x7cd   :  { %1155 = vmatpush1.msra.mxu0 %v1796_v50 }
 0x87e   :  { %v946_v9 = vpop.f32.mrf.mxu0 }
 0x880   :  { %v948_v10 = vpop.f32.mrf.mxu0 }
 0x881   :  { %v953_v12 = vcombine.low %v946_v9, %v948_v10  ;;  %v1118_v10 = vld [vmem:[#allocation2 + $0x18] sm:$0xf] }
 0x883   :  { %v960_v14 = vrot.slane %v953_v12, %v1835_v1  ;;  %v1119_v12 = vld [vmem:[#allocation3 + $0x4] sm:$0xf] }
 0x885   :  { %v962_v17 = vadd.f32 %v960_v14, %v876_v15  ;;  %v1120_v14 = vadd.f32 %v1119_v12, %v1118_v10 }
 0x887   :  { %973 = vrot.lane.b32.xlu1 %v962_v17, %s1593_s4  ;;  %v1428_v18 = vmul.f32 -1.442695, %v962_v17  ;;  %v970_v19 = vrot.slane %v962_v17, 2 }
 0x889   :  { %1496 = vpow2.f32 %v1428_v18 }
 0x88a   :  { %1498 = vtanh.f32 %v970_v19 }
 0x896   :  { %v1497_v20 = vpop.eup %1496 }
 0x897   :  { %v966_v21 = vadd.f32 1.0, %v1497_v20  ;;  %v1499_v22 = vpop.eup %1498 }
 0x899   :  { %1500 = vrcp.f32 %v966_v21 }
 0x8a6   :  { %v1501_v23 = vpop.eup %1500 }
 0x8a7   :  { %v984_v24 = vmul.f32 %v1501_v23, %v1499_v22  ;;  %v983_v25 = vmul.f32 %v1501_v23, %v867_v61 }
 0x8a9   :  { %986 = vrot.lane.b32.xlu0 %v984_v24, %s1593_s4 }
 0x8f9   :  { %v974_v30 = vpop.permute.xlu1 %973 }
 0x8fa   :  { %v975_v31 = vrot.slane %v974_v30, 2 }
 0x8fc   :  { %v1429_v32 = vmul.f32 -1.442695, %v975_v31 }
 0x91b   :  { %v987_v27 = vpop.permute.xlu0 %986 }
 0x91c   :  { %v989_v28 = vadd.f32 %v987_v27, %v983_v25 }
 0x91e   :  { %1502 = vtanh.f32 %v989_v28 }
 0x91f   :  { %1504 = vpow2.f32 %v1429_v32 }
 0x92b   :  { %v1503_v29 = vpop.eup %1502 }
 0x92c   :  { %992 = vrot.lane.b32.xlu0 %v1503_v29, %s1593_s4  ;;  %v1505_v33 = vpop.eup %1504 }
 0x92d   :  { %v980_v38 = vadd.f32 1.0, %v1505_v33 }
 0x92f   :  { %1506 = vrcp.f32 %v980_v38 }
 0x93c   :  { %v1507_v53 = vpop.eup %1506 }
 0x99e   :  { %v993_v54 = vpop.permute.xlu0 %992 }
 0x99f   :  { %v995_v55 = vmul.f32 %v1507_v53, %v993_v54 }
 0x9a1   :  { %v1370_v56 = vsel %vm1366_vm1, %v873_v8, %v995_v55  ;;  %v1371_v34 = vsel %vm1366_vm1, %v995_v55, %v873_v8  ;;  %1430 = vmatmul.mubr.msk.f32.vlgmr.msra.gmra.mxu1 %vm67_vm0, %v995_v55 }
 0x9a2   :  { %1378 = vst.msk [vmem:[#allocation7 + $0x6] sm:$0x3] %vm1362_vm2, %v1370_v56  ;;  %1379 = vst.msk [vmem:[#allocation7 + $0x8] sm:$0x3] %vm1362_vm2, %v1371_v34  ;;  %1263 = vmatpush1.msra.mxu1 %v1738_v35  ;;  %1310 = vmatprep.mubr.f32.mxu1 %v1591_v0 }
 0x9a3   :  { %1264 = vmatprep.subr.mxu1 %v1742_v36  ;;  %v996_v36 = vld [vmem:[#allocation2 + $0x14] sm:$0xf] }
 0x9a4   :  { %1265 = vmatpush1.msra.mxu1 %v1746_v37 }
 0x9a5   :  { %1266 = vmatprep.subr.mxu1 %v1753_v39  ;;  %v997_v39 = vld [vmem:[#allocation3 + $0x8] sm:$0xf] }
 0x9a6   :  { %1267 = vmatpush1.msra.mxu1 %v1756_v40 }
 0x9a7   :  { %1268 = vmatprep.subr.mxu1 %v1761_v41  ;;  %v998_v41 = vadd.f32 %v997_v39, %v996_v36  ;;  %v1241_v36 = vld [vmem:[#allocation3] sm:$0xf] }
 0x9a8   :  { %1269 = vmatpush1.msra.mxu1 %v1765_v42 }
 0x9a9   :  { %1270 = vmatprep.subr.mxu1 %v1768_v43 }
 0x9aa   :  { %1271 = vmatpush1.msra.mxu1 %v1772_v44 }
 0x9ab   :  { %1272 = vmatprep.subr.mxu1 %v1776_v45 }
 0x9ac   :  { %1273 = vmatpush1.msra.mxu1 %v1780_v46 }
 0x9ad   :  { %1274 = vmatprep.subr.mxu1 %v1784_v47 }
 0x9ae   :  { %1275 = vmatpush1.msra.mxu1 %v1788_v48 }
 0x9af   :  { %1276 = vmatprep.subr.mxu1 %v1792_v49 }
 0x9b0   :  { %1277 = vmatpush1.msra.mxu1 %v1796_v50 }
 0xa61   :  { %v1068_v0 = vpop.f32.mrf.mxu1 }
 0xa63   :  { %v1070_v35 = vpop.f32.mrf.mxu1 }
 0xa64   :  { %v1075_v37 = vcombine.low %v1068_v0, %v1070_v35  ;;  %v1240_v0 = vld [vmem:[#allocation2 + $0x1c] sm:$0xf] }
 0xa65   :  { %v1242_v39 = vadd.f32 %v1241_v36, %v1240_v0 }
 0xa66   :  { %v1082_v40 = vrot.slane %v1075_v37, %v1835_v1 }
 0xa68   :  { %v1084_v42 = vadd.f32 %v1082_v40, %v998_v41 }
 0xa6a   :  { %1095 = vrot.lane.b32.xlu0 %v1084_v42, %s1593_s4  ;;  %v1431_v43 = vmul.f32 -1.442695, %v1084_v42  ;;  %v1092_v44 = vrot.slane %v1084_v42, 2 }
 0xa6c   :  { %1508 = vpow2.f32 %v1431_v43 }
 0xa6d   :  { %1510 = vtanh.f32 %v1092_v44 }
 0xa79   :  { %v1509_v45 = vpop.eup %1508 }
 0xa7a   :  { %v1088_v46 = vadd.f32 1.0, %v1509_v45  ;;  %v1511_v47 = vpop.eup %1510 }
 0xa7c   :  { %1512 = vrcp.f32 %v1088_v46 }
 0xa89   :  { %v1513_v48 = vpop.eup %1512 }
 0xa8a   :  { %v1106_v49 = vmul.f32 %v1513_v48, %v1511_v47  ;;  %v1105_v50 = vmul.f32 %v1513_v48, %v989_v28 }
 0xa8c   :  { %1108 = vrot.lane.b32.xlu1 %v1106_v49, %s1593_s4 }
 0xadc   :  { %v1096_v59 = vpop.permute.xlu0 %1095 }
 0xadd   :  { %v1097_v61 = vrot.slane %v1096_v59, 2 }
 0xadf   :  { %v1432_v62 = vmul.f32 -1.442695, %v1097_v61 }
 0xafe   :  { %v1109_v51 = vpop.permute.xlu1 %1108 }
 0xaff   :  { %v1111_v57 = vadd.f32 %v1109_v51, %v1105_v50 }
 0xb01   :  { %1514 = vtanh.f32 %v1111_v57 }
 0xb02   :  { %1516 = vpow2.f32 %v1432_v62 }
 0xb0e   :  { %v1515_v58 = vpop.eup %1514 }
 0xb0f   :  { %1114 = vrot.lane.b32.xlu1 %v1515_v58, %s1593_s4  ;;  %v1517_v63 = vpop.eup %1516 }
 0xb10   :  { %v1102_v2 = vadd.f32 1.0, %v1517_v63 }
 0xb12   :  { %1518 = vrcp.f32 %v1102_v2 }
 0xb1f   :  { %v1519_v3 = vpop.eup %1518 }
 0xb81   :  { %v1115_v4 = vpop.permute.xlu1 %1114 }
 0xb82   :  { %v1117_v5 = vmul.f32 %v1519_v3, %v1115_v4 }
 0xb84   :  { %v1369_v6 = vsel %vm1366_vm1, %v1899_v26, %v1117_v5  ;;  %v1372_v7 = vsel %vm1366_vm1, %v1117_v5, %v1899_v26  ;;  %1433 = vmatmul.mubr.msk.f32.vlgmr.msra.gmra.mxu0 %vm67_vm0, %v1117_v5 }
 0xb85   :  { %1377 = vst.msk [vmem:[#allocation7 + $0x4] sm:$0x3] %vm1362_vm2, %v1369_v6  ;;  %1380 = vst.msk [vmem:[#allocation7 + $0xa] sm:$0x3] %vm1362_vm2, %v1372_v7 }
 0xc44   :  { %v1190_v8 = vpop.f32.mrf.mxu0 }
 0xc46   :  { %v1192_v9 = vpop.f32.mrf.mxu0 }
 0xc47   :  { %v1197_v11 = vcombine.low %v1190_v8, %v1192_v9 }
 0xc49   :  { %v1204_v13 = vrot.slane %v1197_v11, %v1835_v1 }
 0xc4b   :  { %v1206_v15 = vadd.f32 %v1204_v13, %v1120_v14 }
 0xc4d   :  { %1217 = vrot.lane.b32.xlu1 %v1206_v15, %s1593_s4  ;;  %v1434_v17 = vmul.f32 -1.442695, %v1206_v15  ;;  %v1214_v26 = vrot.slane %v1206_v15, 2 }
 0xc4f   :  { %1520 = vpow2.f32 %v1434_v17 }
 0xc50   :  { %1522 = vtanh.f32 %v1214_v26 }
 0xc5c   :  { %v1521_v18 = vpop.eup %1520 }
 0xc5d   :  { %v1210_v19 = vadd.f32 1.0, %v1521_v18  ;;  %v1523_v20 = vpop.eup %1522 }
 0xc5f   :  { %1524 = vrcp.f32 %v1210_v19 }
 0xc6c   :  { %v1525_v21 = vpop.eup %1524 }
 0xc6d   :  { %v1228_v22 = vmul.f32 %v1525_v21, %v1523_v20  ;;  %v1227_v23 = vmul.f32 %v1525_v21, %v1111_v57 }
 0xc6f   :  { %1230 = vrot.lane.b32.xlu0 %v1228_v22, %s1593_s4 }
 0xcbf   :  { %v1218_v28 = vpop.permute.xlu1 %1217 }
 0xcc0   :  { %v1219_v29 = vrot.slane %v1218_v28, 2 }
 0xcc2   :  { %v1435_v30 = vmul.f32 -1.442695, %v1219_v29 }
 0xce1   :  { %v1231_v24 = vpop.permute.xlu0 %1230 }
 0xce2   :  { %v1233_v25 = vadd.f32 %v1231_v24, %v1227_v23 }
 0xce4   :  { %1526 = vtanh.f32 %v1233_v25 }
 0xce5   :  { %1528 = vpow2.f32 %v1435_v30 }
 0xcf1   :  { %v1527_v27 = vpop.eup %1526 }
 0xcf2   :  { %1236 = vrot.lane.b32.xlu0 %v1527_v27, %s1593_s4  ;;  %v1529_v31 = vpop.eup %1528 }
 0xcf3   :  { %v1224_v32 = vadd.f32 1.0, %v1529_v31 }
 0xcf5   :  { %1530 = vrcp.f32 %v1224_v32 }
 0xd02   :  { %v1531_v33 = vpop.eup %1530 }
 0xd64   :  { %v1237_v38 = vpop.permute.xlu0 %1236 }
 0xd65   :  { %v1239_v53 = vmul.f32 %v1531_v33, %v1237_v38 }
 0xd67   :  { %v1368_v54 = vsel %vm1366_vm1, %v1874_v60, %v1239_v53  ;;  %v1373_v55 = vsel %vm1366_vm1, %v1239_v53, %v1874_v60  ;;  %1436 = vmatmul.mubr.msk.f32.vlgmr.msra.gmra.mxu1 %vm67_vm0, %v1239_v53 }
 0xd68   :  { %1376 = vst.msk [vmem:[#allocation7 + $0x2] sm:$0x3] %vm1362_vm2, %v1368_v54  ;;  %1381 = vst.msk [vmem:[#allocation7 + $0xc] sm:$0x3] %vm1362_vm2, %v1373_v55 }
 0xe27   :  { %v1312_v56 = vpop.f32.mrf.mxu1 }
 0xe29   :  { %v1314_v34 = vpop.f32.mrf.mxu1 }
 0xe2a   :  { %v1319_v35 = vcombine.low %v1312_v56, %v1314_v34 }
 0xe2c   :  { %v1326_v37 = vrot.slane %v1319_v35, %v1835_v1 }
 0xe2e   :  { %v1328_v40 = vadd.f32 %v1326_v37, %v1242_v39 }
 0xe30   :  { %1339 = vrot.lane.b32.xlu0 %v1328_v40, %s1593_s4  ;;  %v1437_v41 = vmul.f32 -1.442695, %v1328_v40  ;;  %v1336_v60 = vrot.slane %v1328_v40, 2 }
 0xe32   :  { %1532 = vpow2.f32 %v1437_v41 }
 0xe33   :  { %1534 = vtanh.f32 %v1336_v60 }
 0xe3f   :  { %v1533_v42 = vpop.eup %1532 }
 0xe40   :  { %v1332_v43 = vadd.f32 1.0, %v1533_v42  ;;  %v1535_v44 = vpop.eup %1534 }
 0xe42   :  { %1536 = vrcp.f32 %v1332_v43 }
 0xe4f   :  { %v1537_v45 = vpop.eup %1536 }
 0xe50   :  { %v1350_v46 = vmul.f32 %v1537_v45, %v1535_v44  ;;  %v1349_v47 = vmul.f32 %v1537_v45, %v1233_v25 }
 0xe52   :  { %1352 = vrot.lane.b32.xlu1 %v1350_v46, %s1593_s4 }
 0xea2   :  { %v1340_v50 = vpop.permute.xlu0 %1339 }
 0xea3   :  { %v1341_v51 = vrot.slane %v1340_v50, 2 }
 0xea5   :  { %v1438_v57 = vmul.f32 -1.442695, %v1341_v51 }
 0xec4   :  { %v1353_v48 = vpop.permute.xlu1 %1352 }
 0xec5   :  { %v1355_v49 = vadd.f32 %v1353_v48, %v1349_v47 }
 0xec7   :  { %1538 = vtanh.f32 %v1355_v49 }
 0xec8   :  { %1540 = vpow2.f32 %v1438_v57 }
 0xed4   :  { %v1539_v1 = vpop.eup %1538 }
 0xed5   :  { %1358 = vrot.lane.b32.xlu1 %v1539_v1, %s1593_s4  ;;  %v1541_v58 = vpop.eup %1540 }
 0xed6   :  { %v1346_v59 = vadd.f32 1.0, %v1541_v58 }
 0xed8   :  { %1542 = vrcp.f32 %v1346_v59 }
 0xee5   :  { %v1543_v61 = vpop.eup %1542 }
 0xf47   :  { %v1359_v62 = vpop.permute.xlu1 %1358 }
 0xf48   :  { %v1361_v63 = vmul.f32 %v1543_v61, %v1359_v62 }
 0xf4a   :  { %1363 = vst.msk [vmem:[%s2023_s6] sm:$0x3] %vm1362_vm2, %v1361_v63  ;;  %v1367_v2 = vsel %vm1366_vm1, %v1849_v16, %v1361_v63  ;;  %v1374_v3 = vsel %vm1366_vm1, %v1361_v63, %v1849_v16 }
 0xf4b   :  { %1375 = vst.msk [vmem:[#allocation7] sm:$0x3] %vm1362_vm2, %v1367_v2  ;;  %1382 = vst.msk [vmem:[#allocation7 + $0xe] sm:$0x3] %vm1362_vm2, %v1374_v3 }
 0xf4c   :  { %1575 = shalt.err (!%p1572_p9)
}
 0xf4d   :  { %s1595_s6 = smov 32   ;;  %s1596_s25 = smov 2  }
 0xf4e   :  { %1394 = dma.vmem_to_hbm [thread:$0]  %s1389_s21, 256, %s2022_s5, [#allocation6], %s1595_s6, %s1595_s6, %s1596_s25  }
 0xf4f   :  { %1586 = dma.done.wait [#allocation6], 256  }
 0xf50   :  { %1587 = vsyncadd [#allocation6], 4294967040 }
 0xf51   :  { %1402 = vsyncpa [#allocation5], 1 }
 0xf52   :  { %1403 = vsyncpa [#allocation6], 1 }

// kernel: bilstm_forward.5
= control target key start
LH: loop header
LB: loop body
LE: loop exit
PB: predicated region body
PF: predicated region fallthrough
CT: control target
= control target key end

     0   :  { %12 = vsyncpa [#allocation5], 0  ;;  %s1965_s0 = inlined_call_operand.vmem [shape: f32[16,16], index: 0, kind: input, shape index: {}]   ;;  %s1966_s1 = inlined_call_operand.vmem [shape: f32[16,256], index: 1, kind: input, shape index: {}]   ;;  %s1967_s2 = inlined_call_operand.hbm [shape: f32[16,256], index: 2, kind: input, shape index: {}]   ;;  %s1968_s3 = inlined_call_operand.hbm [shape: f32[64,256], index: 3, kind: input, shape index: {}]   ;;  %s1969_s4 = inlined_call_operand.hbm [shape: f32[1,256], index: 4, kind: input, shape index: {}]   ;;  %s1970_s5 = inlined_call_operand.vmem [shape: f32[8,2,64], index: 5, kind: output, shape index: {0}]   ;;  %s1971_s6 = inlined_call_operand.vmem [shape: f32[2,64], index: 6, kind: output, shape index: {1}]  }
   0x1   :  { %13 = vsyncpa [#allocation7], 0  ;;  %s1597_s21 = smov [#allocation6]   ;;  %s1598_s23 = smov [#allocation4]  }
   0x2   :  { %s35_s22 = sshll.u32 %s1597_s21, 4  ;;  %s23_s24 = sshll.u32 %s1598_s23, 4  ;;  %s36_s22 = int_to_ptr.vmem [resolvable:$true] %s35_s22  ;;  %s24_s24 = int_to_ptr.vmem [resolvable:$true] %s23_s24 }
   0x3   :  { %s1541_s25 = scalar_lea.vmem %s36_s22, 2048  ;;  %p1546_p1 = scmp.lt.s32.totalorder %s36_s22, %s36_s22 }
   0x4   :  { %p1542_p0 = scmp.ne.s32.totalorder %s36_s22, %s1541_s25  ;;  %p1547_p2 = scmp.lt.s32.totalorder %s1541_s25, %s1541_s25 }
   0x6   :  { %p1548_p3 = por %p1547_p2, %p1546_p1 }
   0x8   :  { %p1549_p4 = pnand %p1548_p3, %p1542_p0 }
   0xa   :  { %1552 = shalt.err (!%p1549_p4)
}
   0xb   :  { %s1599_s26 = smov 256   ;;  %s1600_s27 = smov 16  }
   0xc   :  { %41 = dma.hbm_to_vmem [thread:$0]  %s1968_s3, 2048, %s36_s22, [#allocation7], %s1599_s26, %s1599_s26, %s1600_s27  }
   0xd   :  { %s1561_s30 = scalar_lea.vmem %s24_s24, 512  ;;  %p1566_p6 = scmp.lt.s32.totalorder %s24_s24, %s24_s24 }
   0xe   :  { %p1562_p5 = scmp.ne.s32.totalorder %s24_s24, %s1561_s30  ;;  %p1567_p7 = scmp.lt.s32.totalorder %s1561_s30, %s1561_s30 }
  0x10   :  { %p1568_p8 = por %p1567_p7, %p1566_p6 }
  0x12   :  { %p1569_p9 = pnand %p1568_p8, %p1562_p5 }
  0x14   :  { %1572 = shalt.err (!%p1569_p9)
}
  0x15   :  { %29 = dma.hbm_to_vmem [thread:$0]  %s1967_s2, 512, %s24_s24, [#allocation5], %s1599_s26, %s1599_s26, %s1600_s27  }
  0x16   :  { %s1601_s9 = smov [#allocation8]  }
  0x17   :  { %s48_s10 = sshll.u32 %s1601_s9, 4  ;;  %s49_s10 = int_to_ptr.vmem [resolvable:$true] %s48_s10 }
  0x18   :  { %s1581_s11 = scalar_lea.vmem %s49_s10, 32  ;;  %p1586_p11 = scmp.lt.s32.totalorder %s49_s10, %s49_s10 }
  0x19   :  { %p1582_p10 = scmp.ne.s32.totalorder %s49_s10, %s1581_s11  ;;  %p1587_p12 = scmp.lt.s32.totalorder %s1581_s11, %s1581_s11 }
  0x1b   :  { %p1588_p13 = por %p1587_p12, %p1586_p11 }
  0x1d   :  { %p1589_p0 = pnand %p1588_p13, %p1582_p10 }
  0x1f   :  { %1592 = shalt.err (!%p1589_p0)
}
  0x20   :  { %51 = dma.hbm_to_vmem [thread:$0]  %s1969_s4, 32, %s49_s10, [#allocation7]  }
  0x21   :  { %1593 = dma.done.wait [#allocation5], 512  }
  0x22   :  { %1594 = vsyncadd [#allocation5], 4294966784 }
  0x23   :  { %1595 = dma.done.wait [#allocation7], 2080  }
  0x24   :  { %1596 = vsyncadd [#allocation7], 4294965216  ;;  %v1602_v0 = vmov 0.0   ;;  %v66_v1 = vld [vmem:[%s1966_s1 + $0x18] sm:$0xff]  ;;  %v65_v3 = vld [vmem:[%s1966_s1 + $0x10] sm:$0xff]  ;;  %vm79_vm0 = vcmask 130048   ;;  %v69_v27 = vlaneseq }
  0x25   :  { %150 = vmatprep.mubr.f32.mxu0 %v1602_v0  ;;  %231 = vmatprep.mubr.f32.mxu1 %v1602_v0  ;;  %v166_v2 = vld [vmem:[#allocation4 + $0x18] sm:$0xff]  ;;  %v165_v4 = vld [vmem:[#allocation4 + $0x10] sm:$0xff]  ;;  %v64_v5 = vld [vmem:[%s1966_s1 + $0x8] sm:$0xff]  ;;  %v1603_v30 = vmov 1983009808   ;;  %vm389_vm1 = vcmask 523264  }
  0x26   :  { %114 = vmatprep.subr.mxu0 %v66_v1  ;;  %195 = vmatprep.subr.mxu1 %v166_v2  ;;  %v164_v6 = vld [vmem:[#allocation4 + $0x8] sm:$0xff]  ;;  %v63_v7 = vld [vmem:[%s1966_s1] sm:$0xff]  ;;  %v1666_v10 = vld [vmem:[#allocation6 + $0x78] sm:$0xff]  ;;  %v70_v28 = vshrl.u32 %v69_v27, 7  ;;  %v248_v31 = vunpack.c.l.s4 %v1603_v30  ;;  %vm1363_vm3 = vcmask 517120  }
  0x27   :  { %115 = vmatpush1.msra.mxu0 %v65_v3  ;;  %196 = vmatpush1.msra.mxu1 %v165_v4  ;;  %v163_v8 = vld [vmem:[#allocation4] sm:$0xff]  ;;  %v1668_v11 = vld [vmem:[#allocation6 + $0x70] sm:$0xff]  ;;  %v1672_v12 = vld [vmem:[#allocation6 + $0x68] sm:$0xff] }
  0x28   :  { %v61_v9 = vld [vmem:[%s1965_s0] sm:$0xff]  ;;  %116 = vmatprep.subr.mxu0 %v64_v5  ;;  %197 = vmatprep.subr.mxu1 %v164_v6  ;;  %v62_v14 = vld [vmem:[%s1965_s0 + $0x8] sm:$0xff]  ;;  %v1683_v15 = vld [vmem:[#allocation6 + $0x58] sm:$0xff]  ;;  %v71_v29 = vsub.s32 0, %v70_v28  ;;  %v75_v33 = vsub.s32 1, %v70_v28  ;;  %v249_v35 = vunpack.c.0.s8 %v248_v31  ;;  %s1604_s0 = smov 64  }
  0x29   :  { %117 = vmatpush1.msra.mxu0 %v63_v7  ;;  %198 = vmatpush1.msra.mxu1 %v163_v8  ;;  %v1676_v13 = vld [vmem:[#allocation6 + $0x60] sm:$0xff]  ;;  %v1686_v16 = vld [vmem:[#allocation6 + $0x50] sm:$0xff]  ;;  %v1691_v17 = vld [vmem:[#allocation6 + $0x48] sm:$0xff] }
  0x2a   :  { %1394 = vmatmul.mubr.msk.f32.vlgmr.msra.gmra.mxu0 %vm79_vm0, %v61_v9  ;;  %1396 = vmatmul.mubr.msk.f32.vlgmr.msra.gmra.mxu1 %vm79_vm0, %v61_v9  ;;  %v1695_v18 = vld [vmem:[#allocation6 + $0x40] sm:$0xff]  ;;  %v1698_v19 = vld [vmem:[#allocation6 + $0x38] sm:$0xff]  ;;  %v1702_v20 = vld [vmem:[#allocation6 + $0x30] sm:$0xff]  ;;  %v1762_v40 = vsub.s32 %v249_v35, %v70_v28 }
  0x2b   :  { %409 = vmatprep.subr.mxu0 %v1666_v10  ;;  %156 = vmatprep.mubr.f32.mxu0 %v1602_v0  ;;  %v1706_v21 = vld [vmem:[#allocation6 + $0x28] sm:$0xff]  ;;  %v1710_v22 = vld [vmem:[#allocation6 + $0x20] sm:$0xff]  ;;  %v1714_v23 = vld [vmem:[#allocation6 + $0x18] sm:$0xff] }
  0x2c   :  { %410 = vmatpush1.msra.mxu0 %v1668_v11  ;;  %237 = vmatprep.mubr.f32.mxu1 %v1602_v0  ;;  %v1718_v24 = vld [vmem:[#allocation6 + $0x10] sm:$0xff]  ;;  %v1722_v25 = vld [vmem:[#allocation6 + $0x8] sm:$0xff]  ;;  %v1726_v26 = vld [vmem:[#allocation6] sm:$0xff] }
  0x2d   :  { %411 = vmatprep.subr.mxu0 %v1672_v12  ;;  %531 = vmatprep.subr.mxu1 %v1666_v10  ;;  %v67_v32 = vld [vmem:[#allocation8] sm:$0x3] }
  0x2e   :  { %412 = vmatpush1.msra.mxu0 %v1676_v13  ;;  %1397 = vmatmul.mubr.msk.f32.gmra.mxu1 %vm79_vm0, %v62_v14  ;;  %v72_v34 = vrot.slane %v67_v32, %v71_v29  ;;  %v76_v36 = vrot.slane %v67_v32, %v75_v33 }
  0x2f   :  { %1395 = vmatmul.mubr.msk.f32.gmra.mxu0 %vm79_vm0, %v62_v14  ;;  %413 = vmatprep.subr.mxu0 %v1683_v15 }
  0x30   :  { %414 = vmatpush1.msra.mxu0 %v1686_v16  ;;  %457 = vmatprep.mubr.f32.mxu0 %v1602_v0 }
  0x31   :  { %415 = vmatprep.subr.mxu0 %v1691_v17  ;;  %532 = vmatpush1.msra.mxu1 %v1668_v11 }
  0x32   :  { %416 = vmatpush1.msra.mxu0 %v1695_v18  ;;  %533 = vmatprep.subr.mxu1 %v1672_v12 }
  0x33   :  { %417 = vmatprep.subr.mxu0 %v1698_v19  ;;  %534 = vmatpush1.msra.mxu1 %v1676_v13 }
  0x34   :  { %418 = vmatpush1.msra.mxu0 %v1702_v20  ;;  %535 = vmatprep.subr.mxu1 %v1683_v15 }
  0x35   :  { %419 = vmatprep.subr.mxu0 %v1706_v21  ;;  %536 = vmatpush1.msra.mxu1 %v1686_v16 }
  0x36   :  { %420 = vmatpush1.msra.mxu0 %v1710_v22  ;;  %537 = vmatprep.subr.mxu1 %v1691_v17 }
  0x37   :  { %421 = vmatprep.subr.mxu0 %v1714_v23  ;;  %538 = vmatpush1.msra.mxu1 %v1695_v18 }
  0x38   :  { %422 = vmatpush1.msra.mxu0 %v1718_v24  ;;  %539 = vmatprep.subr.mxu1 %v1698_v19 }
  0x39   :  { %423 = vmatprep.subr.mxu0 %v1722_v25  ;;  %540 = vmatpush1.msra.mxu1 %v1702_v20 }
  0x3a   :  { %424 = vmatpush1.msra.mxu0 %v1726_v26  ;;  %541 = vmatprep.subr.mxu1 %v1706_v21 }
  0x3b   :  { %458 = vmatmul.mubr.f32.vlgmr.msra.gmra.mxu0 %v1602_v0  ;;  %542 = vmatpush1.msra.mxu1 %v1710_v22 }
  0x3c   :  { %543 = vmatprep.subr.mxu1 %v1714_v23  ;;  %579 = vmatprep.mubr.f32.mxu1 %v1602_v0 }
  0x3d   :  { %544 = vmatpush1.msra.mxu1 %v1718_v24  ;;  %653 = vmatprep.subr.mxu0 %v1666_v10 }
  0x3e   :  { %545 = vmatprep.subr.mxu1 %v1722_v25  ;;  %654 = vmatpush1.msra.mxu0 %v1668_v11 }
  0x3f   :  { %546 = vmatpush1.msra.mxu1 %v1726_v26  ;;  %655 = vmatprep.subr.mxu0 %v1672_v12 }
  0x40   :  { %656 = vmatpush1.msra.mxu0 %v1676_v13  ;;  %701 = vmatprep.mubr.f32.mxu0 %v1602_v0 }
  0x41   :  { %657 = vmatprep.subr.mxu0 %v1683_v15  ;;  %775 = vmatprep.subr.mxu1 %v1666_v10 }
  0x42   :  { %658 = vmatpush1.msra.mxu0 %v1686_v16 }
  0x43   :  { %659 = vmatprep.subr.mxu0 %v1691_v17 }
  0x44   :  { %660 = vmatpush1.msra.mxu0 %v1695_v18 }
  0x45   :  { %661 = vmatprep.subr.mxu0 %v1698_v19 }
  0x46   :  { %662 = vmatpush1.msra.mxu0 %v1702_v20 }
  0x47   :  { %663 = vmatprep.subr.mxu0 %v1706_v21 }
  0x48   :  { %664 = vmatpush1.msra.mxu0 %v1710_v22 }
  0x49   :  { %665 = vmatprep.subr.mxu0 %v1714_v23 }
  0x4a   :  { %666 = vmatpush1.msra.mxu0 %v1718_v24 }
  0x4b   :  { %667 = vmatprep.subr.mxu0 %v1722_v25 }
  0x4c   :  { %668 = vmatpush1.msra.mxu0 %v1726_v26 }
  0x4d   :  { %897 = vmatprep.subr.mxu0 %v1666_v10 }
  0xea   :  { %v152_v37 = vpop.f32.mrf.mxu0  ;;  %v233_v38 = vpop.f32.mrf.mxu1 }
  0xeb   :  { %v153_v39 = vadd.f32 %v152_v37, %v72_v34 }
  0xec   :  { %v154_v41 = vpop.f32.mrf.mxu0  ;;  %v235_v42 = vpop.f32.mrf.mxu1 }
  0xed   :  { %v155_v43 = vadd.f32 %v154_v41, %v76_v36  ;;  %v258_v44 = vcombine.low %v233_v38, %v235_v42  ;;  %v287_v45 = vcombine.high %v233_v38, %v235_v42 }
  0xee   :  { %v239_v46 = vpop.f32.mrf.mxu1 }
  0xef   :  { %v246_v47 = vcombine.low %v153_v39, %v155_v43  ;;  %v276_v48 = vcombine.high %v153_v39, %v155_v43  ;;  %v265_v49 = vrot.slane %v258_v44, %v1762_v40  ;;  %1399 = vst.sshfl [vmem:[#allocation3] sm:$0x33 pattern:$0x76325410] %v258_v44  ;;  %v294_v50 = vrot.slane %v287_v45, %v1762_v40  ;;  %v158_v51 = vpop.f32.mrf.mxu0 }
  0xf0   :  { %1401 = vst.sshfl [vmem:[#allocation3 + $0x8] sm:$0x33 pattern:$0x76325410] %v287_v45  ;;  %v159_v52 = vadd.f32 %v158_v51, %v72_v34  ;;  %v241_v53 = vpop.f32.mrf.mxu1 }
  0xf1   :  { %v253_v54 = vrot.slane %v246_v47, %v1762_v40  ;;  %1398 = vst.sshfl [vmem:[#allocation2] sm:$0x33 pattern:$0x76325410] %v246_v47  ;;  %v283_v55 = vrot.slane %v276_v48, %v1762_v40  ;;  %v272_v56 = vcombine.high %v265_v49, %v265_v49  ;;  %v302_v57 = vcombine.high %v294_v50, %v294_v50  ;;  %v160_v58 = vpop.f32.mrf.mxu0 }
  0xf2   :  { %1400 = vst.sshfl [vmem:[#allocation2 + $0x8] sm:$0x33 pattern:$0x76325410] %v276_v48  ;;  %v161_v59 = vadd.f32 %v160_v58, %v76_v36  ;;  %v321_v60 = vcombine.low %v239_v46, %v241_v53  ;;  %v351_v61 = vcombine.high %v239_v46, %v241_v53 }
  0xf3   :  { %v268_v62 = vcombine.high %v253_v54, %v253_v54  ;;  %v298_v63 = vcombine.high %v283_v55, %v283_v55  ;;  %275 = vst [vmem:[#allocation3 + $0x4] sm:$0xf] %v272_v56  ;;  %305 = vst [vmem:[#allocation3 + $0xc] sm:$0xf] %v302_v57 }
  0xf4   :  { %v308_v1 = vcombine.low %v159_v52, %v161_v59  ;;  %v340_v2 = vcombine.high %v159_v52, %v161_v59  ;;  %v328_v3 = vrot.slane %v321_v60, %v1762_v40  ;;  %1403 = vst.sshfl [vmem:[#allocation3 + $0x10] sm:$0x33 pattern:$0x76325410] %v321_v60  ;;  %v358_v4 = vrot.slane %v351_v61, %v1762_v40 }
  0xf5   :  { %1405 = vst.sshfl [vmem:[#allocation3 + $0x18] sm:$0x33 pattern:$0x76325410] %v351_v61  ;;  %271 = vst [vmem:[#allocation2 + $0x4] sm:$0xf] %v268_v62 }
  0xf6   :  { %301 = vst [vmem:[#allocation2 + $0xc] sm:$0xf] %v298_v63  ;;  %v315_v5 = vrot.slane %v308_v1, %v1762_v40  ;;  %1402 = vst.sshfl [vmem:[#allocation2 + $0x10] sm:$0x33 pattern:$0x76325410] %v308_v1  ;;  %v347_v6 = vrot.slane %v340_v2, %v1762_v40  ;;  %v336_v7 = vcombine.high %v328_v3, %v328_v3 }
  0xf7   :  { %1404 = vst.sshfl [vmem:[#allocation2 + $0x18] sm:$0x33 pattern:$0x76325410] %v340_v2  ;;  %v366_v8 = vcombine.high %v358_v4, %v358_v4 }
  0xf8   :  { %v332_v9 = vcombine.high %v315_v5, %v315_v5  ;;  %v362_v14 = vcombine.high %v347_v6, %v347_v6  ;;  %339 = vst [vmem:[#allocation3 + $0x14] sm:$0xf] %v336_v7  ;;  %v386_v31 = vld [vmem:[#allocation2] sm:$0xf] }
  0xf9   :  { %369 = vst [vmem:[#allocation3 + $0x1c] sm:$0xf] %v366_v8 }
  0xfa   :  { %335 = vst [vmem:[#allocation2 + $0x14] sm:$0xf] %v332_v9  ;;  %365 = vst [vmem:[#allocation2 + $0x1c] sm:$0xf] %v362_v14 }
  0xfb   :  { %v459_v28 = vpop.f32.mrf.mxu0 }
  0xfc   :  { %v509_v58 = vld [vmem:[#allocation2 + $0x4] sm:$0xf]  ;;  %v510_v60 = vld [vmem:[#allocation3 + $0x18] sm:$0xf] }
  0xfd   :  { %v461_v29 = vpop.f32.mrf.mxu0  ;;  %v511_v62 = vadd.f32 %v510_v60, %v509_v58 }
  0xfe   :  { %v466_v30 = vcombine.low %v459_v28, %v461_v29 }
 0x100   :  { %v387_v32 = vld [vmem:[#allocation3 + $0x1c] sm:$0xf]  ;;  %v473_v34 = vrot.slane %v466_v30, %v1762_v40 }
 0x101   :  { %v388_v33 = vadd.f32 %v387_v32, %v386_v31 }
 0x103   :  { %v475_v35 = vadd.f32 %v473_v34, %v388_v33 }
 0x105   :  { %v1406_v36 = vmul.f32 -1.442695, %v475_v35  ;;  %v483_v37 = vrot.slane %v475_v35, 2 }
 0x107   :  { %1437 = vpow2.f32 %v1406_v36 }
 0x108   :  { %1439 = vtanh.f32 %v483_v37 }
 0x114   :  { %v1438_v38 = vpop.eup %1437 }
 0x115   :  { %v479_v39 = vadd.f32 1.0, %v1438_v38  ;;  %v1440_v41 = vpop.eup %1439 }
 0x117   :  { %1441 = vrcp.f32 %v479_v39  ;;  %v632_v39 = vld [vmem:[#allocation3 + $0x14] sm:$0xf] }
 0x124   :  { %v1442_v42 = vpop.eup %1441 }
 0x125   :  { %v497_v43 = vmul.f32 %v1442_v42, %v1440_v41  ;;  %v496_v44 = vmul.f32 0.0, %v1442_v42  ;;  %v631_v42 = vld [vmem:[#allocation2 + $0x8] sm:$0xf] }
 0x127   :  { %499 = vrot.lane.b32.xlu0 %v497_v43, %s1604_s0 }
 0x12b   :  { %486 = vrot.lane.b32.xlu0 %v475_v35, %s1604_s0 }
 0x199   :  { %v500_v45 = vpop.permute.xlu0 %499 }
 0x19a   :  { %v502_v46 = vadd.f32 %v500_v45, %v496_v44  ;;  %v633_v44 = vadd.f32 %v632_v39, %v631_v42 }
 0x19c   :  { %1443 = vtanh.f32 %v502_v46 }
 0x19d   :  { %v487_v48 = vpop.permute.xlu0 %486 }
 0x19e   :  { %v488_v49 = vrot.slane %v487_v48, 2 }
 0x1a0   :  { %v1407_v50 = vmul.f32 -1.442695, %v488_v49 }
 0x1a2   :  { %1445 = vpow2.f32 %v1407_v50 }
 0x1a9   :  { %v1444_v47 = vpop.eup %1443 }
 0x1aa   :  { %505 = vrot.lane.b32.xlu1 %v1444_v47, %s1604_s0 }
 0x1af   :  { %v1446_v51 = vpop.eup %1445 }
 0x1b0   :  { %v493_v52 = vadd.f32 1.0, %v1446_v51 }
 0x1b2   :  { %1447 = vrcp.f32 %v493_v52 }
 0x1bf   :  { %v1448_v53 = vpop.eup %1447 }
 0x21c   :  { %v506_v54 = vpop.permute.xlu1 %505 }
 0x21d   :  { %v1776_v55 = vmul.f32 %v1448_v53, %v506_v54 }
 0x21f   :  { %1408 = vmatmul.mubr.msk.f32.vlgmr.msra.gmra.mxu1 %vm389_vm1, %v1776_v55 }
 0x220   :  { %776 = vmatpush1.msra.mxu1 %v1668_v11  ;;  %823 = vmatprep.mubr.f32.mxu1 %v1602_v0 }
 0x221   :  { %777 = vmatprep.subr.mxu1 %v1672_v12 }
 0x222   :  { %778 = vmatpush1.msra.mxu1 %v1676_v13 }
 0x223   :  { %779 = vmatprep.subr.mxu1 %v1683_v15 }
 0x224   :  { %780 = vmatpush1.msra.mxu1 %v1686_v16 }
 0x225   :  { %781 = vmatprep.subr.mxu1 %v1691_v17 }
 0x226   :  { %782 = vmatpush1.msra.mxu1 %v1695_v18 }
 0x227   :  { %783 = vmatprep.subr.mxu1 %v1698_v19 }
 0x228   :  { %784 = vmatpush1.msra.mxu1 %v1702_v20 }
 0x229   :  { %785 = vmatprep.subr.mxu1 %v1706_v21 }
 0x22a   :  { %786 = vmatpush1.msra.mxu1 %v1710_v22 }
 0x22b   :  { %787 = vmatprep.subr.mxu1 %v1714_v23 }
 0x22c   :  { %788 = vmatpush1.msra.mxu1 %v1718_v24 }
 0x22d   :  { %789 = vmatprep.subr.mxu1 %v1722_v25 }
 0x22e   :  { %790 = vmatpush1.msra.mxu1 %v1726_v26 }
 0x22f   :  { %1019 = vmatprep.subr.mxu1 %v1666_v10 }
 0x2df   :  { %v581_v56 = vpop.f32.mrf.mxu1 }
 0x2e1   :  { %v583_v57 = vpop.f32.mrf.mxu1 }
 0x2e2   :  { %v588_v59 = vcombine.low %v581_v56, %v583_v57 }
 0x2e4   :  { %v595_v61 = vrot.slane %v588_v59, %v1762_v40 }
 0x2e6   :  { %v597_v63 = vadd.f32 %v595_v61, %v511_v62 }
 0x2e8   :  { %608 = vrot.lane.b32.xlu0 %v597_v63, %s1604_s0  ;;  %v1409_v1 = vmul.f32 -1.442695, %v597_v63  ;;  %v605_v2 = vrot.slane %v597_v63, 2 }
 0x2ea   :  { %1449 = vpow2.f32 %v1409_v1 }
 0x2eb   :  { %1451 = vtanh.f32 %v605_v2 }
 0x2f7   :  { %v1450_v3 = vpop.eup %1449 }
 0x2f8   :  { %v601_v4 = vadd.f32 1.0, %v1450_v3  ;;  %v1452_v5 = vpop.eup %1451 }
 0x2fa   :  { %1453 = vrcp.f32 %v601_v4 }
 0x307   :  { %v1454_v6 = vpop.eup %1453 }
 0x308   :  { %v619_v7 = vmul.f32 %v1454_v6, %v1452_v5  ;;  %v618_v8 = vmul.f32 %v1454_v6, %v502_v46  ;;  %v753_v5 = vld [vmem:[#allocation2 + $0xc] sm:$0xf] }
 0x30a   :  { %621 = vrot.lane.b32.xlu1 %v619_v7, %s1604_s0  ;;  %v754_v7 = vld [vmem:[#allocation3 + $0x10] sm:$0xf] }
 0x35a   :  { %v609_v29 = vpop.permute.xlu0 %608 }
 0x35b   :  { %v610_v30 = vrot.slane %v609_v29, 2 }
 0x35d   :  { %v1410_v31 = vmul.f32 -1.442695, %v610_v30 }
 0x37c   :  { %v622_v9 = vpop.permute.xlu1 %621 }
 0x37d   :  { %v624_v14 = vadd.f32 %v622_v9, %v618_v8  ;;  %v755_v9 = vadd.f32 %v754_v7, %v753_v5 }
 0x37f   :  { %1455 = vtanh.f32 %v624_v14 }
 0x380   :  { %1457 = vpow2.f32 %v1410_v31 }
 0x38c   :  { %v1456_v28 = vpop.eup %1455 }
 0x38d   :  { %627 = vrot.lane.b32.xlu1 %v1456_v28, %s1604_s0  ;;  %v1458_v32 = vpop.eup %1457 }
 0x38e   :  { %v615_v33 = vadd.f32 1.0, %v1458_v32 }
 0x390   :  { %1459 = vrcp.f32 %v615_v33 }
 0x39d   :  { %v1460_v34 = vpop.eup %1459 }
 0x3ff   :  { %v628_v35 = vpop.permute.xlu1 %627 }
 0x400   :  { %v1801_v36 = vmul.f32 %v1460_v34, %v628_v35 }
 0x402   :  { %1411 = vmatmul.mubr.msk.f32.vlgmr.msra.gmra.mxu0 %vm389_vm1, %v1801_v36 }
 0x403   :  { %898 = vmatpush1.msra.mxu0 %v1668_v11  ;;  %945 = vmatprep.mubr.f32.mxu0 %v1602_v0 }
 0x404   :  { %899 = vmatprep.subr.mxu0 %v1672_v12 }
 0x405   :  { %900 = vmatpush1.msra.mxu0 %v1676_v13 }
 0x406   :  { %901 = vmatprep.subr.mxu0 %v1683_v15 }
 0x407   :  { %902 = vmatpush1.msra.mxu0 %v1686_v16 }
 0x408   :  { %903 = vmatprep.subr.mxu0 %v1691_v17 }
 0x409   :  { %904 = vmatpush1.msra.mxu0 %v1695_v18 }
 0x40a   :  { %905 = vmatprep.subr.mxu0 %v1698_v19 }
 0x40b   :  { %906 = vmatpush1.msra.mxu0 %v1702_v20 }
 0x40c   :  { %907 = vmatprep.subr.mxu0 %v1706_v21 }
 0x40d   :  { %908 = vmatpush1.msra.mxu0 %v1710_v22 }
 0x40e   :  { %909 = vmatprep.subr.mxu0 %v1714_v23 }
 0x40f   :  { %910 = vmatpush1.msra.mxu0 %v1718_v24 }
 0x410   :  { %911 = vmatprep.subr.mxu0 %v1722_v25 }
 0x411   :  { %912 = vmatpush1.msra.mxu0 %v1726_v26 }
 0x412   :  { %1141 = vmatprep.subr.mxu0 %v1666_v10 }
 0x4c2   :  { %v703_v37 = vpop.f32.mrf.mxu0 }
 0x4c4   :  { %v705_v38 = vpop.f32.mrf.mxu0 }
 0x4c5   :  { %v710_v41 = vcombine.low %v703_v37, %v705_v38 }
 0x4c7   :  { %v717_v43 = vrot.slane %v710_v41, %v1762_v40 }
 0x4c9   :  { %v719_v45 = vadd.f32 %v717_v43, %v633_v44 }
 0x4cb   :  { %730 = vrot.lane.b32.xlu1 %v719_v45, %s1604_s0  ;;  %v1412_v46 = vmul.f32 -1.442695, %v719_v45  ;;  %v727_v47 = vrot.slane %v719_v45, 2 }
 0x4cd   :  { %1461 = vpow2.f32 %v1412_v46 }
 0x4ce   :  { %1463 = vtanh.f32 %v727_v47 }
 0x4da   :  { %v1462_v48 = vpop.eup %1461 }
 0x4db   :  { %v723_v49 = vadd.f32 1.0, %v1462_v48  ;;  %v1464_v50 = vpop.eup %1463 }
 0x4dd   :  { %1465 = vrcp.f32 %v723_v49 }
 0x4ea   :  { %v1466_v51 = vpop.eup %1465 }
 0x4eb   :  { %v741_v52 = vmul.f32 %v1466_v51, %v1464_v50  ;;  %v740_v53 = vmul.f32 %v1466_v51, %v624_v14  ;;  %v875_v50 = vld [vmem:[#allocation2 + $0x10] sm:$0xf] }
 0x4ed   :  { %743 = vrot.lane.b32.xlu0 %v741_v52, %s1604_s0  ;;  %v876_v52 = vld [vmem:[#allocation3 + $0xc] sm:$0xf] }
 0x53d   :  { %v731_v58 = vpop.permute.xlu1 %730 }
 0x53e   :  { %v732_v59 = vrot.slane %v731_v58, 2 }
 0x540   :  { %v1413_v60 = vmul.f32 -1.442695, %v732_v59 }
 0x55f   :  { %v744_v54 = vpop.permute.xlu0 %743 }
 0x560   :  { %v746_v56 = vadd.f32 %v744_v54, %v740_v53  ;;  %v877_v54 = vadd.f32 %v876_v52, %v875_v50 }
 0x562   :  { %1467 = vtanh.f32 %v746_v56 }
 0x563   :  { %1469 = vpow2.f32 %v1413_v60 }
 0x56f   :  { %v1468_v57 = vpop.eup %1467 }
 0x570   :  { %749 = vrot.lane.b32.xlu0 %v1468_v57, %s1604_s0  ;;  %v1470_v61 = vpop.eup %1469 }
 0x571   :  { %v737_v62 = vadd.f32 1.0, %v1470_v61 }
 0x573   :  { %1471 = vrcp.f32 %v737_v62 }
 0x580   :  { %v1472_v63 = vpop.eup %1471 }
 0x5e2   :  { %v750_v1 = vpop.permute.xlu0 %749 }
 0x5e3   :  { %v1826_v2 = vmul.f32 %v1472_v63, %v750_v1 }
 0x5e5   :  { %1414 = vmatmul.mubr.msk.f32.vlgmr.msra.gmra.mxu1 %vm389_vm1, %v1826_v2 }
 0x5e6   :  { %1020 = vmatpush1.msra.mxu1 %v1668_v11  ;;  %1067 = vmatprep.mubr.f32.mxu1 %v1602_v0 }
 0x5e7   :  { %1021 = vmatprep.subr.mxu1 %v1672_v12 }
 0x5e8   :  { %1022 = vmatpush1.msra.mxu1 %v1676_v13 }
 0x5e9   :  { %1023 = vmatprep.subr.mxu1 %v1683_v15 }
 0x5ea   :  { %1024 = vmatpush1.msra.mxu1 %v1686_v16 }
 0x5eb   :  { %1025 = vmatprep.subr.mxu1 %v1691_v17 }
 0x5ec   :  { %1026 = vmatpush1.msra.mxu1 %v1695_v18 }
 0x5ed   :  { %1027 = vmatprep.subr.mxu1 %v1698_v19 }
 0x5ee   :  { %1028 = vmatpush1.msra.mxu1 %v1702_v20 }
 0x5ef   :  { %1029 = vmatprep.subr.mxu1 %v1706_v21 }
 0x5f0   :  { %1030 = vmatpush1.msra.mxu1 %v1710_v22 }
 0x5f1   :  { %1031 = vmatprep.subr.mxu1 %v1714_v23 }
 0x5f2   :  { %1032 = vmatpush1.msra.mxu1 %v1718_v24 }
 0x5f3   :  { %1033 = vmatprep.subr.mxu1 %v1722_v25 }
 0x5f4   :  { %1034 = vmatpush1.msra.mxu1 %v1726_v26 }
 0x5f5   :  { %1263 = vmatprep.subr.mxu1 %v1666_v10 }
 0x6a5   :  { %v825_v3 = vpop.f32.mrf.mxu1 }
 0x6a7   :  { %v827_v4 = vpop.f32.mrf.mxu1 }
 0x6a8   :  { %v832_v6 = vcombine.low %v825_v3, %v827_v4 }
 0x6aa   :  { %v839_v8 = vrot.slane %v832_v6, %v1762_v40 }
 0x6ac   :  { %v841_v14 = vadd.f32 %v839_v8, %v755_v9 }
 0x6ae   :  { %852 = vrot.lane.b32.xlu0 %v841_v14, %s1604_s0  ;;  %v1415_v28 = vmul.f32 -1.442695, %v841_v14  ;;  %v849_v29 = vrot.slane %v841_v14, 2 }
 0x6b0   :  { %1473 = vpow2.f32 %v1415_v28  ;;  %v1873_v28 = vand.u32 127, %v69_v27 }
 0x6b1   :  { %1475 = vtanh.f32 %v849_v29 }
 0x6b2   :  { %vm1367_vm2 = vcmp.lt.s32.totalorder %v1873_v28, 32 }
 0x6bd   :  { %v1474_v30 = vpop.eup %1473 }
 0x6be   :  { %v845_v31 = vadd.f32 1.0, %v1474_v30  ;;  %v1476_v32 = vpop.eup %1475 }
 0x6c0   :  { %1477 = vrcp.f32 %v845_v31 }
 0x6cd   :  { %v1478_v10 = vpop.eup %1477 }
 0x6ce   :  { %v863_v33 = vmul.f32 %v1478_v10, %v1476_v32  ;;  %v862_v34 = vmul.f32 %v1478_v10, %v746_v56 }
 0x6d0   :  { %865 = vrot.lane.b32.xlu1 %v863_v33, %s1604_s0 }
 0x720   :  { %v853_v39 = vpop.permute.xlu0 %852 }
 0x721   :  { %v854_v41 = vrot.slane %v853_v39, 2 }
 0x723   :  { %v1416_v42 = vmul.f32 -1.442695, %v854_v41 }
 0x742   :  { %v866_v35 = vpop.permute.xlu1 %865 }
 0x743   :  { %v868_v37 = vadd.f32 %v866_v35, %v862_v34 }
 0x745   :  { %1479 = vtanh.f32 %v868_v37 }
 0x746   :  { %1481 = vpow2.f32 %v1416_v42 }
 0x752   :  { %v1480_v38 = vpop.eup %1479 }
 0x753   :  { %871 = vrot.lane.b32.xlu1 %v1480_v38, %s1604_s0  ;;  %v1482_v43 = vpop.eup %1481 }
 0x754   :  { %v859_v44 = vadd.f32 1.0, %v1482_v43 }
 0x756   :  { %1483 = vrcp.f32 %v859_v44 }
 0x763   :  { %v1484_v45 = vpop.eup %1483 }
 0x7c5   :  { %v872_v46 = vpop.permute.xlu1 %871 }
 0x7c6   :  { %v874_v47 = vmul.f32 %v1484_v45, %v872_v46 }
 0x7c8   :  { %1417 = vmatmul.mubr.msk.f32.vlgmr.msra.gmra.mxu0 %vm389_vm1, %v874_v47 }
 0x7c9   :  { %1142 = vmatpush1.msra.mxu0 %v1668_v11  ;;  %1189 = vmatprep.mubr.f32.mxu0 %v1602_v0 }
 0x7ca   :  { %1143 = vmatprep.subr.mxu0 %v1672_v12 }
 0x7cb   :  { %1144 = vmatpush1.msra.mxu0 %v1676_v13 }
 0x7cc   :  { %1145 = vmatprep.subr.mxu0 %v1683_v15 }
 0x7cd   :  { %1146 = vmatpush1.msra.mxu0 %v1686_v16 }
 0x7ce   :  { %1147 = vmatprep.subr.mxu0 %v1691_v17 }
 0x7cf   :  { %1148 = vmatpush1.msra.mxu0 %v1695_v18 }
 0x7d0   :  { %1149 = vmatprep.subr.mxu0 %v1698_v19 }
 0x7d1   :  { %1150 = vmatpush1.msra.mxu0 %v1702_v20 }
 0x7d2   :  { %1151 = vmatprep.subr.mxu0 %v1706_v21 }
 0x7d3   :  { %1152 = vmatpush1.msra.mxu0 %v1710_v22 }
 0x7d4   :  { %1153 = vmatprep.subr.mxu0 %v1714_v23 }
 0x7d5   :  { %1154 = vmatpush1.msra.mxu0 %v1718_v24 }
 0x7d6   :  { %1155 = vmatprep.subr.mxu0 %v1722_v25 }
 0x7d7   :  { %1156 = vmatpush1.msra.mxu0 %v1726_v26 }
 0x888   :  { %v947_v48 = vpop.f32.mrf.mxu0 }
 0x88a   :  { %v949_v49 = vpop.f32.mrf.mxu0 }
 0x88b   :  { %v954_v51 = vcombine.low %v947_v48, %v949_v49  ;;  %v1119_v49 = vld [vmem:[#allocation2 + $0x18] sm:$0xf] }
 0x88d   :  { %v961_v53 = vrot.slane %v954_v51, %v1762_v40  ;;  %v1120_v51 = vld [vmem:[#allocation3 + $0x4] sm:$0xf] }
 0x88f   :  { %v963_v56 = vadd.f32 %v961_v53, %v877_v54 }
 0x891   :  { %974 = vrot.lane.b32.xlu1 %v963_v56, %s1604_s0  ;;  %v1418_v57 = vmul.f32 -1.442695, %v963_v56  ;;  %v971_v58 = vrot.slane %v963_v56, 2 }
 0x893   :  { %1485 = vpow2.f32 %v1418_v57 }
 0x894   :  { %1487 = vtanh.f32 %v971_v58 }
 0x8a0   :  { %v1486_v59 = vpop.eup %1485 }
 0x8a1   :  { %v967_v60 = vadd.f32 1.0, %v1486_v59  ;;  %v1488_v61 = vpop.eup %1487 }
 0x8a3   :  { %1489 = vrcp.f32 %v967_v60 }
 0x8b0   :  { %v1490_v62 = vpop.eup %1489 }
 0x8b1   :  { %v985_v63 = vmul.f32 %v1490_v62, %v1488_v61  ;;  %v984_v1 = vmul.f32 %v1490_v62, %v868_v37 }
 0x8b3   :  { %987 = vrot.lane.b32.xlu0 %v985_v63, %s1604_s0 }
 0x903   :  { %v975_v6 = vpop.permute.xlu1 %974 }
 0x904   :  { %v976_v7 = vrot.slane %v975_v6, 2 }
 0x906   :  { %v1419_v8 = vmul.f32 -1.442695, %v976_v7 }
 0x925   :  { %v988_v3 = vpop.permute.xlu0 %987 }
 0x926   :  { %v990_v4 = vadd.f32 %v988_v3, %v984_v1 }
 0x928   :  { %1491 = vtanh.f32 %v990_v4 }
 0x929   :  { %1493 = vpow2.f32 %v1419_v8 }
 0x935   :  { %v1492_v5 = vpop.eup %1491 }
 0x936   :  { %993 = vrot.lane.b32.xlu0 %v1492_v5, %s1604_s0  ;;  %v1494_v9 = vpop.eup %1493 }
 0x937   :  { %v981_v14 = vadd.f32 1.0, %v1494_v9 }
 0x939   :  { %1495 = vrcp.f32 %v981_v14 }
 0x946   :  { %v1496_v29 = vpop.eup %1495 }
 0x9a8   :  { %v994_v30 = vpop.permute.xlu0 %993 }
 0x9a9   :  { %v996_v31 = vmul.f32 %v1496_v29, %v994_v30 }
 0x9ab   :  { %v1371_v32 = vsel %vm1367_vm2, %v874_v47, %v996_v31  ;;  %v1372_v10 = vsel %vm1367_vm2, %v996_v31, %v874_v47  ;;  %1420 = vmatmul.mubr.msk.f32.vlgmr.msra.gmra.mxu1 %vm389_vm1, %v996_v31 }
 0x9ac   :  { %1379 = vst.msk [vmem:[%s1970_s5 + $0x6] sm:$0x3] %vm1363_vm3, %v1371_v32  ;;  %1380 = vst.msk [vmem:[%s1970_s5 + $0x8] sm:$0x3] %vm1363_vm3, %v1372_v10  ;;  %1264 = vmatpush1.msra.mxu1 %v1668_v11  ;;  %1311 = vmatprep.mubr.f32.mxu1 %v1602_v0 }
 0x9ad   :  { %1265 = vmatprep.subr.mxu1 %v1672_v12  ;;  %v997_v12 = vld [vmem:[#allocation2 + $0x14] sm:$0xf] }
 0x9ae   :  { %1266 = vmatpush1.msra.mxu1 %v1676_v13 }
 0x9af   :  { %1267 = vmatprep.subr.mxu1 %v1683_v15  ;;  %v998_v15 = vld [vmem:[#allocation3 + $0x8] sm:$0xf] }
 0x9b0   :  { %1268 = vmatpush1.msra.mxu1 %v1686_v16 }
 0x9b1   :  { %1269 = vmatprep.subr.mxu1 %v1691_v17  ;;  %v999_v17 = vadd.f32 %v998_v15, %v997_v12  ;;  %v1242_v12 = vld [vmem:[#allocation3] sm:$0xf] }
 0x9b2   :  { %1270 = vmatpush1.msra.mxu1 %v1695_v18 }
 0x9b3   :  { %1271 = vmatprep.subr.mxu1 %v1698_v19 }
 0x9b4   :  { %1272 = vmatpush1.msra.mxu1 %v1702_v20 }
 0x9b5   :  { %1273 = vmatprep.subr.mxu1 %v1706_v21 }
 0x9b6   :  { %1274 = vmatpush1.msra.mxu1 %v1710_v22 }
 0x9b7   :  { %1275 = vmatprep.subr.mxu1 %v1714_v23 }
 0x9b8   :  { %1276 = vmatpush1.msra.mxu1 %v1718_v24 }
 0x9b9   :  { %1277 = vmatprep.subr.mxu1 %v1722_v25 }
 0x9ba   :  { %1278 = vmatpush1.msra.mxu1 %v1726_v26 }
 0xa6b   :  { %v1069_v0 = vpop.f32.mrf.mxu1 }
 0xa6d   :  { %v1071_v11 = vpop.f32.mrf.mxu1 }
 0xa6e   :  { %v1076_v13 = vcombine.low %v1069_v0, %v1071_v11  ;;  %v1241_v0 = vld [vmem:[#allocation2 + $0x1c] sm:$0xf] }
 0xa70   :  { %v1083_v16 = vrot.slane %v1076_v13, %v1762_v40 }
 0xa72   :  { %v1085_v18 = vadd.f32 %v1083_v16, %v999_v17 }
 0xa74   :  { %1096 = vrot.lane.b32.xlu0 %v1085_v18, %s1604_s0  ;;  %v1421_v19 = vmul.f32 -1.442695, %v1085_v18  ;;  %v1093_v20 = vrot.slane %v1085_v18, 2 }
 0xa76   :  { %1497 = vpow2.f32 %v1421_v19 }
 0xa77   :  { %1499 = vtanh.f32 %v1093_v20 }
 0xa83   :  { %v1498_v21 = vpop.eup %1497 }
 0xa84   :  { %v1089_v22 = vadd.f32 1.0, %v1498_v21  ;;  %v1500_v23 = vpop.eup %1499 }
 0xa86   :  { %1501 = vrcp.f32 %v1089_v22 }
 0xa93   :  { %v1502_v24 = vpop.eup %1501 }
 0xa94   :  { %v1107_v25 = vmul.f32 %v1502_v24, %v1500_v23  ;;  %v1106_v26 = vmul.f32 %v1502_v24, %v990_v4 }
 0xa96   :  { %1109 = vrot.lane.b32.xlu1 %v1107_v25, %s1604_s0 }
 0xae6   :  { %v1097_v35 = vpop.permute.xlu0 %1096 }
 0xae7   :  { %v1098_v37 = vrot.slane %v1097_v35, 2 }
 0xae9   :  { %v1422_v38 = vmul.f32 -1.442695, %v1098_v37 }
 0xb08   :  { %v1110_v27 = vpop.permute.xlu1 %1109 }
 0xb09   :  { %v1112_v33 = vadd.f32 %v1110_v27, %v1106_v26 }
 0xb0b   :  { %1503 = vtanh.f32 %v1112_v33 }
 0xb0c   :  { %1505 = vpow2.f32 %v1422_v38 }
 0xb18   :  { %v1504_v34 = vpop.eup %1503 }
 0xb19   :  { %1115 = vrot.lane.b32.xlu1 %v1504_v34, %s1604_s0  ;;  %v1506_v39 = vpop.eup %1505 }
 0xb1a   :  { %v1103_v41 = vadd.f32 1.0, %v1506_v39 }
 0xb1c   :  { %1507 = vrcp.f32 %v1103_v41 }
 0xb29   :  { %v1508_v42 = vpop.eup %1507 }
 0xb8b   :  { %v1116_v43 = vpop.permute.xlu1 %1115 }
 0xb8c   :  { %v1118_v44 = vmul.f32 %v1508_v42, %v1116_v43 }
 0xb8e   :  { %v1370_v45 = vsel %vm1367_vm2, %v1826_v2, %v1118_v44  ;;  %v1373_v46 = vsel %vm1367_vm2, %v1118_v44, %v1826_v2  ;;  %1423 = vmatmul.mubr.msk.f32.vlgmr.msra.gmra.mxu0 %vm389_vm1, %v1118_v44  ;;  %v1121_v2 = vadd.f32 %v1120_v51, %v1119_v49 }
 0xb8f   :  { %1378 = vst.msk [vmem:[%s1970_s5 + $0x4] sm:$0x3] %vm1363_vm3, %v1370_v45  ;;  %1381 = vst.msk [vmem:[%s1970_s5 + $0xa] sm:$0x3] %vm1363_vm3, %v1373_v46 }
 0xc4e   :  { %v1191_v47 = vpop.f32.mrf.mxu0 }
 0xc50   :  { %v1193_v48 = vpop.f32.mrf.mxu0 }
 0xc51   :  { %v1198_v50 = vcombine.low %v1191_v47, %v1193_v48 }
 0xc53   :  { %v1205_v52 = vrot.slane %v1198_v50, %v1762_v40 }
 0xc55   :  { %v1207_v53 = vadd.f32 %v1205_v52, %v1121_v2 }
 0xc57   :  { %1218 = vrot.lane.b32.xlu1 %v1207_v53, %s1604_s0  ;;  %v1424_v54 = vmul.f32 -1.442695, %v1207_v53  ;;  %v1215_v56 = vrot.slane %v1207_v53, 2 }
 0xc59   :  { %1509 = vpow2.f32 %v1424_v54 }
 0xc5a   :  { %1511 = vtanh.f32 %v1215_v56 }
 0xc66   :  { %v1510_v57 = vpop.eup %1509 }
 0xc67   :  { %v1211_v58 = vadd.f32 1.0, %v1510_v57  ;;  %v1512_v59 = vpop.eup %1511 }
 0xc69   :  { %1513 = vrcp.f32 %v1211_v58 }
 0xc76   :  { %v1514_v60 = vpop.eup %1513 }
 0xc77   :  { %v1229_v61 = vmul.f32 %v1514_v60, %v1512_v59  ;;  %v1228_v62 = vmul.f32 %v1514_v60, %v1112_v33 }
 0xc79   :  { %1231 = vrot.lane.b32.xlu0 %v1229_v61, %s1604_s0 }
 0xcc9   :  { %v1219_v4 = vpop.permute.xlu1 %1218 }
 0xcca   :  { %v1220_v5 = vrot.slane %v1219_v4, 2 }
 0xccc   :  { %v1425_v6 = vmul.f32 -1.442695, %v1220_v5 }
 0xceb   :  { %v1232_v63 = vpop.permute.xlu0 %1231 }
 0xcec   :  { %v1234_v1 = vadd.f32 %v1232_v63, %v1228_v62 }
 0xcee   :  { %1515 = vtanh.f32 %v1234_v1 }
 0xcef   :  { %1517 = vpow2.f32 %v1425_v6 }
 0xcfb   :  { %v1516_v3 = vpop.eup %1515 }
 0xcfc   :  { %1237 = vrot.lane.b32.xlu0 %v1516_v3, %s1604_s0  ;;  %v1518_v7 = vpop.eup %1517 }
 0xcfd   :  { %v1225_v8 = vadd.f32 1.0, %v1518_v7 }
 0xcff   :  { %1519 = vrcp.f32 %v1225_v8 }
 0xd0c   :  { %v1520_v9 = vpop.eup %1519 }
 0xd6e   :  { %v1238_v14 = vpop.permute.xlu0 %1237 }
 0xd6f   :  { %v1240_v29 = vmul.f32 %v1520_v9, %v1238_v14 }
 0xd71   :  { %v1369_v30 = vsel %vm1367_vm2, %v1801_v36, %v1240_v29  ;;  %v1374_v31 = vsel %vm1367_vm2, %v1240_v29, %v1801_v36  ;;  %1426 = vmatmul.mubr.msk.f32.vlgmr.msra.gmra.mxu1 %vm389_vm1, %v1240_v29  ;;  %v1243_v36 = vadd.f32 %v1242_v12, %v1241_v0 }
 0xd72   :  { %1377 = vst.msk [vmem:[%s1970_s5 + $0x2] sm:$0x3] %vm1363_vm3, %v1369_v30  ;;  %1382 = vst.msk [vmem:[%s1970_s5 + $0xc] sm:$0x3] %vm1363_vm3, %v1374_v31 }
 0xe31   :  { %v1313_v32 = vpop.f32.mrf.mxu1 }
 0xe33   :  { %v1315_v10 = vpop.f32.mrf.mxu1 }
 0xe34   :  { %v1320_v11 = vcombine.low %v1313_v32, %v1315_v10 }
 0xe36   :  { %v1327_v13 = vrot.slane %v1320_v11, %v1762_v40 }
 0xe38   :  { %v1329_v15 = vadd.f32 %v1327_v13, %v1243_v36 }
 0xe3a   :  { %1340 = vrot.lane.b32.xlu0 %v1329_v15, %s1604_s0  ;;  %v1427_v16 = vmul.f32 -1.442695, %v1329_v15  ;;  %v1337_v17 = vrot.slane %v1329_v15, 2 }
 0xe3c   :  { %1521 = vpow2.f32 %v1427_v16 }
 0xe3d   :  { %1523 = vtanh.f32 %v1337_v17 }
 0xe49   :  { %v1522_v18 = vpop.eup %1521 }
 0xe4a   :  { %v1333_v19 = vadd.f32 1.0, %v1522_v18  ;;  %v1524_v20 = vpop.eup %1523 }
 0xe4c   :  { %1525 = vrcp.f32 %v1333_v19 }
 0xe59   :  { %v1526_v21 = vpop.eup %1525 }
 0xe5a   :  { %v1351_v22 = vmul.f32 %v1526_v21, %v1524_v20  ;;  %v1350_v23 = vmul.f32 %v1526_v21, %v1234_v1 }
 0xe5c   :  { %1353 = vrot.lane.b32.xlu1 %v1351_v22, %s1604_s0 }
 0xeac   :  { %v1341_v26 = vpop.permute.xlu0 %1340 }
 0xead   :  { %v1342_v27 = vrot.slane %v1341_v26, 2 }
 0xeaf   :  { %v1428_v33 = vmul.f32 -1.442695, %v1342_v27 }
 0xece   :  { %v1354_v24 = vpop.permute.xlu1 %1353 }
 0xecf   :  { %v1356_v25 = vadd.f32 %v1354_v24, %v1350_v23 }
 0xed1   :  { %1527 = vtanh.f32 %v1356_v25 }
 0xed2   :  { %1529 = vpow2.f32 %v1428_v33 }
 0xede   :  { %v1528_v40 = vpop.eup %1527 }
 0xedf   :  { %1359 = vrot.lane.b32.xlu1 %v1528_v40, %s1604_s0  ;;  %v1530_v34 = vpop.eup %1529 }
 0xee0   :  { %v1347_v35 = vadd.f32 1.0, %v1530_v34 }
 0xee2   :  { %1531 = vrcp.f32 %v1347_v35 }
 0xeef   :  { %v1532_v37 = vpop.eup %1531 }
 0xf51   :  { %v1360_v38 = vpop.permute.xlu1 %1359 }
 0xf52   :  { %v1362_v39 = vmul.f32 %v1532_v37, %v1360_v38 }
 0xf54   :  { %1364 = vst.msk [vmem:[%s1971_s6] sm:$0x3] %vm1363_vm3, %v1362_v39  ;;  %v1368_v41 = vsel %vm1367_vm2, %v1776_v55, %v1362_v39  ;;  %v1375_v42 = vsel %vm1367_vm2, %v1362_v39, %v1776_v55 }
 0xf55   :  { %1376 = vst.msk [vmem:[%s1970_s5] sm:$0x3] %vm1363_vm3, %v1368_v41  ;;  %1383 = vst.msk [vmem:[%s1970_s5 + $0xe] sm:$0x3] %vm1363_vm3, %v1375_v42 }
 0xf56   :  { %1392 = vsyncpa [#allocation5], 1 }
 0xf57   :  { %1393 = vsyncpa [#allocation7], 1 }

</bundles_post_ra>
